<compile_context>
chip_gen: v7x
topology: tpu7x:2x2x1
jax: 0.10.0
libtpu: 0.0.40
codegen_flags: <defaults>
</compile_context>

<pallas_src>
import math
import numpy as np
import jax
import jax.numpy as jnp
from jax.experimental import pallas as pl
from jax.experimental.pallas import tpu as pltpu

# ----------------------------- small config -----------------------------
N_VOCAB = 16          # target vocab
PAD_IDX = 0
D_MODEL = 32          # d_model == d_word_vec
D_INNER = 64
N_LAYERS = 2
N_HEAD = 4
D_K = 8
D_V = 8
N_POSITION = 16
B = 2
L_SRC = 8
L_TRG = 8
EPS = 1e-6
SCALE_EMB = False     # Decoder(..., scale_emb=False) default


# ----------------------------- in-kernel helpers -----------------------------
def _ln(x, g, b):
    mean = jnp.mean(x, axis=-1, keepdims=True)
    var = jnp.mean((x - mean) ** 2, axis=-1, keepdims=True)
    return (x - mean) * jax.lax.rsqrt(var + EPS) * g + b


def _mha(xq, xkv, bias, wq, wk, wv, wo, g, b, Lq, Lk):
    # xq: (B*Lq, D), xkv: (B*Lk, D).  bias is already head-tiled: (H*B, Lq|1, Lk),
    # additive (0 keep / -1e9 masked).  wq has 1/sqrt(D_K) folded in at init.
    q = jnp.dot(xq, wq, preferred_element_type=jnp.float32)    # (B*Lq, H*Dk)
    k = jnp.dot(xkv, wk, preferred_element_type=jnp.float32)   # (B*Lk, H*Dk)
    v = jnp.dot(xkv, wv, preferred_element_type=jnp.float32)   # (B*Lk, H*Dv)
    # Fold heads into the leading batch axis (head-major) so scores and P@V are each
    # ONE batched contraction over H*B instead of a pair of einsums per head.
    qs = jnp.concatenate([q[:, h * D_K:(h + 1) * D_K].reshape(B, Lq, D_K)
                          for h in range(N_HEAD)], axis=0)      # (H*B, Lq, Dk)
    ks = jnp.concatenate([k[:, h * D_K:(h + 1) * D_K].reshape(B, Lk, D_K)
                          for h in range(N_HEAD)], axis=0)      # (H*B, Lk, Dk)
    vs = jnp.concatenate([v[:, h * D_V:(h + 1) * D_V].reshape(B, Lk, D_V)
                          for h in range(N_HEAD)], axis=0)      # (H*B, Lk, Dv)
    s = jnp.einsum('bqd,bkd->bqk', qs, ks,
                   preferred_element_type=jnp.float32) + bias   # (H*B, Lq, Lk)
    s = s - jnp.max(s, axis=-1, keepdims=True)                  # kept for num. safety
    p = jnp.exp(s)
    p = p * pl.reciprocal(jnp.sum(p, axis=-1, keepdims=True), approx=True)
    o = jnp.einsum('bqk,bkd->bqd', p, vs,
                   preferred_element_type=jnp.float32)          # (H*B, Lq, Dv)
    o = o.reshape(N_HEAD, B * Lq, D_V)
    heads = jnp.concatenate([o[h] for h in range(N_HEAD)], axis=-1)   # (B*Lq, H*Dv)
    # single output projection on the concatenated heads (== concat(heads) @ wo)
    out = jnp.dot(heads, wo, preferred_element_type=jnp.float32) + xq  # residual
    return _ln(out, g, b)


def _ffn(x, w1, b1, w2, b2, g, b):
    h = jnp.maximum(jnp.dot(x, w1, preferred_element_type=jnp.float32) + b1, 0.0)
    y = jnp.dot(h, w2, preferred_element_type=jnp.float32) + b2
    return _ln(y + x, g, b)


# ----------------------------- fused decoder kernel -----------------------------
# gb row layout: [0]=dec_g, [1]=dec_b, then per layer l at r = 2 + 7*l:
#   r+0=s_g, r+1=s_b, r+2=c_g, r+3=c_b, r+4=f_g, r+5=f_b, r+6=f_b2
def decoder_kernel(ids_ref, emb_ref, pos_ref, enc_ref, trg_mask_ref, src_mask_ref,
                   gb_ref, s_w_ref, c_w_ref, f_w1_ref, f_w2_ref, f_b1_ref, o_ref):
    # --- embedding (gather-free one-hot matmul) + positional encoding -----------
    ids = ids_ref[...]                                               # (B*Lt, 1) int32
    col = jax.lax.broadcasted_iota(jnp.int32, (B * L_TRG, N_VOCAB), 1)
    onehot = (col == ids).astype(jnp.float32)                        # (B*Lt, V)
    x = jnp.dot(onehot, emb_ref[...], preferred_element_type=jnp.float32)  # (B*Lt, D)
    if SCALE_EMB:
        x = x * (D_MODEL ** 0.5)
    pos = pos_ref[0:L_TRG, :]                                        # (Lt, D)
    x = x + jnp.concatenate([pos] * B, axis=0)
    # TODO(synk): dropout (p=0.1) is identity here (eval-mode semantics).

    gb = gb_ref[...]                                                 # (2+7*L, D)
    x = _ln(x, gb[0:1], gb[1:2])                                     # pre-stack LN

    enc = enc_ref[...]                                               # (B*Ls, D)

    # --- additive mask biases (0 keep / -1e9 masked), head-tiled once -----------
    slf_b = (trg_mask_ref[...] - 1.0) * 1e9                          # (B, Lt, Lt)
    ca_b = (src_mask_ref[...] - 1.0) * 1e9                           # (B, 1, Ls)
    slf_bias = jnp.concatenate([slf_b] * N_HEAD, axis=0)             # (H*B, Lt, Lt)
    ca_bias = jnp.concatenate([ca_b] * N_HEAD, axis=0)               # (H*B, 1, Ls)

    # --- layer stack (statically unrolled) ---------------------------------------
    for l in range(N_LAYERS):
        r = 2 + 7 * l
        sw = s_w_ref[l]                                              # (4, D, D)
        cw = c_w_ref[l]
        x = _mha(x, x, slf_bias, sw[0], sw[1], sw[2], sw[3],
                 gb[r + 0:r + 1], gb[r + 1:r + 2], L_TRG, L_TRG)
        x = _mha(x, enc, ca_bias, cw[0], cw[1], cw[2], cw[3],
                 gb[r + 2:r + 3], gb[r + 3:r + 4], L_TRG, L_SRC)
        x = _ffn(x, f_w1_ref[l], f_b1_ref[l], f_w2_ref[l], gb[r + 6:r + 7],
                 gb[r + 4:r + 5], gb[r + 5:r + 6])
    o_ref[...] = x


# ----------------------------- wrapper (Decoder.forward) -----------------------------
def decoder_forward(params, trg_seq, trg_mask, enc_output, src_mask):
    Bsz, Lt = trg_seq.shape
    Ls = enc_output.shape[1]

    ids = trg_seq.reshape(Bsz * Lt, 1).astype(jnp.int32)
    enc2d = enc_output.reshape(Bsz * Ls, D_MODEL).astype(jnp.float32)
    trg_mask_f = trg_mask.astype(jnp.float32)                        # (B, Lt, Lt)
    src_mask_f = src_mask.astype(jnp.float32)                        # (B, 1, Ls)

    vmem_spec = lambda: pl.BlockSpec(memory_space=pltpu.MemorySpace.VMEM)
    out2d = pl.pallas_call(
        decoder_kernel,
        out_shape=jax.ShapeDtypeStruct((Bsz * Lt, D_MODEL), jnp.float32),
        in_specs=[vmem_spec() for _ in range(12)],
        out_specs=vmem_spec(),
    )(ids, params["emb_W"], params["pos_table"], enc2d, trg_mask_f, src_mask_f,
      params["gb"], params["s_w"], params["c_w"],
      params["f_w1"], params["f_w2"], params["f_b1"])
    return out2d.reshape(Bsz, Lt, D_MODEL)


# ----------------------------- parameters -----------------------------
def sinusoid_table(n_position, d_hid):
    pos = np.arange(n_position)[:, None].astype(np.float64)
    hid = np.arange(d_hid)[None, :]
    angle = pos / np.power(10000.0, 2 * (hid // 2) / d_hid)
    table = np.zeros((n_position, d_hid), dtype=np.float64)
    table[:, 0::2] = np.sin(angle[:, 0::2])
    table[:, 1::2] = np.cos(angle[:, 1::2])
    return jnp.asarray(table, jnp.float32)


def xavier(key, shape):
    fan_in, fan_out = shape
    limit = math.sqrt(6.0 / (fan_in + fan_out))
    return jax.random.uniform(key, shape, jnp.float32, -limit, limit)


def init_params(key):
    keys = jax.random.split(key, 1 + 10 * N_LAYERS)
    emb_W = xavier(keys[0], (N_VOCAB, D_MODEL)).at[PAD_IDX].set(0.0)  # padding_idx row = 0

    scale = 1.0 / math.sqrt(D_K)

    def attn_weights(ks):
        # [wq (with 1/sqrt(d_k) folded in), wk, wv, wo] -> (4, D, D)
        return jnp.stack([xavier(ks[0], (D_MODEL, N_HEAD * D_K)) * scale,
                          xavier(ks[1], (D_MODEL, N_HEAD * D_K)),
                          xavier(ks[2], (D_MODEL, N_HEAD * D_V)),
                          xavier(ks[3], (N_HEAD * D_V, D_MODEL))])

    s_w, c_w, f_w1, f_w2 = [], [], [], []
    ki = 1
    for _ in range(N_LAYERS):
        s_w.append(attn_weights(keys[ki:ki + 4])); ki += 4
        c_w.append(attn_weights(keys[ki:ki + 4])); ki += 4
        f_w1.append(xavier(keys[ki], (D_MODEL, D_INNER))); ki += 1
        f_w2.append(xavier(keys[ki], (D_INNER, D_MODEL))); ki += 1

    ones_d = jnp.ones((D_MODEL,), jnp.float32)
    zeros_d = jnp.zeros((D_MODEL,), jnp.float32)
    # packed gains/biases: [dec_g, dec_b] + per layer [s_g, s_b, c_g, c_b, f_g, f_b, f_b2]
    gb_rows = [ones_d, zeros_d]
    for _ in range(N_LAYERS):
        gb_rows += [ones_d, zeros_d, ones_d, zeros_d, ones_d, zeros_d, zeros_d]

    return dict(
        emb_W=emb_W,
        pos_table=sinusoid_table(N_POSITION, D_MODEL),
        gb=jnp.stack(gb_rows),                                   # (2+7*N_LAYERS, D)
        s_w=jnp.stack(s_w),                                      # (N_LAYERS, 4, D, D)
        c_w=jnp.stack(c_w),                                      # (N_LAYERS, 4, D, D)
        f_w1=jnp.stack(f_w1),                                    # (N_LAYERS, D, D_INNER)
        f_w2=jnp.stack(f_w2),                                    # (N_LAYERS, D_INNER, D)
        f_b1=jnp.zeros((N_LAYERS, 1, D_INNER), jnp.float32),
    )


# ----------------------------- main -----------------------------
if __name__ == "__main__":
    key = jax.random.PRNGKey(0)
    k_param, k_src, k_trg, k_enc = jax.random.split(key, 4)

    params = init_params(k_param)

    # deterministic example inputs (the Decoder takes trg_seq, trg_mask, enc_output, src_mask)
    src_seq = jax.random.randint(k_src, (B, L_SRC), 1, N_VOCAB, dtype=jnp.int32)
    trg_seq = jax.random.randint(k_trg, (B, L_TRG), 1, N_VOCAB, dtype=jnp.int32)
    src_seq = src_seq.at[0, -2:].set(PAD_IDX)      # exercise padding masks
    trg_seq = trg_seq.at[1, -1:].set(PAD_IDX)

    src_mask = (src_seq != PAD_IDX)[:, None, :]                          # (B, 1, Ls)
    trg_pad = (trg_seq != PAD_IDX)[:, None, :]                           # (B, 1, Lt)
    subsequent = jnp.tril(jnp.ones((L_TRG, L_TRG), jnp.bool_))[None]     # (1, Lt, Lt)
    trg_mask = jnp.logical_and(trg_pad, subsequent)                      # (B, Lt, Lt)

    enc_output = jax.random.normal(k_enc, (B, L_SRC, D_MODEL), jnp.float32)

    dec_out = decoder_forward(params, trg_seq, trg_mask, enc_output, src_mask)
    dec_out = jax.block_until_ready(dec_out)
    assert dec_out.shape == (B, L_TRG, D_MODEL)
    assert bool(jnp.all(jnp.isfinite(dec_out)))
    print("KERNEL_OK")
</pallas_src>

<mosaic_0001>
module attributes {stable_mosaic.version = 11 : i64} {
  func.func @decoder_kernel(%arg0: memref<16x1xi32, #tpu.memory_space<vmem>>, %arg1: memref<16x32xf32, #tpu.memory_space<vmem>>, %arg2: memref<16x32xf32, #tpu.memory_space<vmem>>, %arg3: memref<16x32xf32, #tpu.memory_space<vmem>>, %arg4: memref<2x8x8xf32, #tpu.memory_space<vmem>>, %arg5: memref<2x1x8xf32, #tpu.memory_space<vmem>>, %arg6: memref<16x32xf32, #tpu.memory_space<vmem>>, %arg7: memref<2x4x32x32xf32, #tpu.memory_space<vmem>>, %arg8: memref<2x4x32x32xf32, #tpu.memory_space<vmem>>, %arg9: memref<2x32x64xf32, #tpu.memory_space<vmem>>, %arg10: memref<2x64x32xf32, #tpu.memory_space<vmem>>, %arg11: memref<2x1x64xf32, #tpu.memory_space<vmem>>, %arg12: memref<16x32xf32, #tpu.memory_space<vmem>>) attributes {dimension_semantics = [], scalar_prefetch = 0 : i64, scratch_operands = 0 : i64, tpu.core_type = #tpu.core_type<tc>} {
    %c0 = arith.constant 0 : index
    %c0_0 = arith.constant 0 : index
    %0 = vector.load %arg0[%c0, %c0_0] : memref<16x1xi32, #tpu.memory_space<vmem>>, vector<16x1xi32>
    %1 = tpu.iota {dimensions = array<i32: 1>} : vector<16x16xi32>
    %2 = vector.broadcast %0 : vector<16x1xi32> to vector<16x16xi32>
    %3 = arith.cmpi eq, %1, %2 : vector<16x16xi32>
    %4 = arith.extui %3 : vector<16x16xi1> to vector<16x16xi32>
    %5 = arith.sitofp %4 : vector<16x16xi32> to vector<16x16xf32>
    %c0_1 = arith.constant 0 : index
    %c0_2 = arith.constant 0 : index
    %6 = vector.load %arg1[%c0_1, %c0_2] : memref<16x32xf32, #tpu.memory_space<vmem>>, vector<16x32xf32>
    %cst = arith.constant dense<0.000000e+00> : vector<16x32xf32>
    %7 = tpu.matmul %5, %6, %cst {dimension_numbers = #tpu.dot_dimension_numbers<[1], [0], [0], [1], [0, 0, 1, 1], [], []>} : vector<16x16xf32>, vector<16x32xf32>, vector<16x32xf32> -> vector<16x32xf32>
    %c0_3 = arith.constant 0 : index
    %c0_4 = arith.constant 0 : index
    %8 = vector.load %arg2[%c0_3, %c0_4] : memref<16x32xf32, #tpu.memory_space<vmem>>, vector<8x32xf32>
    %9 = tpu.concatenate %8, %8 in 0 : vector<8x32xf32>, vector<8x32xf32> -> vector<16x32xf32>
    %10 = arith.addf %7, %9 : vector<16x32xf32>
    %c0_5 = arith.constant 0 : index
    %c0_6 = arith.constant 0 : index
    %11 = vector.load %arg6[%c0_5, %c0_6] : memref<16x32xf32, #tpu.memory_space<vmem>>, vector<16x32xf32>
    %12 = vector.extract_strided_slice %11 {offsets = [0, 0], sizes = [1, 32], strides = [1, 1]} : vector<16x32xf32> to vector<1x32xf32>
    %13 = vector.extract_strided_slice %11 {offsets = [1, 0], sizes = [1, 32], strides = [1, 1]} : vector<16x32xf32> to vector<1x32xf32>
    %cst_7 = arith.constant dense<0.000000e+00> : vector<16xf32>
    %14 = vector.multi_reduction <add>, %10, %cst_7 [1] : vector<16x32xf32> to vector<16xf32>
    %15 = vector.shape_cast %14 : vector<16xf32> to vector<16x1xf32>
    %cst_8 = arith.constant 3.200000e+01 : f32
    %16 = vector.broadcast %cst_8 : f32 to vector<16x1xf32>
    %17 = arith.divf %15, %16 : vector<16x1xf32>
    %18 = vector.broadcast %17 : vector<16x1xf32> to vector<16x32xf32>
    %19 = arith.subf %10, %18 : vector<16x32xf32>
    %20 = arith.mulf %19, %19 : vector<16x32xf32>
    %cst_9 = arith.constant dense<0.000000e+00> : vector<16xf32>
    %21 = vector.multi_reduction <add>, %20, %cst_9 [1] : vector<16x32xf32> to vector<16xf32>
    %22 = vector.shape_cast %21 : vector<16xf32> to vector<16x1xf32>
    %cst_10 = arith.constant 3.200000e+01 : f32
    %23 = vector.broadcast %cst_10 : f32 to vector<16x1xf32>
    %24 = arith.divf %22, %23 : vector<16x1xf32>
    %25 = vector.broadcast %17 : vector<16x1xf32> to vector<16x32xf32>
    %26 = arith.subf %10, %25 : vector<16x32xf32>
    %cst_11 = arith.constant 9.99999997E-7 : f32
    %27 = vector.broadcast %cst_11 : f32 to vector<16x1xf32>
    %28 = arith.addf %24, %27 : vector<16x1xf32>
    %29 = math.rsqrt %28 : vector<16x1xf32>
    %30 = vector.broadcast %29 : vector<16x1xf32> to vector<16x32xf32>
    %31 = arith.mulf %26, %30 : vector<16x32xf32>
    %32 = vector.broadcast %12 : vector<1x32xf32> to vector<16x32xf32>
    %33 = arith.mulf %31, %32 : vector<16x32xf32>
    %34 = vector.broadcast %13 : vector<1x32xf32> to vector<16x32xf32>
    %35 = arith.addf %33, %34 : vector<16x32xf32>
    %c0_12 = arith.constant 0 : index
    %c0_13 = arith.constant 0 : index
    %36 = vector.load %arg3[%c0_12, %c0_13] : memref<16x32xf32, #tpu.memory_space<vmem>>, vector<16x32xf32>
    %c0_14 = arith.constant 0 : index
    %c0_15 = arith.constant 0 : index
    %c0_16 = arith.constant 0 : index
    %37 = vector.load %arg4[%c0_14, %c0_15, %c0_16] : memref<2x8x8xf32, #tpu.memory_space<vmem>>, vector<2x8x8xf32>
    %cst_17 = arith.constant 1.000000e+00 : f32
    %38 = vector.broadcast %cst_17 : f32 to vector<2x8x8xf32>
    %39 = arith.subf %37, %38 : vector<2x8x8xf32>
    %cst_18 = arith.constant 1.000000e+09 : f32
    %40 = vector.broadcast %cst_18 : f32 to vector<2x8x8xf32>
    %41 = arith.mulf %39, %40 : vector<2x8x8xf32>
    %c0_19 = arith.constant 0 : index
    %c0_20 = arith.constant 0 : index
    %c0_21 = arith.constant 0 : index
    %42 = vector.load %arg5[%c0_19, %c0_20, %c0_21] : memref<2x1x8xf32, #tpu.memory_space<vmem>>, vector<2x1x8xf32>
    %cst_22 = arith.constant 1.000000e+00 : f32
    %43 = vector.broadcast %cst_22 : f32 to vector<2x1x8xf32>
    %44 = arith.subf %42, %43 : vector<2x1x8xf32>
    %cst_23 = arith.constant 1.000000e+09 : f32
    %45 = vector.broadcast %cst_23 : f32 to vector<2x1x8xf32>
    %46 = arith.mulf %44, %45 : vector<2x1x8xf32>
    %47 = tpu.concatenate %41, %41, %41, %41 in 0 : vector<2x8x8xf32>, vector<2x8x8xf32>, vector<2x8x8xf32>, vector<2x8x8xf32> -> vector<8x8x8xf32>
    %48 = tpu.concatenate %46, %46, %46, %46 in 0 : vector<2x1x8xf32>, vector<2x1x8xf32>, vector<2x1x8xf32>, vector<2x1x8xf32> -> vector<8x1x8xf32>
    %c0_24 = arith.constant 0 : index
    %c0_25 = arith.constant 0 : index
    %c0_26 = arith.constant 0 : index
    %c0_27 = arith.constant 0 : index
    %49 = vector.load %arg7[%c0_24, %c0_25, %c0_26, %c0_27] : memref<2x4x32x32xf32, #tpu.memory_space<vmem>>, vector<1x4x32x32xf32>
    %50 = vector.shape_cast %49 : vector<1x4x32x32xf32> to vector<4x32x32xf32>
    %c0_28 = arith.constant 0 : index
    %c0_29 = arith.constant 0 : index
    %c0_30 = arith.constant 0 : index
    %c0_31 = arith.constant 0 : index
    %51 = vector.load %arg8[%c0_28, %c0_29, %c0_30, %c0_31] : memref<2x4x32x32xf32, #tpu.memory_space<vmem>>, vector<1x4x32x32xf32>
    %52 = vector.shape_cast %51 : vector<1x4x32x32xf32> to vector<4x32x32xf32>
    %53 = vector.extract_strided_slice %50 {offsets = [0, 0, 0], sizes = [1, 32, 32], strides = [1, 1, 1]} : vector<4x32x32xf32> to vector<1x32x32xf32>
    %54 = vector.shape_cast %53 : vector<1x32x32xf32> to vector<32x32xf32>
    %55 = vector.extract_strided_slice %50 {offsets = [1, 0, 0], sizes = [1, 32, 32], strides = [1, 1, 1]} : vector<4x32x32xf32> to vector<1x32x32xf32>
    %56 = vector.shape_cast %55 : vector<1x32x32xf32> to vector<32x32xf32>
    %57 = vector.extract_strided_slice %50 {offsets = [2, 0, 0], sizes = [1, 32, 32], strides = [1, 1, 1]} : vector<4x32x32xf32> to vector<1x32x32xf32>
    %58 = vector.shape_cast %57 : vector<1x32x32xf32> to vector<32x32xf32>
    %59 = vector.extract_strided_slice %50 {offsets = [3, 0, 0], sizes = [1, 32, 32], strides = [1, 1, 1]} : vector<4x32x32xf32> to vector<1x32x32xf32>
    %60 = vector.shape_cast %59 : vector<1x32x32xf32> to vector<32x32xf32>
    %61 = vector.extract_strided_slice %11 {offsets = [2, 0], sizes = [1, 32], strides = [1, 1]} : vector<16x32xf32> to vector<1x32xf32>
    %62 = vector.extract_strided_slice %11 {offsets = [3, 0], sizes = [1, 32], strides = [1, 1]} : vector<16x32xf32> to vector<1x32xf32>
    %cst_32 = arith.constant dense<0.000000e+00> : vector<16x32xf32>
    %63 = tpu.matmul %35, %54, %cst_32 {dimension_numbers = #tpu.dot_dimension_numbers<[1], [0], [0], [1], [0, 0, 1, 1], [], []>} : vector<16x32xf32>, vector<32x32xf32>, vector<16x32xf32> -> vector<16x32xf32>
    %cst_33 = arith.constant dense<0.000000e+00> : vector<16x32xf32>
    %64 = tpu.matmul %35, %56, %cst_33 {dimension_numbers = #tpu.dot_dimension_numbers<[1], [0], [0], [1], [0, 0, 1, 1], [], []>} : vector<16x32xf32>, vector<32x32xf32>, vector<16x32xf32> -> vector<16x32xf32>
    %cst_34 = arith.constant dense<0.000000e+00> : vector<16x32xf32>
    %65 = tpu.matmul %35, %58, %cst_34 {dimension_numbers = #tpu.dot_dimension_numbers<[1], [0], [0], [1], [0, 0, 1, 1], [], []>} : vector<16x32xf32>, vector<32x32xf32>, vector<16x32xf32> -> vector<16x32xf32>
    %66 = vector.extract_strided_slice %63 {offsets = [0, 0], sizes = [16, 8], strides = [1, 1]} : vector<16x32xf32> to vector<16x8xf32>
    %67 = vector.shape_cast %66 : vector<16x8xf32> to vector<2x8x8xf32>
    %68 = vector.extract_strided_slice %63 {offsets = [0, 8], sizes = [16, 8], strides = [1, 1]} : vector<16x32xf32> to vector<16x8xf32>
    %69 = vector.shape_cast %68 : vector<16x8xf32> to vector<2x8x8xf32>
    %70 = vector.extract_strided_slice %63 {offsets = [0, 16], sizes = [16, 8], strides = [1, 1]} : vector<16x32xf32> to vector<16x8xf32>
    %71 = vector.shape_cast %70 : vector<16x8xf32> to vector<2x8x8xf32>
    %72 = vector.extract_strided_slice %63 {offsets = [0, 24], sizes = [16, 8], strides = [1, 1]} : vector<16x32xf32> to vector<16x8xf32>
    %73 = vector.shape_cast %72 : vector<16x8xf32> to vector<2x8x8xf32>
    %74 = tpu.concatenate %67, %69, %71, %73 in 0 : vector<2x8x8xf32>, vector<2x8x8xf32>, vector<2x8x8xf32>, vector<2x8x8xf32> -> vector<8x8x8xf32>
    %75 = vector.extract_strided_slice %64 {offsets = [0, 0], sizes = [16, 8], strides = [1, 1]} : vector<16x32xf32> to vector<16x8xf32>
    %76 = vector.shape_cast %75 : vector<16x8xf32> to vector<2x8x8xf32>
    %77 = vector.extract_strided_slice %64 {offsets = [0, 8], sizes = [16, 8], strides = [1, 1]} : vector<16x32xf32> to vector<16x8xf32>
    %78 = vector.shape_cast %77 : vector<16x8xf32> to vector<2x8x8xf32>
    %79 = vector.extract_strided_slice %64 {offsets = [0, 16], sizes = [16, 8], strides = [1, 1]} : vector<16x32xf32> to vector<16x8xf32>
    %80 = vector.shape_cast %79 : vector<16x8xf32> to vector<2x8x8xf32>
    %81 = vector.extract_strided_slice %64 {offsets = [0, 24], sizes = [16, 8], strides = [1, 1]} : vector<16x32xf32> to vector<16x8xf32>
    %82 = vector.shape_cast %81 : vector<16x8xf32> to vector<2x8x8xf32>
    %83 = tpu.concatenate %76, %78, %80, %82 in 0 : vector<2x8x8xf32>, vector<2x8x8xf32>, vector<2x8x8xf32>, vector<2x8x8xf32> -> vector<8x8x8xf32>
    %84 = vector.extract_strided_slice %65 {offsets = [0, 0], sizes = [16, 8], strides = [1, 1]} : vector<16x32xf32> to vector<16x8xf32>
    %85 = vector.shape_cast %84 : vector<16x8xf32> to vector<2x8x8xf32>
    %86 = vector.extract_strided_slice %65 {offsets = [0, 8], sizes = [16, 8], strides = [1, 1]} : vector<16x32xf32> to vector<16x8xf32>
    %87 = vector.shape_cast %86 : vector<16x8xf32> to vector<2x8x8xf32>
    %88 = vector.extract_strided_slice %65 {offsets = [0, 16], sizes = [16, 8], strides = [1, 1]} : vector<16x32xf32> to vector<16x8xf32>
    %89 = vector.shape_cast %88 : vector<16x8xf32> to vector<2x8x8xf32>
    %90 = vector.extract_strided_slice %65 {offsets = [0, 24], sizes = [16, 8], strides = [1, 1]} : vector<16x32xf32> to vector<16x8xf32>
    %91 = vector.shape_cast %90 : vector<16x8xf32> to vector<2x8x8xf32>
    %92 = tpu.concatenate %85, %87, %89, %91 in 0 : vector<2x8x8xf32>, vector<2x8x8xf32>, vector<2x8x8xf32>, vector<2x8x8xf32> -> vector<8x8x8xf32>
    "tpu.trace_start"() <{level = 10 : i32, message = "bqd,bkd->bqk"}> : () -> ()
    %cst_35 = arith.constant dense<0.000000e+00> : vector<8x8x8xf32>
    %93 = tpu.matmul %74, %83, %cst_35 {dimension_numbers = #tpu.dot_dimension_numbers<[2], [2], [1], [1], [0, 0, 0, 1, 1, 1], [0], [0]>} : vector<8x8x8xf32>, vector<8x8x8xf32>, vector<8x8x8xf32> -> vector<8x8x8xf32>
    "tpu.trace_stop"() : () -> ()
    %94 = arith.addf %93, %47 : vector<8x8x8xf32>
    %cst_36 = arith.constant dense<0xFF800000> : vector<8x8xf32>
    %95 = vector.multi_reduction <maximumf>, %94, %cst_36 [2] : vector<8x8x8xf32> to vector<8x8xf32>
    %96 = vector.shape_cast %95 : vector<8x8xf32> to vector<8x8x1xf32>
    %97 = vector.broadcast %96 : vector<8x8x1xf32> to vector<8x8x8xf32>
    %98 = arith.subf %94, %97 : vector<8x8x8xf32>
    %99 = math.exp %98 : vector<8x8x8xf32>
    %cst_37 = arith.constant dense<0.000000e+00> : vector<8x8xf32>
    %100 = vector.multi_reduction <add>, %99, %cst_37 [2] : vector<8x8x8xf32> to vector<8x8xf32>
    %101 = vector.shape_cast %100 : vector<8x8xf32> to vector<8x8x1xf32>
    %102 = tpu.reciprocal %101 {approx = true} : vector<8x8x1xf32> -> vector<8x8x1xf32>
    %103 = vector.broadcast %102 : vector<8x8x1xf32> to vector<8x8x8xf32>
    %104 = arith.mulf %99, %103 : vector<8x8x8xf32>
    "tpu.trace_start"() <{level = 10 : i32, message = "bqk,bkd->bqd"}> : () -> ()
    %cst_38 = arith.constant dense<0.000000e+00> : vector<8x8x8xf32>
    %105 = tpu.matmul %104, %92, %cst_38 {dimension_numbers = #tpu.dot_dimension_numbers<[2], [1], [1], [2], [0, 0, 0, 1, 1, 2], [0], [0]>} : vector<8x8x8xf32>, vector<8x8x8xf32>, vector<8x8x8xf32> -> vector<8x8x8xf32>
    "tpu.trace_stop"() : () -> ()
    %106 = vector.shape_cast %105 : vector<8x8x8xf32> to vector<4x16x8xf32>
    %107 = vector.extract_strided_slice %106 {offsets = [0, 0, 0], sizes = [1, 16, 8], strides = [1, 1, 1]} : vector<4x16x8xf32> to vector<1x16x8xf32>
    %108 = vector.shape_cast %107 : vector<1x16x8xf32> to vector<16x8xf32>
    %109 = vector.extract_strided_slice %106 {offsets = [1, 0, 0], sizes = [1, 16, 8], strides = [1, 1, 1]} : vector<4x16x8xf32> to vector<1x16x8xf32>
    %110 = vector.shape_cast %109 : vector<1x16x8xf32> to vector<16x8xf32>
    %111 = vector.extract_strided_slice %106 {offsets = [2, 0, 0], sizes = [1, 16, 8], strides = [1, 1, 1]} : vector<4x16x8xf32> to vector<1x16x8xf32>
    %112 = vector.shape_cast %111 : vector<1x16x8xf32> to vector<16x8xf32>
    %113 = vector.extract_strided_slice %106 {offsets = [3, 0, 0], sizes = [1, 16, 8], strides = [1, 1, 1]} : vector<4x16x8xf32> to vector<1x16x8xf32>
    %114 = vector.shape_cast %113 : vector<1x16x8xf32> to vector<16x8xf32>
    %115 = tpu.concatenate %108, %110, %112, %114 in 1 : vector<16x8xf32>, vector<16x8xf32>, vector<16x8xf32>, vector<16x8xf32> -> vector<16x32xf32>
    %cst_39 = arith.constant dense<0.000000e+00> : vector<16x32xf32>
    %116 = tpu.matmul %115, %60, %cst_39 {dimension_numbers = #tpu.dot_dimension_numbers<[1], [0], [0], [1], [0, 0, 1, 1], [], []>} : vector<16x32xf32>, vector<32x32xf32>, vector<16x32xf32> -> vector<16x32xf32>
    %117 = arith.addf %116, %35 : vector<16x32xf32>
    %cst_40 = arith.constant dense<0.000000e+00> : vector<16xf32>
    %118 = vector.multi_reduction <add>, %117, %cst_40 [1] : vector<16x32xf32> to vector<16xf32>
    %119 = vector.shape_cast %118 : vector<16xf32> to vector<16x1xf32>
    %cst_41 = arith.constant 3.200000e+01 : f32
    %120 = vector.broadcast %cst_41 : f32 to vector<16x1xf32>
    %121 = arith.divf %119, %120 : vector<16x1xf32>
    %122 = vector.broadcast %121 : vector<16x1xf32> to vector<16x32xf32>
    %123 = arith.subf %117, %122 : vector<16x32xf32>
    %124 = arith.mulf %123, %123 : vector<16x32xf32>
    %cst_42 = arith.constant dense<0.000000e+00> : vector<16xf32>
    %125 = vector.multi_reduction <add>, %124, %cst_42 [1] : vector<16x32xf32> to vector<16xf32>
    %126 = vector.shape_cast %125 : vector<16xf32> to vector<16x1xf32>
    %cst_43 = arith.constant 3.200000e+01 : f32
    %127 = vector.broadcast %cst_43 : f32 to vector<16x1xf32>
    %128 = arith.divf %126, %127 : vector<16x1xf32>
    %129 = vector.broadcast %121 : vector<16x1xf32> to vector<16x32xf32>
    %130 = arith.subf %117, %129 : vector<16x32xf32>
    %cst_44 = arith.constant 9.99999997E-7 : f32
    %131 = vector.broadcast %cst_44 : f32 to vector<16x1xf32>
    %132 = arith.addf %128, %131 : vector<16x1xf32>
    %133 = math.rsqrt %132 : vector<16x1xf32>
    %134 = vector.broadcast %133 : vector<16x1xf32> to vector<16x32xf32>
    %135 = arith.mulf %130, %134 : vector<16x32xf32>
    %136 = vector.broadcast %61 : vector<1x32xf32> to vector<16x32xf32>
    %137 = arith.mulf %135, %136 : vector<16x32xf32>
    %138 = vector.broadcast %62 : vector<1x32xf32> to vector<16x32xf32>
    %139 = arith.addf %137, %138 : vector<16x32xf32>
    %140 = vector.extract_strided_slice %52 {offsets = [0, 0, 0], sizes = [1, 32, 32], strides = [1, 1, 1]} : vector<4x32x32xf32> to vector<1x32x32xf32>
    %141 = vector.shape_cast %140 : vector<1x32x32xf32> to vector<32x32xf32>
    %142 = vector.extract_strided_slice %52 {offsets = [1, 0, 0], sizes = [1, 32, 32], strides = [1, 1, 1]} : vector<4x32x32xf32> to vector<1x32x32xf32>
    %143 = vector.shape_cast %142 : vector<1x32x32xf32> to vector<32x32xf32>
    %144 = vector.extract_strided_slice %52 {offsets = [2, 0, 0], sizes = [1, 32, 32], strides = [1, 1, 1]} : vector<4x32x32xf32> to vector<1x32x32xf32>
    %145 = vector.shape_cast %144 : vector<1x32x32xf32> to vector<32x32xf32>
    %146 = vector.extract_strided_slice %52 {offsets = [3, 0, 0], sizes = [1, 32, 32], strides = [1, 1, 1]} : vector<4x32x32xf32> to vector<1x32x32xf32>
    %147 = vector.shape_cast %146 : vector<1x32x32xf32> to vector<32x32xf32>
    %148 = vector.extract_strided_slice %11 {offsets = [4, 0], sizes = [1, 32], strides = [1, 1]} : vector<16x32xf32> to vector<1x32xf32>
    %149 = vector.extract_strided_slice %11 {offsets = [5, 0], sizes = [1, 32], strides = [1, 1]} : vector<16x32xf32> to vector<1x32xf32>
    %cst_45 = arith.constant dense<0.000000e+00> : vector<16x32xf32>
    %150 = tpu.matmul %139, %141, %cst_45 {dimension_numbers = #tpu.dot_dimension_numbers<[1], [0], [0], [1], [0, 0, 1, 1], [], []>} : vector<16x32xf32>, vector<32x32xf32>, vector<16x32xf32> -> vector<16x32xf32>
    %cst_46 = arith.constant dense<0.000000e+00> : vector<16x32xf32>
    %151 = tpu.matmul %36, %143, %cst_46 {dimension_numbers = #tpu.dot_dimension_numbers<[1], [0], [0], [1], [0, 0, 1, 1], [], []>} : vector<16x32xf32>, vector<32x32xf32>, vector<16x32xf32> -> vector<16x32xf32>
    %cst_47 = arith.constant dense<0.000000e+00> : vector<16x32xf32>
    %152 = tpu.matmul %36, %145, %cst_47 {dimension_numbers = #tpu.dot_dimension_numbers<[1], [0], [0], [1], [0, 0, 1, 1], [], []>} : vector<16x32xf32>, vector<32x32xf32>, vector<16x32xf32> -> vector<16x32xf32>
    %153 = vector.extract_strided_slice %150 {offsets = [0, 0], sizes = [16, 8], strides = [1, 1]} : vector<16x32xf32> to vector<16x8xf32>
    %154 = vector.shape_cast %153 : vector<16x8xf32> to vector<2x8x8xf32>
    %155 = vector.extract_strided_slice %150 {offsets = [0, 8], sizes = [16, 8], strides = [1, 1]} : vector<16x32xf32> to vector<16x8xf32>
    %156 = vector.shape_cast %155 : vector<16x8xf32> to vector<2x8x8xf32>
    %157 = vector.extract_strided_slice %150 {offsets = [0, 16], sizes = [16, 8], strides = [1, 1]} : vector<16x32xf32> to vector<16x8xf32>
    %158 = vector.shape_cast %157 : vector<16x8xf32> to vector<2x8x8xf32>
    %159 = vector.extract_strided_slice %150 {offsets = [0, 24], sizes = [16, 8], strides = [1, 1]} : vector<16x32xf32> to vector<16x8xf32>
    %160 = vector.shape_cast %159 : vector<16x8xf32> to vector<2x8x8xf32>
    %161 = tpu.concatenate %154, %156, %158, %160 in 0 : vector<2x8x8xf32>, vector<2x8x8xf32>, vector<2x8x8xf32>, vector<2x8x8xf32> -> vector<8x8x8xf32>
    %162 = vector.extract_strided_slice %151 {offsets = [0, 0], sizes = [16, 8], strides = [1, 1]} : vector<16x32xf32> to vector<16x8xf32>
    %163 = vector.shape_cast %162 : vector<16x8xf32> to vector<2x8x8xf32>
    %164 = vector.extract_strided_slice %151 {offsets = [0, 8], sizes = [16, 8], strides = [1, 1]} : vector<16x32xf32> to vector<16x8xf32>
    %165 = vector.shape_cast %164 : vector<16x8xf32> to vector<2x8x8xf32>
    %166 = vector.extract_strided_slice %151 {offsets = [0, 16], sizes = [16, 8], strides = [1, 1]} : vector<16x32xf32> to vector<16x8xf32>
    %167 = vector.shape_cast %166 : vector<16x8xf32> to vector<2x8x8xf32>
    %168 = vector.extract_strided_slice %151 {offsets = [0, 24], sizes = [16, 8], strides = [1, 1]} : vector<16x32xf32> to vector<16x8xf32>
    %169 = vector.shape_cast %168 : vector<16x8xf32> to vector<2x8x8xf32>
    %170 = tpu.concatenate %163, %165, %167, %169 in 0 : vector<2x8x8xf32>, vector<2x8x8xf32>, vector<2x8x8xf32>, vector<2x8x8xf32> -> vector<8x8x8xf32>
    %171 = vector.extract_strided_slice %152 {offsets = [0, 0], sizes = [16, 8], strides = [1, 1]} : vector<16x32xf32> to vector<16x8xf32>
    %172 = vector.shape_cast %171 : vector<16x8xf32> to vector<2x8x8xf32>
    %173 = vector.extract_strided_slice %152 {offsets = [0, 8], sizes = [16, 8], strides = [1, 1]} : vector<16x32xf32> to vector<16x8xf32>
    %174 = vector.shape_cast %173 : vector<16x8xf32> to vector<2x8x8xf32>
    %175 = vector.extract_strided_slice %152 {offsets = [0, 16], sizes = [16, 8], strides = [1, 1]} : vector<16x32xf32> to vector<16x8xf32>
    %176 = vector.shape_cast %175 : vector<16x8xf32> to vector<2x8x8xf32>
    %177 = vector.extract_strided_slice %152 {offsets = [0, 24], sizes = [16, 8], strides = [1, 1]} : vector<16x32xf32> to vector<16x8xf32>
    %178 = vector.shape_cast %177 : vector<16x8xf32> to vector<2x8x8xf32>
    %179 = tpu.concatenate %172, %174, %176, %178 in 0 : vector<2x8x8xf32>, vector<2x8x8xf32>, vector<2x8x8xf32>, vector<2x8x8xf32> -> vector<8x8x8xf32>
    "tpu.trace_start"() <{level = 10 : i32, message = "bqd,bkd->bqk"}> : () -> ()
    %cst_48 = arith.constant dense<0.000000e+00> : vector<8x8x8xf32>
    %180 = tpu.matmul %161, %170, %cst_48 {dimension_numbers = #tpu.dot_dimension_numbers<[2], [2], [1], [1], [0, 0, 0, 1, 1, 1], [0], [0]>} : vector<8x8x8xf32>, vector<8x8x8xf32>, vector<8x8x8xf32> -> vector<8x8x8xf32>
    "tpu.trace_stop"() : () -> ()
    %181 = vector.broadcast %48 : vector<8x1x8xf32> to vector<8x8x8xf32>
    %182 = arith.addf %180, %181 : vector<8x8x8xf32>
    %cst_49 = arith.constant dense<0xFF800000> : vector<8x8xf32>
    %183 = vector.multi_reduction <maximumf>, %182, %cst_49 [2] : vector<8x8x8xf32> to vector<8x8xf32>
    %184 = vector.shape_cast %183 : vector<8x8xf32> to vector<8x8x1xf32>
    %185 = vector.broadcast %184 : vector<8x8x1xf32> to vector<8x8x8xf32>
    %186 = arith.subf %182, %185 : vector<8x8x8xf32>
    %187 = math.exp %186 : vector<8x8x8xf32>
    %cst_50 = arith.constant dense<0.000000e+00> : vector<8x8xf32>
    %188 = vector.multi_reduction <add>, %187, %cst_50 [2] : vector<8x8x8xf32> to vector<8x8xf32>
    %189 = vector.shape_cast %188 : vector<8x8xf32> to vector<8x8x1xf32>
    %190 = tpu.reciprocal %189 {approx = true} : vector<8x8x1xf32> -> vector<8x8x1xf32>
    %191 = vector.broadcast %190 : vector<8x8x1xf32> to vector<8x8x8xf32>
    %192 = arith.mulf %187, %191 : vector<8x8x8xf32>
    "tpu.trace_start"() <{level = 10 : i32, message = "bqk,bkd->bqd"}> : () -> ()
    %cst_51 = arith.constant dense<0.000000e+00> : vector<8x8x8xf32>
    %193 = tpu.matmul %192, %179, %cst_51 {dimension_numbers = #tpu.dot_dimension_numbers<[2], [1], [1], [2], [0, 0, 0, 1, 1, 2], [0], [0]>} : vector<8x8x8xf32>, vector<8x8x8xf32>, vector<8x8x8xf32> -> vector<8x8x8xf32>
    "tpu.trace_stop"() : () -> ()
    %194 = vector.shape_cast %193 : vector<8x8x8xf32> to vector<4x16x8xf32>
    %195 = vector.extract_strided_slice %194 {offsets = [0, 0, 0], sizes = [1, 16, 8], strides = [1, 1, 1]} : vector<4x16x8xf32> to vector<1x16x8xf32>
    %196 = vector.shape_cast %195 : vector<1x16x8xf32> to vector<16x8xf32>
    %197 = vector.extract_strided_slice %194 {offsets = [1, 0, 0], sizes = [1, 16, 8], strides = [1, 1, 1]} : vector<4x16x8xf32> to vector<1x16x8xf32>
    %198 = vector.shape_cast %197 : vector<1x16x8xf32> to vector<16x8xf32>
    %199 = vector.extract_strided_slice %194 {offsets = [2, 0, 0], sizes = [1, 16, 8], strides = [1, 1, 1]} : vector<4x16x8xf32> to vector<1x16x8xf32>
    %200 = vector.shape_cast %199 : vector<1x16x8xf32> to vector<16x8xf32>
    %201 = vector.extract_strided_slice %194 {offsets = [3, 0, 0], sizes = [1, 16, 8], strides = [1, 1, 1]} : vector<4x16x8xf32> to vector<1x16x8xf32>
    %202 = vector.shape_cast %201 : vector<1x16x8xf32> to vector<16x8xf32>
    %203 = tpu.concatenate %196, %198, %200, %202 in 1 : vector<16x8xf32>, vector<16x8xf32>, vector<16x8xf32>, vector<16x8xf32> -> vector<16x32xf32>
    %cst_52 = arith.constant dense<0.000000e+00> : vector<16x32xf32>
    %204 = tpu.matmul %203, %147, %cst_52 {dimension_numbers = #tpu.dot_dimension_numbers<[1], [0], [0], [1], [0, 0, 1, 1], [], []>} : vector<16x32xf32>, vector<32x32xf32>, vector<16x32xf32> -> vector<16x32xf32>
    %205 = arith.addf %204, %139 : vector<16x32xf32>
    %cst_53 = arith.constant dense<0.000000e+00> : vector<16xf32>
    %206 = vector.multi_reduction <add>, %205, %cst_53 [1] : vector<16x32xf32> to vector<16xf32>
    %207 = vector.shape_cast %206 : vector<16xf32> to vector<16x1xf32>
    %cst_54 = arith.constant 3.200000e+01 : f32
    %208 = vector.broadcast %cst_54 : f32 to vector<16x1xf32>
    %209 = arith.divf %207, %208 : vector<16x1xf32>
    %210 = vector.broadcast %209 : vector<16x1xf32> to vector<16x32xf32>
    %211 = arith.subf %205, %210 : vector<16x32xf32>
    %212 = arith.mulf %211, %211 : vector<16x32xf32>
    %cst_55 = arith.constant dense<0.000000e+00> : vector<16xf32>
    %213 = vector.multi_reduction <add>, %212, %cst_55 [1] : vector<16x32xf32> to vector<16xf32>
    %214 = vector.shape_cast %213 : vector<16xf32> to vector<16x1xf32>
    %cst_56 = arith.constant 3.200000e+01 : f32
    %215 = vector.broadcast %cst_56 : f32 to vector<16x1xf32>
    %216 = arith.divf %214, %215 : vector<16x1xf32>
    %217 = vector.broadcast %209 : vector<16x1xf32> to vector<16x32xf32>
    %218 = arith.subf %205, %217 : vector<16x32xf32>
    %cst_57 = arith.constant 9.99999997E-7 : f32
    %219 = vector.broadcast %cst_57 : f32 to vector<16x1xf32>
    %220 = arith.addf %216, %219 : vector<16x1xf32>
    %221 = math.rsqrt %220 : vector<16x1xf32>
    %222 = vector.broadcast %221 : vector<16x1xf32> to vector<16x32xf32>
    %223 = arith.mulf %218, %222 : vector<16x32xf32>
    %224 = vector.broadcast %148 : vector<1x32xf32> to vector<16x32xf32>
    %225 = arith.mulf %223, %224 : vector<16x32xf32>
    %226 = vector.broadcast %149 : vector<1x32xf32> to vector<16x32xf32>
    %227 = arith.addf %225, %226 : vector<16x32xf32>
    %c0_58 = arith.constant 0 : index
    %c0_59 = arith.constant 0 : index
    %c0_60 = arith.constant 0 : index
    %228 = vector.load %arg9[%c0_58, %c0_59, %c0_60] : memref<2x32x64xf32, #tpu.memory_space<vmem>>, vector<1x32x64xf32>
    %229 = vector.shape_cast %228 : vector<1x32x64xf32> to vector<32x64xf32>
    %c0_61 = arith.constant 0 : index
    %c0_62 = arith.constant 0 : index
    %c0_63 = arith.constant 0 : index
    %230 = vector.load %arg11[%c0_61, %c0_62, %c0_63] : memref<2x1x64xf32, #tpu.memory_space<vmem>>, vector<1x1x64xf32>
    %231 = vector.shape_cast %230 : vector<1x1x64xf32> to vector<1x64xf32>
    %c0_64 = arith.constant 0 : index
    %c0_65 = arith.constant 0 : index
    %c0_66 = arith.constant 0 : index
    %232 = vector.load %arg10[%c0_64, %c0_65, %c0_66] : memref<2x64x32xf32, #tpu.memory_space<vmem>>, vector<1x64x32xf32>
    %233 = vector.shape_cast %232 : vector<1x64x32xf32> to vector<64x32xf32>
    %234 = vector.extract_strided_slice %11 {offsets = [8, 0], sizes = [1, 32], strides = [1, 1]} : vector<16x32xf32> to vector<1x32xf32>
    %235 = vector.extract_strided_slice %11 {offsets = [6, 0], sizes = [1, 32], strides = [1, 1]} : vector<16x32xf32> to vector<1x32xf32>
    %236 = vector.extract_strided_slice %11 {offsets = [7, 0], sizes = [1, 32], strides = [1, 1]} : vector<16x32xf32> to vector<1x32xf32>
    %cst_67 = arith.constant dense<0.000000e+00> : vector<16x64xf32>
    %237 = tpu.matmul %227, %229, %cst_67 {dimension_numbers = #tpu.dot_dimension_numbers<[1], [0], [0], [1], [0, 0, 1, 1], [], []>} : vector<16x32xf32>, vector<32x64xf32>, vector<16x64xf32> -> vector<16x64xf32>
    %238 = vector.broadcast %231 : vector<1x64xf32> to vector<16x64xf32>
    %239 = arith.addf %237, %238 : vector<16x64xf32>
    %cst_68 = arith.constant 0.000000e+00 : f32
    %240 = vector.broadcast %cst_68 : f32 to vector<16x64xf32>
    %241 = arith.maximumf %239, %240 : vector<16x64xf32>
    %cst_69 = arith.constant dense<0.000000e+00> : vector<16x32xf32>
    %242 = tpu.matmul %241, %233, %cst_69 {dimension_numbers = #tpu.dot_dimension_numbers<[1], [0], [0], [1], [0, 0, 1, 1], [], []>} : vector<16x64xf32>, vector<64x32xf32>, vector<16x32xf32> -> vector<16x32xf32>
    %243 = vector.broadcast %234 : vector<1x32xf32> to vector<16x32xf32>
    %244 = arith.addf %242, %243 : vector<16x32xf32>
    %245 = arith.addf %244, %227 : vector<16x32xf32>
    %cst_70 = arith.constant dense<0.000000e+00> : vector<16xf32>
    %246 = vector.multi_reduction <add>, %245, %cst_70 [1] : vector<16x32xf32> to vector<16xf32>
    %247 = vector.shape_cast %246 : vector<16xf32> to vector<16x1xf32>
    %cst_71 = arith.constant 3.200000e+01 : f32
    %248 = vector.broadcast %cst_71 : f32 to vector<16x1xf32>
    %249 = arith.divf %247, %248 : vector<16x1xf32>
    %250 = vector.broadcast %249 : vector<16x1xf32> to vector<16x32xf32>
    %251 = arith.subf %245, %250 : vector<16x32xf32>
    %252 = arith.mulf %251, %251 : vector<16x32xf32>
    %cst_72 = arith.constant dense<0.000000e+00> : vector<16xf32>
    %253 = vector.multi_reduction <add>, %252, %cst_72 [1] : vector<16x32xf32> to vector<16xf32>
    %254 = vector.shape_cast %253 : vector<16xf32> to vector<16x1xf32>
    %cst_73 = arith.constant 3.200000e+01 : f32
    %255 = vector.broadcast %cst_73 : f32 to vector<16x1xf32>
    %256 = arith.divf %254, %255 : vector<16x1xf32>
    %257 = vector.broadcast %249 : vector<16x1xf32> to vector<16x32xf32>
    %258 = arith.subf %245, %257 : vector<16x32xf32>
    %cst_74 = arith.constant 9.99999997E-7 : f32
    %259 = vector.broadcast %cst_74 : f32 to vector<16x1xf32>
    %260 = arith.addf %256, %259 : vector<16x1xf32>
    %261 = math.rsqrt %260 : vector<16x1xf32>
    %262 = vector.broadcast %261 : vector<16x1xf32> to vector<16x32xf32>
    %263 = arith.mulf %258, %262 : vector<16x32xf32>
    %264 = vector.broadcast %235 : vector<1x32xf32> to vector<16x32xf32>
    %265 = arith.mulf %263, %264 : vector<16x32xf32>
    %266 = vector.broadcast %236 : vector<1x32xf32> to vector<16x32xf32>
    %267 = arith.addf %265, %266 : vector<16x32xf32>
    %c1 = arith.constant 1 : index
    %c0_75 = arith.constant 0 : index
    %c0_76 = arith.constant 0 : index
    %c0_77 = arith.constant 0 : index
    %268 = vector.load %arg7[%c1, %c0_75, %c0_76, %c0_77] : memref<2x4x32x32xf32, #tpu.memory_space<vmem>>, vector<1x4x32x32xf32>
    %269 = vector.shape_cast %268 : vector<1x4x32x32xf32> to vector<4x32x32xf32>
    %c1_78 = arith.constant 1 : index
    %c0_79 = arith.constant 0 : index
    %c0_80 = arith.constant 0 : index
    %c0_81 = arith.constant 0 : index
    %270 = vector.load %arg8[%c1_78, %c0_79, %c0_80, %c0_81] : memref<2x4x32x32xf32, #tpu.memory_space<vmem>>, vector<1x4x32x32xf32>
    %271 = vector.shape_cast %270 : vector<1x4x32x32xf32> to vector<4x32x32xf32>
    %272 = vector.extract_strided_slice %269 {offsets = [0, 0, 0], sizes = [1, 32, 32], strides = [1, 1, 1]} : vector<4x32x32xf32> to vector<1x32x32xf32>
    %273 = vector.shape_cast %272 : vector<1x32x32xf32> to vector<32x32xf32>
    %274 = vector.extract_strided_slice %269 {offsets = [1, 0, 0], sizes = [1, 32, 32], strides = [1, 1, 1]} : vector<4x32x32xf32> to vector<1x32x32xf32>
    %275 = vector.shape_cast %274 : vector<1x32x32xf32> to vector<32x32xf32>
    %276 = vector.extract_strided_slice %269 {offsets = [2, 0, 0], sizes = [1, 32, 32], strides = [1, 1, 1]} : vector<4x32x32xf32> to vector<1x32x32xf32>
    %277 = vector.shape_cast %276 : vector<1x32x32xf32> to vector<32x32xf32>
    %278 = vector.extract_strided_slice %269 {offsets = [3, 0, 0], sizes = [1, 32, 32], strides = [1, 1, 1]} : vector<4x32x32xf32> to vector<1x32x32xf32>
    %279 = vector.shape_cast %278 : vector<1x32x32xf32> to vector<32x32xf32>
    %280 = vector.extract_strided_slice %11 {offsets = [9, 0], sizes = [1, 32], strides = [1, 1]} : vector<16x32xf32> to vector<1x32xf32>
    %281 = vector.extract_strided_slice %11 {offsets = [10, 0], sizes = [1, 32], strides = [1, 1]} : vector<16x32xf32> to vector<1x32xf32>
    %cst_82 = arith.constant dense<0.000000e+00> : vector<16x32xf32>
    %282 = tpu.matmul %267, %273, %cst_82 {dimension_numbers = #tpu.dot_dimension_numbers<[1], [0], [0], [1], [0, 0, 1, 1], [], []>} : vector<16x32xf32>, vector<32x32xf32>, vector<16x32xf32> -> vector<16x32xf32>
    %cst_83 = arith.constant dense<0.000000e+00> : vector<16x32xf32>
    %283 = tpu.matmul %267, %275, %cst_83 {dimension_numbers = #tpu.dot_dimension_numbers<[1], [0], [0], [1], [0, 0, 1, 1], [], []>} : vector<16x32xf32>, vector<32x32xf32>, vector<16x32xf32> -> vector<16x32xf32>
    %cst_84 = arith.constant dense<0.000000e+00> : vector<16x32xf32>
    %284 = tpu.matmul %267, %277, %cst_84 {dimension_numbers = #tpu.dot_dimension_numbers<[1], [0], [0], [1], [0, 0, 1, 1], [], []>} : vector<16x32xf32>, vector<32x32xf32>, vector<16x32xf32> -> vector<16x32xf32>
    %285 = vector.extract_strided_slice %282 {offsets = [0, 0], sizes = [16, 8], strides = [1, 1]} : vector<16x32xf32> to vector<16x8xf32>
    %286 = vector.shape_cast %285 : vector<16x8xf32> to vector<2x8x8xf32>
    %287 = vector.extract_strided_slice %282 {offsets = [0, 8], sizes = [16, 8], strides = [1, 1]} : vector<16x32xf32> to vector<16x8xf32>
    %288 = vector.shape_cast %287 : vector<16x8xf32> to vector<2x8x8xf32>
    %289 = vector.extract_strided_slice %282 {offsets = [0, 16], sizes = [16, 8], strides = [1, 1]} : vector<16x32xf32> to vector<16x8xf32>
    %290 = vector.shape_cast %289 : vector<16x8xf32> to vector<2x8x8xf32>
    %291 = vector.extract_strided_slice %282 {offsets = [0, 24], sizes = [16, 8], strides = [1, 1]} : vector<16x32xf32> to vector<16x8xf32>
    %292 = vector.shape_cast %291 : vector<16x8xf32> to vector<2x8x8xf32>
    %293 = tpu.concatenate %286, %288, %290, %292 in 0 : vector<2x8x8xf32>, vector<2x8x8xf32>, vector<2x8x8xf32>, vector<2x8x8xf32> -> vector<8x8x8xf32>
    %294 = vector.extract_strided_slice %283 {offsets = [0, 0], sizes = [16, 8], strides = [1, 1]} : vector<16x32xf32> to vector<16x8xf32>
    %295 = vector.shape_cast %294 : vector<16x8xf32> to vector<2x8x8xf32>
    %296 = vector.extract_strided_slice %283 {offsets = [0, 8], sizes = [16, 8], strides = [1, 1]} : vector<16x32xf32> to vector<16x8xf32>
    %297 = vector.shape_cast %296 : vector<16x8xf32> to vector<2x8x8xf32>
    %298 = vector.extract_strided_slice %283 {offsets = [0, 16], sizes = [16, 8], strides = [1, 1]} : vector<16x32xf32> to vector<16x8xf32>
    %299 = vector.shape_cast %298 : vector<16x8xf32> to vector<2x8x8xf32>
    %300 = vector.extract_strided_slice %283 {offsets = [0, 24], sizes = [16, 8], strides = [1, 1]} : vector<16x32xf32> to vector<16x8xf32>
    %301 = vector.shape_cast %300 : vector<16x8xf32> to vector<2x8x8xf32>
    %302 = tpu.concatenate %295, %297, %299, %301 in 0 : vector<2x8x8xf32>, vector<2x8x8xf32>, vector<2x8x8xf32>, vector<2x8x8xf32> -> vector<8x8x8xf32>
    %303 = vector.extract_strided_slice %284 {offsets = [0, 0], sizes = [16, 8], strides = [1, 1]} : vector<16x32xf32> to vector<16x8xf32>
    %304 = vector.shape_cast %303 : vector<16x8xf32> to vector<2x8x8xf32>
    %305 = vector.extract_strided_slice %284 {offsets = [0, 8], sizes = [16, 8], strides = [1, 1]} : vector<16x32xf32> to vector<16x8xf32>
    %306 = vector.shape_cast %305 : vector<16x8xf32> to vector<2x8x8xf32>
    %307 = vector.extract_strided_slice %284 {offsets = [0, 16], sizes = [16, 8], strides = [1, 1]} : vector<16x32xf32> to vector<16x8xf32>
    %308 = vector.shape_cast %307 : vector<16x8xf32> to vector<2x8x8xf32>
    %309 = vector.extract_strided_slice %284 {offsets = [0, 24], sizes = [16, 8], strides = [1, 1]} : vector<16x32xf32> to vector<16x8xf32>
    %310 = vector.shape_cast %309 : vector<16x8xf32> to vector<2x8x8xf32>
    %311 = tpu.concatenate %304, %306, %308, %310 in 0 : vector<2x8x8xf32>, vector<2x8x8xf32>, vector<2x8x8xf32>, vector<2x8x8xf32> -> vector<8x8x8xf32>
    "tpu.trace_start"() <{level = 10 : i32, message = "bqd,bkd->bqk"}> : () -> ()
    %cst_85 = arith.constant dense<0.000000e+00> : vector<8x8x8xf32>
    %312 = tpu.matmul %293, %302, %cst_85 {dimension_numbers = #tpu.dot_dimension_numbers<[2], [2], [1], [1], [0, 0, 0, 1, 1, 1], [0], [0]>} : vector<8x8x8xf32>, vector<8x8x8xf32>, vector<8x8x8xf32> -> vector<8x8x8xf32>
    "tpu.trace_stop"() : () -> ()
    %313 = arith.addf %312, %47 : vector<8x8x8xf32>
    %cst_86 = arith.constant dense<0xFF800000> : vector<8x8xf32>
    %314 = vector.multi_reduction <maximumf>, %313, %cst_86 [2] : vector<8x8x8xf32> to vector<8x8xf32>
    %315 = vector.shape_cast %314 : vector<8x8xf32> to vector<8x8x1xf32>
    %316 = vector.broadcast %315 : vector<8x8x1xf32> to vector<8x8x8xf32>
    %317 = arith.subf %313, %316 : vector<8x8x8xf32>
    %318 = math.exp %317 : vector<8x8x8xf32>
    %cst_87 = arith.constant dense<0.000000e+00> : vector<8x8xf32>
    %319 = vector.multi_reduction <add>, %318, %cst_87 [2] : vector<8x8x8xf32> to vector<8x8xf32>
    %320 = vector.shape_cast %319 : vector<8x8xf32> to vector<8x8x1xf32>
    %321 = tpu.reciprocal %320 {approx = true} : vector<8x8x1xf32> -> vector<8x8x1xf32>
    %322 = vector.broadcast %321 : vector<8x8x1xf32> to vector<8x8x8xf32>
    %323 = arith.mulf %318, %322 : vector<8x8x8xf32>
    "tpu.trace_start"() <{level = 10 : i32, message = "bqk,bkd->bqd"}> : () -> ()
    %cst_88 = arith.constant dense<0.000000e+00> : vector<8x8x8xf32>
    %324 = tpu.matmul %323, %311, %cst_88 {dimension_numbers = #tpu.dot_dimension_numbers<[2], [1], [1], [2], [0, 0, 0, 1, 1, 2], [0], [0]>} : vector<8x8x8xf32>, vector<8x8x8xf32>, vector<8x8x8xf32> -> vector<8x8x8xf32>
    "tpu.trace_stop"() : () -> ()
    %325 = vector.shape_cast %324 : vector<8x8x8xf32> to vector<4x16x8xf32>
    %326 = vector.extract_strided_slice %325 {offsets = [0, 0, 0], sizes = [1, 16, 8], strides = [1, 1, 1]} : vector<4x16x8xf32> to vector<1x16x8xf32>
    %327 = vector.shape_cast %326 : vector<1x16x8xf32> to vector<16x8xf32>
    %328 = vector.extract_strided_slice %325 {offsets = [1, 0, 0], sizes = [1, 16, 8], strides = [1, 1, 1]} : vector<4x16x8xf32> to vector<1x16x8xf32>
    %329 = vector.shape_cast %328 : vector<1x16x8xf32> to vector<16x8xf32>
    %330 = vector.extract_strided_slice %325 {offsets = [2, 0, 0], sizes = [1, 16, 8], strides = [1, 1, 1]} : vector<4x16x8xf32> to vector<1x16x8xf32>
    %331 = vector.shape_cast %330 : vector<1x16x8xf32> to vector<16x8xf32>
    %332 = vector.extract_strided_slice %325 {offsets = [3, 0, 0], sizes = [1, 16, 8], strides = [1, 1, 1]} : vector<4x16x8xf32> to vector<1x16x8xf32>
    %333 = vector.shape_cast %332 : vector<1x16x8xf32> to vector<16x8xf32>
    %334 = tpu.concatenate %327, %329, %331, %333 in 1 : vector<16x8xf32>, vector<16x8xf32>, vector<16x8xf32>, vector<16x8xf32> -> vector<16x32xf32>
    %cst_89 = arith.constant dense<0.000000e+00> : vector<16x32xf32>
    %335 = tpu.matmul %334, %279, %cst_89 {dimension_numbers = #tpu.dot_dimension_numbers<[1], [0], [0], [1], [0, 0, 1, 1], [], []>} : vector<16x32xf32>, vector<32x32xf32>, vector<16x32xf32> -> vector<16x32xf32>
    %336 = arith.addf %335, %267 : vector<16x32xf32>
    %cst_90 = arith.constant dense<0.000000e+00> : vector<16xf32>
    %337 = vector.multi_reduction <add>, %336, %cst_90 [1] : vector<16x32xf32> to vector<16xf32>
    %338 = vector.shape_cast %337 : vector<16xf32> to vector<16x1xf32>
    %cst_91 = arith.constant 3.200000e+01 : f32
    %339 = vector.broadcast %cst_91 : f32 to vector<16x1xf32>
    %340 = arith.divf %338, %339 : vector<16x1xf32>
    %341 = vector.broadcast %340 : vector<16x1xf32> to vector<16x32xf32>
    %342 = arith.subf %336, %341 : vector<16x32xf32>
    %343 = arith.mulf %342, %342 : vector<16x32xf32>
    %cst_92 = arith.constant dense<0.000000e+00> : vector<16xf32>
    %344 = vector.multi_reduction <add>, %343, %cst_92 [1] : vector<16x32xf32> to vector<16xf32>
    %345 = vector.shape_cast %344 : vector<16xf32> to vector<16x1xf32>
    %cst_93 = arith.constant 3.200000e+01 : f32
    %346 = vector.broadcast %cst_93 : f32 to vector<16x1xf32>
    %347 = arith.divf %345, %346 : vector<16x1xf32>
    %348 = vector.broadcast %340 : vector<16x1xf32> to vector<16x32xf32>
    %349 = arith.subf %336, %348 : vector<16x32xf32>
    %cst_94 = arith.constant 9.99999997E-7 : f32
    %350 = vector.broadcast %cst_94 : f32 to vector<16x1xf32>
    %351 = arith.addf %347, %350 : vector<16x1xf32>
    %352 = math.rsqrt %351 : vector<16x1xf32>
    %353 = vector.broadcast %352 : vector<16x1xf32> to vector<16x32xf32>
    %354 = arith.mulf %349, %353 : vector<16x32xf32>
    %355 = vector.broadcast %280 : vector<1x32xf32> to vector<16x32xf32>
    %356 = arith.mulf %354, %355 : vector<16x32xf32>
    %357 = vector.broadcast %281 : vector<1x32xf32> to vector<16x32xf32>
    %358 = arith.addf %356, %357 : vector<16x32xf32>
    %359 = vector.extract_strided_slice %271 {offsets = [0, 0, 0], sizes = [1, 32, 32], strides = [1, 1, 1]} : vector<4x32x32xf32> to vector<1x32x32xf32>
    %360 = vector.shape_cast %359 : vector<1x32x32xf32> to vector<32x32xf32>
    %361 = vector.extract_strided_slice %271 {offsets = [1, 0, 0], sizes = [1, 32, 32], strides = [1, 1, 1]} : vector<4x32x32xf32> to vector<1x32x32xf32>
    %362 = vector.shape_cast %361 : vector<1x32x32xf32> to vector<32x32xf32>
    %363 = vector.extract_strided_slice %271 {offsets = [2, 0, 0], sizes = [1, 32, 32], strides = [1, 1, 1]} : vector<4x32x32xf32> to vector<1x32x32xf32>
    %364 = vector.shape_cast %363 : vector<1x32x32xf32> to vector<32x32xf32>
    %365 = vector.extract_strided_slice %271 {offsets = [3, 0, 0], sizes = [1, 32, 32], strides = [1, 1, 1]} : vector<4x32x32xf32> to vector<1x32x32xf32>
    %366 = vector.shape_cast %365 : vector<1x32x32xf32> to vector<32x32xf32>
    %367 = vector.extract_strided_slice %11 {offsets = [11, 0], sizes = [1, 32], strides = [1, 1]} : vector<16x32xf32> to vector<1x32xf32>
    %368 = vector.extract_strided_slice %11 {offsets = [12, 0], sizes = [1, 32], strides = [1, 1]} : vector<16x32xf32> to vector<1x32xf32>
    %cst_95 = arith.constant dense<0.000000e+00> : vector<16x32xf32>
    %369 = tpu.matmul %358, %360, %cst_95 {dimension_numbers = #tpu.dot_dimension_numbers<[1], [0], [0], [1], [0, 0, 1, 1], [], []>} : vector<16x32xf32>, vector<32x32xf32>, vector<16x32xf32> -> vector<16x32xf32>
    %cst_96 = arith.constant dense<0.000000e+00> : vector<16x32xf32>
    %370 = tpu.matmul %36, %362, %cst_96 {dimension_numbers = #tpu.dot_dimension_numbers<[1], [0], [0], [1], [0, 0, 1, 1], [], []>} : vector<16x32xf32>, vector<32x32xf32>, vector<16x32xf32> -> vector<16x32xf32>
    %cst_97 = arith.constant dense<0.000000e+00> : vector<16x32xf32>
    %371 = tpu.matmul %36, %364, %cst_97 {dimension_numbers = #tpu.dot_dimension_numbers<[1], [0], [0], [1], [0, 0, 1, 1], [], []>} : vector<16x32xf32>, vector<32x32xf32>, vector<16x32xf32> -> vector<16x32xf32>
    %372 = vector.extract_strided_slice %369 {offsets = [0, 0], sizes = [16, 8], strides = [1, 1]} : vector<16x32xf32> to vector<16x8xf32>
    %373 = vector.shape_cast %372 : vector<16x8xf32> to vector<2x8x8xf32>
    %374 = vector.extract_strided_slice %369 {offsets = [0, 8], sizes = [16, 8], strides = [1, 1]} : vector<16x32xf32> to vector<16x8xf32>
    %375 = vector.shape_cast %374 : vector<16x8xf32> to vector<2x8x8xf32>
    %376 = vector.extract_strided_slice %369 {offsets = [0, 16], sizes = [16, 8], strides = [1, 1]} : vector<16x32xf32> to vector<16x8xf32>
    %377 = vector.shape_cast %376 : vector<16x8xf32> to vector<2x8x8xf32>
    %378 = vector.extract_strided_slice %369 {offsets = [0, 24], sizes = [16, 8], strides = [1, 1]} : vector<16x32xf32> to vector<16x8xf32>
    %379 = vector.shape_cast %378 : vector<16x8xf32> to vector<2x8x8xf32>
    %380 = tpu.concatenate %373, %375, %377, %379 in 0 : vector<2x8x8xf32>, vector<2x8x8xf32>, vector<2x8x8xf32>, vector<2x8x8xf32> -> vector<8x8x8xf32>
    %381 = vector.extract_strided_slice %370 {offsets = [0, 0], sizes = [16, 8], strides = [1, 1]} : vector<16x32xf32> to vector<16x8xf32>
    %382 = vector.shape_cast %381 : vector<16x8xf32> to vector<2x8x8xf32>
    %383 = vector.extract_strided_slice %370 {offsets = [0, 8], sizes = [16, 8], strides = [1, 1]} : vector<16x32xf32> to vector<16x8xf32>
    %384 = vector.shape_cast %383 : vector<16x8xf32> to vector<2x8x8xf32>
    %385 = vector.extract_strided_slice %370 {offsets = [0, 16], sizes = [16, 8], strides = [1, 1]} : vector<16x32xf32> to vector<16x8xf32>
    %386 = vector.shape_cast %385 : vector<16x8xf32> to vector<2x8x8xf32>
    %387 = vector.extract_strided_slice %370 {offsets = [0, 24], sizes = [16, 8], strides = [1, 1]} : vector<16x32xf32> to vector<16x8xf32>
    %388 = vector.shape_cast %387 : vector<16x8xf32> to vector<2x8x8xf32>
    %389 = tpu.concatenate %382, %384, %386, %388 in 0 : vector<2x8x8xf32>, vector<2x8x8xf32>, vector<2x8x8xf32>, vector<2x8x8xf32> -> vector<8x8x8xf32>
    %390 = vector.extract_strided_slice %371 {offsets = [0, 0], sizes = [16, 8], strides = [1, 1]} : vector<16x32xf32> to vector<16x8xf32>
    %391 = vector.shape_cast %390 : vector<16x8xf32> to vector<2x8x8xf32>
    %392 = vector.extract_strided_slice %371 {offsets = [0, 8], sizes = [16, 8], strides = [1, 1]} : vector<16x32xf32> to vector<16x8xf32>
    %393 = vector.shape_cast %392 : vector<16x8xf32> to vector<2x8x8xf32>
    %394 = vector.extract_strided_slice %371 {offsets = [0, 16], sizes = [16, 8], strides = [1, 1]} : vector<16x32xf32> to vector<16x8xf32>
    %395 = vector.shape_cast %394 : vector<16x8xf32> to vector<2x8x8xf32>
    %396 = vector.extract_strided_slice %371 {offsets = [0, 24], sizes = [16, 8], strides = [1, 1]} : vector<16x32xf32> to vector<16x8xf32>
    %397 = vector.shape_cast %396 : vector<16x8xf32> to vector<2x8x8xf32>
    %398 = tpu.concatenate %391, %393, %395, %397 in 0 : vector<2x8x8xf32>, vector<2x8x8xf32>, vector<2x8x8xf32>, vector<2x8x8xf32> -> vector<8x8x8xf32>
    "tpu.trace_start"() <{level = 10 : i32, message = "bqd,bkd->bqk"}> : () -> ()
    %cst_98 = arith.constant dense<0.000000e+00> : vector<8x8x8xf32>
    %399 = tpu.matmul %380, %389, %cst_98 {dimension_numbers = #tpu.dot_dimension_numbers<[2], [2], [1], [1], [0, 0, 0, 1, 1, 1], [0], [0]>} : vector<8x8x8xf32>, vector<8x8x8xf32>, vector<8x8x8xf32> -> vector<8x8x8xf32>
    "tpu.trace_stop"() : () -> ()
    %400 = vector.broadcast %48 : vector<8x1x8xf32> to vector<8x8x8xf32>
    %401 = arith.addf %399, %400 : vector<8x8x8xf32>
    %cst_99 = arith.constant dense<0xFF800000> : vector<8x8xf32>
    %402 = vector.multi_reduction <maximumf>, %401, %cst_99 [2] : vector<8x8x8xf32> to vector<8x8xf32>
    %403 = vector.shape_cast %402 : vector<8x8xf32> to vector<8x8x1xf32>
    %404 = vector.broadcast %403 : vector<8x8x1xf32> to vector<8x8x8xf32>
    %405 = arith.subf %401, %404 : vector<8x8x8xf32>
    %406 = math.exp %405 : vector<8x8x8xf32>
    %cst_100 = arith.constant dense<0.000000e+00> : vector<8x8xf32>
    %407 = vector.multi_reduction <add>, %406, %cst_100 [2] : vector<8x8x8xf32> to vector<8x8xf32>
    %408 = vector.shape_cast %407 : vector<8x8xf32> to vector<8x8x1xf32>
    %409 = tpu.reciprocal %408 {approx = true} : vector<8x8x1xf32> -> vector<8x8x1xf32>
    %410 = vector.broadcast %409 : vector<8x8x1xf32> to vector<8x8x8xf32>
    %411 = arith.mulf %406, %410 : vector<8x8x8xf32>
    "tpu.trace_start"() <{level = 10 : i32, message = "bqk,bkd->bqd"}> : () -> ()
    %cst_101 = arith.constant dense<0.000000e+00> : vector<8x8x8xf32>
    %412 = tpu.matmul %411, %398, %cst_101 {dimension_numbers = #tpu.dot_dimension_numbers<[2], [1], [1], [2], [0, 0, 0, 1, 1, 2], [0], [0]>} : vector<8x8x8xf32>, vector<8x8x8xf32>, vector<8x8x8xf32> -> vector<8x8x8xf32>
    "tpu.trace_stop"() : () -> ()
    %413 = vector.shape_cast %412 : vector<8x8x8xf32> to vector<4x16x8xf32>
    %414 = vector.extract_strided_slice %413 {offsets = [0, 0, 0], sizes = [1, 16, 8], strides = [1, 1, 1]} : vector<4x16x8xf32> to vector<1x16x8xf32>
    %415 = vector.shape_cast %414 : vector<1x16x8xf32> to vector<16x8xf32>
    %416 = vector.extract_strided_slice %413 {offsets = [1, 0, 0], sizes = [1, 16, 8], strides = [1, 1, 1]} : vector<4x16x8xf32> to vector<1x16x8xf32>
    %417 = vector.shape_cast %416 : vector<1x16x8xf32> to vector<16x8xf32>
    %418 = vector.extract_strided_slice %413 {offsets = [2, 0, 0], sizes = [1, 16, 8], strides = [1, 1, 1]} : vector<4x16x8xf32> to vector<1x16x8xf32>
    %419 = vector.shape_cast %418 : vector<1x16x8xf32> to vector<16x8xf32>
    %420 = vector.extract_strided_slice %413 {offsets = [3, 0, 0], sizes = [1, 16, 8], strides = [1, 1, 1]} : vector<4x16x8xf32> to vector<1x16x8xf32>
    %421 = vector.shape_cast %420 : vector<1x16x8xf32> to vector<16x8xf32>
    %422 = tpu.concatenate %415, %417, %419, %421 in 1 : vector<16x8xf32>, vector<16x8xf32>, vector<16x8xf32>, vector<16x8xf32> -> vector<16x32xf32>
    %cst_102 = arith.constant dense<0.000000e+00> : vector<16x32xf32>
    %423 = tpu.matmul %422, %366, %cst_102 {dimension_numbers = #tpu.dot_dimension_numbers<[1], [0], [0], [1], [0, 0, 1, 1], [], []>} : vector<16x32xf32>, vector<32x32xf32>, vector<16x32xf32> -> vector<16x32xf32>
    %424 = arith.addf %423, %358 : vector<16x32xf32>
    %cst_103 = arith.constant dense<0.000000e+00> : vector<16xf32>
    %425 = vector.multi_reduction <add>, %424, %cst_103 [1] : vector<16x32xf32> to vector<16xf32>
    %426 = vector.shape_cast %425 : vector<16xf32> to vector<16x1xf32>
    %cst_104 = arith.constant 3.200000e+01 : f32
    %427 = vector.broadcast %cst_104 : f32 to vector<16x1xf32>
    %428 = arith.divf %426, %427 : vector<16x1xf32>
    %429 = vector.broadcast %428 : vector<16x1xf32> to vector<16x32xf32>
    %430 = arith.subf %424, %429 : vector<16x32xf32>
    %431 = arith.mulf %430, %430 : vector<16x32xf32>
    %cst_105 = arith.constant dense<0.000000e+00> : vector<16xf32>
    %432 = vector.multi_reduction <add>, %431, %cst_105 [1] : vector<16x32xf32> to vector<16xf32>
    %433 = vector.shape_cast %432 : vector<16xf32> to vector<16x1xf32>
    %cst_106 = arith.constant 3.200000e+01 : f32
    %434 = vector.broadcast %cst_106 : f32 to vector<16x1xf32>
    %435 = arith.divf %433, %434 : vector<16x1xf32>
    %436 = vector.broadcast %428 : vector<16x1xf32> to vector<16x32xf32>
    %437 = arith.subf %424, %436 : vector<16x32xf32>
    %cst_107 = arith.constant 9.99999997E-7 : f32
    %438 = vector.broadcast %cst_107 : f32 to vector<16x1xf32>
    %439 = arith.addf %435, %438 : vector<16x1xf32>
    %440 = math.rsqrt %439 : vector<16x1xf32>
    %441 = vector.broadcast %440 : vector<16x1xf32> to vector<16x32xf32>
    %442 = arith.mulf %437, %441 : vector<16x32xf32>
    %443 = vector.broadcast %367 : vector<1x32xf32> to vector<16x32xf32>
    %444 = arith.mulf %442, %443 : vector<16x32xf32>
    %445 = vector.broadcast %368 : vector<1x32xf32> to vector<16x32xf32>
    %446 = arith.addf %444, %445 : vector<16x32xf32>
    %c1_108 = arith.constant 1 : index
    %c0_109 = arith.constant 0 : index
    %c0_110 = arith.constant 0 : index
    %447 = vector.load %arg9[%c1_108, %c0_109, %c0_110] : memref<2x32x64xf32, #tpu.memory_space<vmem>>, vector<1x32x64xf32>
    %448 = vector.shape_cast %447 : vector<1x32x64xf32> to vector<32x64xf32>
    %c1_111 = arith.constant 1 : index
    %c0_112 = arith.constant 0 : index
    %c0_113 = arith.constant 0 : index
    %449 = vector.load %arg11[%c1_111, %c0_112, %c0_113] : memref<2x1x64xf32, #tpu.memory_space<vmem>>, vector<1x1x64xf32>
    %450 = vector.shape_cast %449 : vector<1x1x64xf32> to vector<1x64xf32>
    %c1_114 = arith.constant 1 : index
    %c0_115 = arith.constant 0 : index
    %c0_116 = arith.constant 0 : index
    %451 = vector.load %arg10[%c1_114, %c0_115, %c0_116] : memref<2x64x32xf32, #tpu.memory_space<vmem>>, vector<1x64x32xf32>
    %452 = vector.shape_cast %451 : vector<1x64x32xf32> to vector<64x32xf32>
    %453 = vector.extract_strided_slice %11 {offsets = [15, 0], sizes = [1, 32], strides = [1, 1]} : vector<16x32xf32> to vector<1x32xf32>
    %454 = vector.extract_strided_slice %11 {offsets = [13, 0], sizes = [1, 32], strides = [1, 1]} : vector<16x32xf32> to vector<1x32xf32>
    %455 = vector.extract_strided_slice %11 {offsets = [14, 0], sizes = [1, 32], strides = [1, 1]} : vector<16x32xf32> to vector<1x32xf32>
    %cst_117 = arith.constant dense<0.000000e+00> : vector<16x64xf32>
    %456 = tpu.matmul %446, %448, %cst_117 {dimension_numbers = #tpu.dot_dimension_numbers<[1], [0], [0], [1], [0, 0, 1, 1], [], []>} : vector<16x32xf32>, vector<32x64xf32>, vector<16x64xf32> -> vector<16x64xf32>
    %457 = vector.broadcast %450 : vector<1x64xf32> to vector<16x64xf32>
    %458 = arith.addf %456, %457 : vector<16x64xf32>
    %cst_118 = arith.constant 0.000000e+00 : f32
    %459 = vector.broadcast %cst_118 : f32 to vector<16x64xf32>
    %460 = arith.maximumf %458, %459 : vector<16x64xf32>
    %cst_119 = arith.constant dense<0.000000e+00> : vector<16x32xf32>
    %461 = tpu.matmul %460, %452, %cst_119 {dimension_numbers = #tpu.dot_dimension_numbers<[1], [0], [0], [1], [0, 0, 1, 1], [], []>} : vector<16x64xf32>, vector<64x32xf32>, vector<16x32xf32> -> vector<16x32xf32>
    %462 = vector.broadcast %453 : vector<1x32xf32> to vector<16x32xf32>
    %463 = arith.addf %461, %462 : vector<16x32xf32>
    %464 = arith.addf %463, %446 : vector<16x32xf32>
    %cst_120 = arith.constant dense<0.000000e+00> : vector<16xf32>
    %465 = vector.multi_reduction <add>, %464, %cst_120 [1] : vector<16x32xf32> to vector<16xf32>
    %466 = vector.shape_cast %465 : vector<16xf32> to vector<16x1xf32>
    %cst_121 = arith.constant 3.200000e+01 : f32
    %467 = vector.broadcast %cst_121 : f32 to vector<16x1xf32>
    %468 = arith.divf %466, %467 : vector<16x1xf32>
    %469 = vector.broadcast %468 : vector<16x1xf32> to vector<16x32xf32>
    %470 = arith.subf %464, %469 : vector<16x32xf32>
    %471 = arith.mulf %470, %470 : vector<16x32xf32>
    %cst_122 = arith.constant dense<0.000000e+00> : vector<16xf32>
    %472 = vector.multi_reduction <add>, %471, %cst_122 [1] : vector<16x32xf32> to vector<16xf32>
    %473 = vector.shape_cast %472 : vector<16xf32> to vector<16x1xf32>
    %cst_123 = arith.constant 3.200000e+01 : f32
    %474 = vector.broadcast %cst_123 : f32 to vector<16x1xf32>
    %475 = arith.divf %473, %474 : vector<16x1xf32>
    %476 = vector.broadcast %468 : vector<16x1xf32> to vector<16x32xf32>
    %477 = arith.subf %464, %476 : vector<16x32xf32>
    %cst_124 = arith.constant 9.99999997E-7 : f32
    %478 = vector.broadcast %cst_124 : f32 to vector<16x1xf32>
    %479 = arith.addf %475, %478 : vector<16x1xf32>
    %480 = math.rsqrt %479 : vector<16x1xf32>
    %481 = vector.broadcast %480 : vector<16x1xf32> to vector<16x32xf32>
    %482 = arith.mulf %477, %481 : vector<16x32xf32>
    %483 = vector.broadcast %454 : vector<1x32xf32> to vector<16x32xf32>
    %484 = arith.mulf %482, %483 : vector<16x32xf32>
    %485 = vector.broadcast %455 : vector<1x32xf32> to vector<16x32xf32>
    %486 = arith.addf %484, %485 : vector<16x32xf32>
    %c0_125 = arith.constant 0 : index
    %c0_126 = arith.constant 0 : index
    %487 = vector.load %arg12[%c0_125, %c0_126] : memref<16x32xf32, #tpu.memory_space<vmem>>, vector<16x32xf32>
    tpu.vector_store %arg12[%c0_125, %c0_126], %486 {strides = array<i32>} : memref<16x32xf32, #tpu.memory_space<vmem>>, vector<16x32xf32>,
    return
  }
}

</mosaic_0001>

<bundles_post_ra>
// kernel: tpu_custom_call.1
= control target key start
LH: loop header
LB: loop body
LE: loop exit
PB: predicated region body
PF: predicated region fallthrough
CT: control target
= control target key end

     0   :  { %17 = vsyncpa [#allocation3], 0  ;;  %s9984_s0 = inlined_call_operand.vmem [shape: s32[16,1], index: 0, kind: input, shape index: {}]   ;;  %s9985_s1 = inlined_call_operand.vmem [shape: f32[16,32], index: 1, kind: input, shape index: {}]   ;;  %s9986_s2 = inlined_call_operand.vmem [shape: f32[16,32], index: 2, kind: input, shape index: {}]   ;;  %s9987_s3 = inlined_call_operand.vmem [shape: f32[16,32], index: 3, kind: input, shape index: {}]   ;;  %s9988_s4 = inlined_call_operand.vmem [shape: f32[2,8,8], index: 4, kind: input, shape index: {}]   ;;  %s9989_s5 = inlined_call_operand.vmem [shape: f32[2,1,8], index: 5, kind: input, shape index: {}]   ;;  %s9990_s6 = inlined_call_operand.vmem [shape: f32[16,32], index: 6, kind: input, shape index: {}]   ;;  %s9991_s7 = inlined_call_operand.hbm [shape: f32[2,4,32,32], index: 7, kind: input, shape index: {}]   ;;  %s9992_s8 = inlined_call_operand.hbm [shape: f32[2,4,32,32], index: 8, kind: input, shape index: {}]   ;;  %s9993_s9 = inlined_call_operand.vmem [shape: f32[2,32,64], index: 9, kind: input, shape index: {}]   ;;  %s9994_s10 = inlined_call_operand.vmem [shape: f32[2,64,32], index: 10, kind: input, shape index: {}]   ;;  %s9995_s11 = inlined_call_operand.vmem [shape: f32[2,1,64], index: 11, kind: input, shape index: {}]   ;;  %s9996_s12 = inlined_call_operand.hbm [shape: f32[16,32], index: 12, kind: output, shape index: {}]  }
   0x1   :  { %18 = vsyncpa [#allocation6], 0 }
   0x2   :  { %19 = vsyncpa [#allocation4], 0  ;;  %s8967_s21 = smov [#allocation2]   ;;  %s8895_s25 = scalar_lea.hbm %s9991_s7, 4096 }
   0x3   :  { %s39_s22 = sshll.u32 %s8967_s21, 4  ;;  %p8896_p0 = scmp.ne.s32.totalorder %s9991_s7, %s8895_s25  ;;  %s40_s22 = int_to_ptr.vmem [resolvable:$true] %s39_s22 }
   0x4   :  { %p8899_p1 = scmp.lt.u32.totalorder %s8895_s25, %s9991_s7 }
   0x6   :  { %p8901_p2 = pnand %p8899_p1, %p8896_p0 }
   0x8   :  { %8904 = shalt.err (!%p8901_p2)
}
   0x9   :  { %s8905_s30 = scalar_lea.vmem %s40_s22, 4096  ;;  %p8910_p4 = scmp.lt.s32.totalorder %s40_s22, %s40_s22 }
   0xa   :  { %p8906_p3 = scmp.ne.s32.totalorder %s40_s22, %s8905_s30  ;;  %p8911_p5 = scmp.lt.s32.totalorder %s8905_s30, %s8905_s30 }
   0xc   :  { %p8912_p6 = por %p8911_p5, %p8910_p4 }
   0xe   :  { %p8913_p7 = pnand %p8912_p6, %p8906_p3 }
  0x10   :  { %8916 = shalt.err (!%p8913_p7)
}
  0x11   :  { %s8968_s13 = smov 128   ;;  %s8969_s14 = smov 8  }
  0x12   :  { %45 = dma.hbm_to_vmem [thread:$0]  %s9991_s7, 4096, %s40_s22, [#allocation3], %s8968_s13, %s8968_s13, %s8969_s14  }
  0x13   :  { %s8970_s17 = smov [#allocation5]   ;;  %s8917_s21 = scalar_lea.hbm %s9992_s8, 4096 }
  0x14   :  { %s51_s18 = sshll.u32 %s8970_s17, 4  ;;  %p8918_p8 = scmp.ne.s32.totalorder %s9992_s8, %s8917_s21  ;;  %s52_s18 = int_to_ptr.vmem [resolvable:$true] %s51_s18 }
  0x15   :  { %p8921_p9 = scmp.lt.u32.totalorder %s8917_s21, %s9992_s8 }
  0x17   :  { %p8923_p10 = pnand %p8921_p9, %p8918_p8 }
  0x19   :  { %8926 = shalt.err (!%p8923_p10)
}
  0x1a   :  { %s8927_s27 = scalar_lea.vmem %s52_s18, 4096  ;;  %p8932_p12 = scmp.lt.s32.totalorder %s52_s18, %s52_s18 }
  0x1b   :  { %p8928_p11 = scmp.ne.s32.totalorder %s52_s18, %s8927_s27  ;;  %p8933_p13 = scmp.lt.s32.totalorder %s8927_s27, %s8927_s27 }
  0x1d   :  { %p8934_p0 = por %p8933_p13, %p8932_p12 }
  0x1f   :  { %p8935_p1 = pnand %p8934_p0, %p8928_p11 }
  0x21   :  { %8938 = shalt.err (!%p8935_p1)
}
  0x22   :  { %57 = dma.hbm_to_vmem [thread:$0]  %s9992_s8, 4096, %s52_s18, [#allocation6], %s8968_s13, %s8968_s13, %s8969_s14  }
  0x23   :  { %8961 = dma.done.wait [#allocation3], 4096  }
  0x24   :  { %8962 = vsyncadd [#allocation3], 4294963200 }
  0x25   :  { %8963 = dma.done.wait [#allocation6], 4096  }
  0x26   :  { %8964 = vsyncadd [#allocation6], 4294963200  ;;  %v8971_v0 = vmov 0   ;;  %v70_v1 = vld [vmem:[%s9984_s0] sm:$0xff]  ;;  %v87_v3 = vld [vmem:[%s9985_s1 + $0x8] sm:$0xff]  ;;  %v72_v6 = vlaneseq  ;;  %vm89_vm0 = vcmask 130048  }
  0x27   :  { %8734 = vset.pattern.permute.xlu0 %v8971_v0  ;;  %v86_v2 = vld [vmem:[%s9985_s1] sm:$0xff]  ;;  %v71_v4 = vld [vmem:[%s9984_s0 + $0x8] sm:$0xff]  ;;  %v8972_v9 = vmov 0.0   ;;  %vm173_vm3 = vcmask 261120   ;;  %v227_v30 = vld [vmem:[#allocation2] sm:$0xff]  ;;  %vm8973_vm4 = vmmov 0  }
  0x28   :  { %75 = vperm.xlu0 %8734, %v70_v1   ;;  %v8541_v5 = vpack.c.bf16 %v87_v3, %v86_v2  ;;  %v73_v7 = vand.u32 127, %v72_v6  ;;  %v88_v13 = vld [vmem:[%s9986_s2] sm:$0xff]  ;;  %v228_v31 = vld [vmem:[#allocation2 + $0x8] sm:$0xff]  ;;  %v235_v33 = vld [vmem:[#allocation2 + $0x40] sm:$0xff]  ;;  %v9101_v50 = vshrl.u32 %v72_v6, 7  ;;  %s8974_s20 = smov 120  }
  0x29   :  { %v8545_v32 = vpack.c.bf16 %v228_v31, %v227_v30  ;;  %v236_v34 = vld [vmem:[#allocation2 + $0x48] sm:$0xff]  ;;  %v229_v36 = vld [vmem:[#allocation2 + $0x10] sm:$0xff]  ;;  %v230_v37 = vld [vmem:[#allocation2 + $0x18] sm:$0xff]  ;;  %vm538_vm5 = vcmask 64512   ;;  %s8975_s21 = smov 112   ;;  %s8976_s23 = smov 104  }
  0x2a   :  { %8542 = vmatprep.subr.bf16.mxu0 %v8541_v5  ;;  %v8561_v35 = vpack.c.bf16 %v236_v34, %v235_v33  ;;  %v8549_v38 = vpack.c.bf16 %v230_v37, %v229_v36  ;;  %v237_v39 = vld [vmem:[#allocation2 + $0x50] sm:$0xff]  ;;  %v238_v40 = vld [vmem:[#allocation2 + $0x58] sm:$0xff]  ;;  %v231_v42 = vld [vmem:[#allocation2 + $0x20] sm:$0xff]  ;;  %v9104_v52 = vsub.s32 0, %v9101_v50  ;;  %v209_v54 = vsub.s32 1, %v9101_v50  ;;  %s8978_s7 = smov 24  }
  0x2b   :  { %8544 = vmatpush3.bf16.msra.mxu0 %v8541_v5  ;;  %v8565_v41 = vpack.c.bf16 %v238_v40, %v237_v39  ;;  %v232_v43 = vld [vmem:[#allocation2 + $0x28] sm:$0xff]  ;;  %v9109_v53 = vld [vmem:[%s9990_s6] sm:$0xff]  ;;  %v234_v0 = vld [vmem:[#allocation2 + $0x38] sm:$0xff]  ;;  %vm1831_vm6 = vcmask 195584   ;;  %vm3769_vm7 = vcmask 523264  }
  0x2c   :  { %78 = vperm.xlu0 %8734, %v71_v4   ;;  %8546 = vmatprep.subr.bf16.mxu0 %v8545_v32  ;;  %v8553_v44 = vpack.c.bf16 %v232_v43, %v231_v42  ;;  %v204_v55 = vrot.slane %v9109_v53, %v9104_v52  ;;  %v210_v58 = vrot.slane %v9109_v53, %v209_v54  ;;  %v233_v63 = vld [vmem:[#allocation2 + $0x30] sm:$0xff] }
  0x2d   :  { %8562 = vmatprep.subr.bf16.mxu1 %v8561_v35  ;;  %v8557_v3 = vpack.c.bf16 %v234_v0, %v233_v63 }
  0x2e   :  { %8564 = vmatpush3.bf16.msra.mxu1 %v8561_v35 }
  0x2f   :  { %8566 = vmatprep.subr.bf16.mxu1 %v8565_v41 }
  0x32   :  { %8568 = vmatpush3.bf16.msra.mxu1 %v8565_v41 }
  0x33   :  { %8028 = vmatprep.subr.mxu1 %v8972_v9 }
  0xa7   :  { %v76_v8 = vpop.permute.xlu0 %75 }
  0xa8   :  { %vm80_vm1 = vcmp.eq.s32.totalorder %v73_v7, %v76_v8 }
  0xa9   :  { %v7559_v10 = vsel %vm80_vm1, 1.0, %v8972_v9 }
  0xaa   :  { %7982 = vmatprep.mubr.msk.f32.mxu0 %vm89_vm0, %v7559_v10 }
  0xab   :  { %v79_v11 = vpop.permute.xlu0 %78 }
  0xac   :  { %vm81_vm2 = vcmp.eq.s32.totalorder %v73_v7, %v79_v11 }
  0xad   :  { %v7560_v12 = vsel %vm81_vm2, 1.0, %v8972_v9 }
  0xae   :  { %7983 = vmatmul.mubr.msk.f32.vlgmr.msra.gmra.mrb[0].mxu0 %vm89_vm0, %v7560_v12 }
  0xaf   :  { %8548 = vmatpush3.bf16.msra.mxu0 %v8545_v32 }
  0xb0   :  { %8550 = vmatprep.subr.bf16.mxu0 %v8549_v38 }
  0xb3   :  { %8552 = vmatpush3.bf16.msra.mxu0 %v8549_v38 }
  0xb4   :  { %8554 = vmatprep.subr.bf16.mxu0 %v8553_v44 }
 0x181   :  { %v7984_v14 = vpop.f32.mrb[0].mxu0 }
 0x182   :  { %v162_v15 = vpop.f32.mrb[1].mxu0  ;;  %v168_v17 = vadd.f32 %v7984_v14, %v88_v13 }
 0x183   :  { %v163_v16 = vadd.f32 %v162_v15, %v88_v13 }
 0x184   :  { %v177_v19 = vsel %vm173_vm3, %v168_v17, 0.0 }
 0x185   :  { %v174_v18 = vsel %vm173_vm3, %v163_v16, 0.0 }
 0x186   :  { %175 = vadd.xlane.f32.xlu1 %v174_v18 }
 0x18a   :  { %178 = vadd.xlane.f32.xlu1 %v177_v19 }
 0x213   :  { %v176_v20 = vpop.xlane.xlu1 %175 }
 0x214   :  { %v181_v21 = vmul.f32 0.03125, %v176_v20 }
 0x216   :  { %v183_v22 = vsub.f32 %v163_v16, %v181_v21 }
 0x217   :  { %v179_v23 = vpop.xlane.xlu1 %178 }
 0x218   :  { %v182_v24 = vmul.f32 0.03125, %v179_v23  ;;  %v185_v25 = vmul.f32 %v183_v22, %v183_v22  ;;  %v215_v23 = vld [vmem:[%s9988_s4] sm:$0xff] }
 0x21a   :  { %v184_v26 = vsub.f32 %v168_v17, %v182_v24  ;;  %v187_v27 = vsel %vm173_vm3, %v185_v25, 0.0  ;;  %v7563_v24 = vadd.f32 -1.0, %v215_v23  ;;  %v216_v25 = vld [vmem:[%s9988_s4 + $0x8] sm:$0xff]  ;;  %s8977_s4 = smov 16  }
 0x21b   :  { %188 = vadd.xlane.f32.xlu0 %v187_v27  ;;  %v7564_v27 = vadd.f32 -1.0, %v216_v25 }
 0x21c   :  { %v186_v28 = vmul.f32 %v184_v26, %v184_v26 }
 0x21d   :  { %v9207_v31 = vmul.f32 1e+09, %v7564_v27 }
 0x21e   :  { %v190_v29 = vsel %vm173_vm3, %v186_v28, 0.0 }
 0x21f   :  { %191 = vadd.xlane.f32.xlu1 %v190_v29 }
 0x2a8   :  { %v189_v45 = vpop.xlane.xlu0 %188 }
 0x2a9   :  { %v193_v46 = vmul.f32 0.03125, %v189_v45 }
 0x2ab   :  { %v195_v47 = vadd.f32 1e-06, %v193_v46 }
 0x2ac   :  { %v192_v48 = vpop.xlane.xlu1 %191 }
 0x2ad   :  { %8735 = vrsqrt.f32 %v195_v47  ;;  %v194_v49 = vmul.f32 0.03125, %v192_v48 }
 0x2af   :  { %v196_v51 = vadd.f32 1e-06, %v194_v49 }
 0x2b1   :  { %8737 = vrsqrt.f32 %v196_v51 }
 0x2b7   :  { %v8736_v56 = vpop.eup %8735 }
 0x2b8   :  { %v199_v57 = vmul.f32 %v8736_v56, %v183_v22 }
 0x2ba   :  { %v205_v59 = vmul.f32 %v204_v55, %v199_v57 }
 0x2bb   :  { %v8738_v60 = vpop.eup %8737 }
 0x2bc   :  { %v200_v61 = vmul.f32 %v8738_v60, %v184_v26  ;;  %v9117_v62 = vadd.f32 %v210_v58, %v205_v59  ;;  %v9204_v26 = vmul.f32 1e+09, %v7563_v24 }
 0x2be   :  { %v206_v1 = vmul.f32 %v204_v55, %v200_v61  ;;  %7993 = vmatprep.mubr.msk.f32.mxu0 %vm173_vm3, %v9117_v62  ;;  %8015 = vmatprep.mubr.msk.f32.mxu1 %vm173_vm3, %v9117_v62 }
 0x2c0   :  { %v9123_v2 = vadd.f32 %v210_v58, %v206_v1 }
 0x2c2   :  { %7994 = vmatmul.mubr.msk.f32.vlgmr.msra.gmra.mrb[2].mxu0 %vm173_vm3, %v9123_v2  ;;  %8016 = vmatmul.mubr.msk.f32.vlgmr.msra.gmra.mrb[0].mxu1 %vm173_vm3, %v9123_v2 }
 0x2c3   :  { %8556 = vmatpush3.bf16.msra.mxu0 %v8553_v44  ;;  %8004 = vmatprep.mubr.msk.f32.mxu0 %vm173_vm3, %v9117_v62 }
 0x2c4   :  { %8558 = vmatprep.subr.bf16.mxu0 %v8557_v3  ;;  %8030 = vmatprep.mubr.msk.f32.mxu1 %vm8973_vm4, %v8972_v9 }
 0x2c7   :  { %8560 = vmatpush3.bf16.msra.mxu0 %v8557_v3 }
 0x2c8   :  { %8018 = vmatprep.subr.mxu0 %v8972_v9 }
 0x2ca   :  { %8005 = vmatmul.mubr.msk.f32.vlgmr.msra.gmra.mrb[4].mxu0 %vm173_vm3, %v9123_v2 }
 0x2cb   :  { %8020 = vmatprep.mubr.msk.f32.mxu0 %vm8973_vm4, %v8972_v9 }
 0x395   :  { %v7995_v4 = vpop.f32.mrb[2].mxu0  ;;  %v9138_v5 = vpop.f32.mrb[0].mxu1 }
 0x396   :  { %v9140_v6 = vpop.f32.mrb[1].mxu1  ;;  %494 = vrot.lane.b32.xlu1 %v7995_v4, %s8974_s20  ;;  %v331_v7 = vpop.f32.mrb[3].mxu0 }
 0x39a   :  { %492 = vrot.lane.b32.xlu1 %v331_v7, %s8974_s20 }
 0x39d   :  { %v8006_v8 = vpop.f32.mrb[4].mxu0 }
 0x39e   :  { %v406_v10 = vpop.f32.mrb[5].mxu0  ;;  %508 = vrot.lane.b32.xlu1 %v8006_v8, %s8974_s20 }
 0x39f   :  { %510 = vrot.lane.b32.xlu0 %v406_v10, %s8975_s21  ;;  %8019 = vmatpush3.xpose.msk.msra.mxu0 %vm538_vm5, %v406_v10 }
 0x3a0   :  { %8023 = vmatprep.subr.mxu0 %v8972_v9 }
 0x3a2   :  { %8021 = vmatmul.mubr.msk.f32.vlgmr.msra.gmra.mrb[6].mxu0 %vm538_vm5, %v331_v7  ;;  %506 = vrot.lane.b32.xlu1 %v406_v10, %s8974_s20 }
 0x3a3   :  { %500 = vrot.lane.b32.xlu0 %v331_v7, %s8976_s23  ;;  %8024 = vmatpush3.xpose.msk.msra.mxu0 %vm538_vm5, %v8006_v8 }
 0x3a4   :  { %8025 = vmatprep.mubr.msk.f32.mxu0 %vm8973_vm4, %v8972_v9  ;;  %8033 = vmatprep.subr.mxu0 %v8972_v9 }
 0x3a6   :  { %8026 = vmatmul.mubr.msk.f32.vlgmr.msra.gmra.mrb[8].mxu0 %vm538_vm5, %v7995_v4  ;;  %512 = vrot.lane.b32.xlu1 %v8006_v8, %s8975_s21 }
 0x3a7   :  { %8035 = vmatprep.mubr.msk.f32.mxu0 %vm8973_vm4, %v8972_v9 }
 0x3aa   :  { %496 = vrot.lane.b32.xlu1 %v331_v7, %s8975_s21 }
 0x3ae   :  { %498 = vrot.lane.b32.xlu1 %v7995_v4, %s8975_s21 }
 0x3b2   :  { %516 = vrot.lane.b32.xlu1 %v8006_v8, %s8976_s23 }
 0x3b6   :  { %514 = vrot.lane.b32.xlu1 %v406_v10, %s8976_s23 }
 0x3ba   :  { %502 = vrot.lane.b32.xlu1 %v7995_v4, %s8976_s23 }
 0x408   :  { %v495_v11 = vpop.permute.xlu1 %494 }
 0x40c   :  { %v493_v12 = vpop.permute.xlu1 %492 }
 0x410   :  { %v509_v13 = vpop.permute.xlu1 %508 }
 0x411   :  { %8034 = vmatpush3.xpose.msk.msra.mxu0 %vm538_vm5, %v509_v13  ;;  %v511_v15 = vpop.permute.xlu0 %510 }
 0x412   :  { %8043 = vmatprep.subr.mxu0 %v8972_v9 }
 0x414   :  { %v507_v14 = vpop.permute.xlu1 %506  ;;  %8036 = vmatmul.mubr.msk.f32.vlgmr.msra.gmra.mrb[10].mxu0 %vm538_vm5, %v495_v11 }
 0x415   :  { %8029 = vmatpush3.xpose.msk.msra.mxu1 %vm538_vm5, %v507_v14  ;;  %8045 = vmatprep.mubr.msk.f32.mxu0 %vm8973_vm4, %v8972_v9  ;;  %v501_v21 = vpop.permute.xlu0 %500 }
 0x416   :  { %8038 = vmatprep.subr.mxu1 %v8972_v9 }
 0x418   :  { %8031 = vmatmul.mubr.msk.f32.vlgmr.msra.gmra.mrb[2].mxu1 %vm538_vm5, %v493_v12  ;;  %v513_v16 = vpop.permute.xlu1 %512 }
 0x419   :  { %8039 = vmatpush3.xpose.msk.msra.mxu1 %vm538_vm5, %v511_v15  ;;  %8044 = vmatpush3.xpose.msk.msra.mxu0 %vm538_vm5, %v513_v16 }
 0x41a   :  { %8040 = vmatprep.mubr.msk.f32.mxu1 %vm8973_vm4, %v8972_v9  ;;  %8053 = vmatprep.subr.mxu0 %v8972_v9 }
 0x41b   :  { %8048 = vmatprep.subr.mxu1 %v8972_v9 }
 0x41c   :  { %v497_v17 = vpop.permute.xlu1 %496 }
 0x41d   :  { %8041 = vmatmul.mubr.msk.f32.vlgmr.msra.gmra.mrb[4].mxu1 %vm538_vm5, %v497_v17 }
 0x41e   :  { %8050 = vmatprep.mubr.msk.f32.mxu1 %vm8973_vm4, %v8972_v9 }
 0x420   :  { %v499_v18 = vpop.permute.xlu1 %498 }
 0x421   :  { %8046 = vmatmul.mubr.msk.f32.vlgmr.msra.gmra.mrb[12].mxu0 %vm538_vm5, %v499_v18 }
 0x422   :  { %8055 = vmatprep.mubr.msk.f32.mxu0 %vm8973_vm4, %v8972_v9 }
 0x424   :  { %v517_v19 = vpop.permute.xlu1 %516 }
 0x425   :  { %8054 = vmatpush3.xpose.msk.msra.mxu0 %vm538_vm5, %v517_v19 }
 0x426   :  { %8063 = vmatprep.subr.mxu0 %v8972_v9 }
 0x428   :  { %v515_v20 = vpop.permute.xlu1 %514 }
 0x429   :  { %8049 = vmatpush3.xpose.msk.msra.mxu1 %vm538_vm5, %v515_v20 }
 0x42a   :  { %8058 = vmatprep.subr.mxu1 %v8972_v9 }
 0x42c   :  { %8051 = vmatmul.mubr.msk.f32.vlgmr.msra.gmra.mrb[6].mxu1 %vm538_vm5, %v501_v21  ;;  %v503_v22 = vpop.permute.xlu1 %502 }
 0x42d   :  { %8056 = vmatmul.mubr.msk.f32.vlgmr.msra.gmra.mrb[14].mxu0 %vm538_vm5, %v503_v22  ;;  %8059 = vmatpush3.msra.mxu1 %v9140_v6 }
 0x42e   :  { %8064 = vmatpush3.msra.mxu0 %v9138_v5  ;;  %8065 = vmatprep.mubr.msk.f32.mxu0 %vm8973_vm4, %v8972_v9 }
 0x42f   :  { %8073 = vmatprep.subr.mxu0 %v8972_v9  ;;  %8060 = vmatprep.mubr.msk.f32.mxu1 %vm8973_vm4, %v8972_v9 }
 0x430   :  { %8068 = vmatprep.subr.mxu1 %v8972_v9 }
 0x475   :  { %v609_v28 = vpop.f32.mrb[6].mxu0 }
 0x476   :  { %v610_v29 = vadd.f32 %v609_v28, %v9204_v26  ;;  %v8022_v30 = vpop.f32.mrb[7].mxu0 }
 0x478   :  { %v1131_v32 = vsel %vm538_vm5, %v610_v29, -inf }
 0x479   :  { %1132 = vmax.xlane.f32.xlu0 %v1131_v32  ;;  %v683_v33 = vpop.f32.mrb[8].mxu0 }
 0x47a   :  { %v684_v34 = vadd.f32 %v683_v33, %v9207_v31  ;;  %v8027_v35 = vpop.f32.mrb[9].mxu0 }
 0x47c   :  { %v1134_v36 = vsel %vm538_vm5, %v684_v34, -inf }
 0x47d   :  { %1135 = vmax.xlane.f32.xlu1 %v1134_v36 }
 0x4e7   :  { %v831_v37 = vpop.f32.mrb[10].mxu0 }
 0x4e8   :  { %v8037_v38 = vpop.f32.mrb[11].mxu0  ;;  %v832_v42 = vadd.f32 %v831_v37, %v9207_v31 }
 0x4ea   :  { %v1140_v47 = vsel %vm538_vm5, %v832_v42, -inf }
 0x4eb   :  { %v757_v39 = vpop.f32.mrb[2].mxu1 }
 0x4ec   :  { %v758_v40 = vadd.f32 %v757_v39, %v9204_v26  ;;  %v8032_v41 = vpop.f32.mrb[3].mxu1 }
 0x4ee   :  { %v1137_v43 = vsel %vm538_vm5, %v758_v40, -inf }
 0x4ef   :  { %1138 = vmax.xlane.f32.xlu0 %v1137_v43 }
 0x4f0   :  { %v905_v44 = vpop.f32.mrb[4].mxu1 }
 0x4f1   :  { %v906_v45 = vadd.f32 %v905_v44, %v9204_v26  ;;  %v8042_v46 = vpop.f32.mrb[5].mxu1 }
 0x4f3   :  { %1141 = vmax.xlane.f32.xlu0 %v1140_v47  ;;  %v1143_v48 = vsel %vm538_vm5, %v906_v45, -inf }
 0x4f4   :  { %1144 = vmax.xlane.f32.xlu1 %v1143_v48  ;;  %v979_v49 = vpop.f32.mrb[12].mxu0 }
 0x4f5   :  { %v980_v51 = vadd.f32 %v979_v49, %v9207_v31  ;;  %v8047_v55 = vpop.f32.mrb[13].mxu0 }
 0x4f7   :  { %v1146_v56 = vsel %vm538_vm5, %v980_v51, -inf }
 0x4f8   :  { %1147 = vmax.xlane.f32.xlu0 %v1146_v56 }
 0x4ff   :  { %v1053_v57 = vpop.f32.mrb[6].mxu1 }
 0x500   :  { %v1054_v58 = vadd.f32 %v1053_v57, %v9204_v26  ;;  %v8052_v59 = vpop.f32.mrb[7].mxu1  ;;  %v1127_v60 = vpop.f32.mrb[14].mxu0 }
 0x501   :  { %v1128_v61 = vadd.f32 %v1127_v60, %v9207_v31  ;;  %v8057_v63 = vpop.f32.mrb[15].mxu0 }
 0x502   :  { %v1149_v0 = vsel %vm538_vm5, %v1054_v58, -inf }
 0x503   :  { %1150 = vmax.xlane.f32.xlu1 %v1149_v0  ;;  %v1152_v1 = vsel %vm538_vm5, %v1128_v61, -inf }
 0x504   :  { %1153 = vmax.xlane.f32.xlu0 %v1152_v1 }
 0x506   :  { %v1133_v7 = vpop.xlane.xlu0 %1132 }
 0x507   :  { %v1155_v10 = vsub.f32 %v610_v29, %v1133_v7 }
 0x509   :  { %v1163_v11 = vmul.f32 1.442695, %v1155_v10 }
 0x50a   :  { %v1136_v3 = vpop.xlane.xlu1 %1135 }
 0x50b   :  { %v1156_v4 = vsub.f32 %v684_v34, %v1136_v3 }
 0x50d   :  { %v1165_v8 = vmul.f32 1.442695, %v1156_v4 }
 0x50f   :  { %8739 = vpow2.f32 %v1165_v8 }
 0x510   :  { %8741 = vpow2.f32 %v1163_v11 }
 0x514   :  { %520 = vrot.lane.b32.xlu1 %v9140_v6, %s8974_s20 }
 0x518   :  { %526 = vrot.lane.b32.xlu1 %v9140_v6, %s8975_s21 }
 0x519   :  { %v8740_v12 = vpop.eup %8739 }
 0x51a   :  { %522 = vrot.lane.b32.xlu0 %v9138_v5, %s8974_s20  ;;  %v1182_v13 = vsel %vm538_vm5, %v8740_v12, 0.0  ;;  %v8742_v14 = vpop.eup %8741 }
 0x51b   :  { %v1179_v15 = vsel %vm538_vm5, %v8742_v14, 0.0 }
 0x51c   :  { %528 = vrot.lane.b32.xlu1 %v9138_v5, %s8975_s21 }
 0x539   :  { %1183 = vadd.xlane.f32.xlu0 %v1182_v13 }
 0x540   :  { %1180 = vadd.xlane.f32.xlu1 %v1179_v15 }
 0x57c   :  { %v1139_v16 = vpop.xlane.xlu0 %1138 }
 0x57d   :  { %v1157_v17 = vsub.f32 %v758_v40, %v1139_v16 }
 0x57f   :  { %v1167_v18 = vmul.f32 1.442695, %v1157_v17 }
 0x580   :  { %v1142_v19 = vpop.xlane.xlu0 %1141 }
 0x581   :  { %8743 = vpow2.f32 %v1167_v18  ;;  %v1158_v20 = vsub.f32 %v832_v42, %v1142_v19  ;;  %v1145_v21 = vpop.xlane.xlu1 %1144 }
 0x582   :  { %v1159_v22 = vsub.f32 %v906_v45, %v1145_v21 }
 0x583   :  { %v1169_v23 = vmul.f32 1.442695, %v1158_v20 }
 0x584   :  { %v1171_v24 = vmul.f32 1.442695, %v1159_v22 }
 0x585   :  { %8745 = vpow2.f32 %v1169_v23  ;;  %v1148_v25 = vpop.xlane.xlu0 %1147 }
 0x586   :  { %8747 = vpow2.f32 %v1171_v24  ;;  %v1160_v27 = vsub.f32 %v980_v51, %v1148_v25  ;;  %v239_v25 = vld [vmem:[#allocation2 + $0x60] sm:$0xff] }
 0x588   :  { %v1173_v28 = vmul.f32 1.442695, %v1160_v27  ;;  %v240_v27 = vld [vmem:[#allocation2 + $0x68] sm:$0xff] }
 0x58a   :  { %8749 = vpow2.f32 %v1173_v28  ;;  %v241_v28 = vld [vmem:[#allocation2 + $0x70] sm:$0xff] }
 0x58b   :  { %v8744_v29 = vpop.eup %8743 }
 0x58c   :  { %v1185_v30 = vsel %vm538_vm5, %v8744_v29, 0.0 }
 0x58d   :  { %1186 = vadd.xlane.f32.xlu1 %v1185_v30  ;;  %v242_v30 = vld [vmem:[#allocation2 + $0x78] sm:$0xff] }
 0x58f   :  { %v8746_v32 = vpop.eup %8745 }
 0x590   :  { %v8748_v33 = vpop.eup %8747  ;;  %v1151_v34 = vpop.xlane.xlu1 %1150  ;;  %v1188_v35 = vsel %vm538_vm5, %v8746_v32, 0.0 }
 0x591   :  { %v1161_v36 = vsub.f32 %v1054_v58, %v1151_v34  ;;  %1189 = vadd.xlane.f32.xlu0 %v1188_v35  ;;  %v1154_v37 = vpop.xlane.xlu0 %1153  ;;  %v1191_v38 = vsel %vm538_vm5, %v8748_v33, 0.0 }
 0x592   :  { %v1162_v39 = vsub.f32 %v1128_v61, %v1154_v37  ;;  %1192 = vadd.xlane.f32.xlu1 %v1191_v38 }
 0x593   :  { %v1175_v40 = vmul.f32 1.442695, %v1161_v36 }
 0x594   :  { %v8750_v41 = vpop.eup %8749  ;;  %v1177_v42 = vmul.f32 1.442695, %v1162_v39  ;;  %v521_v48 = vpop.permute.xlu1 %520 }
 0x595   :  { %8751 = vpow2.f32 %v1175_v40  ;;  %v1194_v43 = vsel %vm538_vm5, %v8750_v41, 0.0  ;;  %v523_v49 = vpop.permute.xlu0 %522 }
 0x596   :  { %8753 = vpow2.f32 %v1177_v42  ;;  %1195 = vadd.xlane.f32.xlu0 %v1194_v43 }
 0x598   :  { %v527_v51 = vpop.permute.xlu1 %526 }
 0x59c   :  { %v529_v56 = vpop.permute.xlu1 %528 }
 0x59f   :  { %v9238_v44 = vpop.eup %8751 }
 0x5a0   :  { %v9240_v45 = vpop.eup %8753  ;;  %v1197_v46 = vsel %vm538_vm5, %v9238_v44, 0.0 }
 0x5a1   :  { %1198 = vadd.xlane.f32.xlu1 %v1197_v46  ;;  %v1200_v47 = vsel %vm538_vm5, %v9240_v45, 0.0 }
 0x5a2   :  { %1201 = vadd.xlane.f32.xlu0 %v1200_v47 }
 0x5b2   :  { %534 = vrot.lane.b32.xlu1 %v9138_v5, %s8976_s23 }
 0x5b8   :  { %532 = vrot.lane.b32.xlu0 %v9140_v6, %s8976_s23 }
 0x5c6   :  { %v1184_v55 = vpop.xlane.xlu0 %1183 }
 0x5c7   :  { %8755 = vrcp.f32 %v1184_v55 }
 0x5cd   :  { %v1181_v57 = vpop.xlane.xlu1 %1180 }
 0x5ce   :  { %8757 = vrcp.f32 %v1181_v57 }
 0x5d1   :  { %v8756_v58 = vpop.eup %8755 }
 0x5d2   :  { %v1212_v59 = vmul.f32 %v8756_v58, %v8740_v12 }
 0x5d4   :  { %8066 = vmatmul.mubr.msk.f32.vlgmr.msra.gmra.mrb[16].mxu0 %vm538_vm5, %v1212_v59 }
 0x5d5   :  { %8074 = vmatpush3.msra.mxu0 %v523_v49  ;;  %8075 = vmatprep.mubr.msk.f32.mxu0 %vm8973_vm4, %v8972_v9 }
 0x5d6   :  { %8083 = vmatprep.subr.mxu0 %v8972_v9 }
 0x5d8   :  { %v8758_v5 = vpop.eup %8757 }
 0x5d9   :  { %v1211_v6 = vmul.f32 %v8758_v5, %v8742_v14 }
 0x5db   :  { %8061 = vmatmul.mubr.msk.f32.vlgmr.msra.gmra.mrb[8].mxu1 %vm538_vm5, %v1211_v6 }
 0x5dc   :  { %8069 = vmatpush3.msra.mxu1 %v521_v48  ;;  %8070 = vmatprep.mubr.msk.f32.mxu1 %vm8973_vm4, %v8972_v9 }
 0x5dd   :  { %8078 = vmatprep.subr.mxu1 %v8972_v9 }
 0x61a   :  { %v1187_v60 = vpop.xlane.xlu1 %1186 }
 0x61b   :  { %8759 = vrcp.f32 %v1187_v60 }
 0x61e   :  { %v1190_v61 = vpop.xlane.xlu0 %1189 }
 0x61f   :  { %8761 = vrcp.f32 %v1190_v61  ;;  %v1193_v63 = vpop.xlane.xlu1 %1192 }
 0x620   :  { %8763 = vrcp.f32 %v1193_v63 }
 0x623   :  { %v1196_v0 = vpop.xlane.xlu0 %1195 }
 0x624   :  { %8765 = vrcp.f32 %v1196_v0 }
 0x625   :  { %v8760_v1 = vpop.eup %8759 }
 0x626   :  { %v1213_v3 = vmul.f32 %v8760_v1, %v8744_v29  ;;  %v8569_v29 = vpack.c.bf16 %v240_v27, %v239_v25  ;;  %v245_v25 = vld [vmem:[#allocation5 + $0x10] sm:$0xff]  ;;  %v246_v27 = vld [vmem:[#allocation5 + $0x18] sm:$0xff] }
 0x628   :  { %8071 = vmatmul.mubr.msk.f32.vlgmr.msra.gmra.mrb[10].mxu1 %vm538_vm5, %v1213_v3 }
 0x629   :  { %v8762_v4 = vpop.eup %8761  ;;  %8079 = vmatpush3.msra.mxu1 %v527_v51  ;;  %8080 = vmatprep.mubr.msk.f32.mxu1 %vm8973_vm4, %v8972_v9 }
 0x62a   :  { %v8764_v7 = vpop.eup %8763  ;;  %v1214_v8 = vmul.f32 %v8762_v4, %v8746_v32  ;;  %8088 = vmatprep.subr.mxu1 %v8972_v9  ;;  %v8573_v32 = vpack.c.bf16 %v242_v30, %v241_v28  ;;  %v8581_v28 = vpack.c.bf16 %v246_v27, %v245_v25  ;;  %v252_v30 = vld [vmem:[#allocation5 + $0x48] sm:$0xff] }
 0x62b   :  { %v1215_v10 = vmul.f32 %v8764_v7, %v8748_v33 }
 0x62c   :  { %8076 = vmatmul.mubr.msk.f32.vlgmr.msra.gmra.mrb[18].mxu0 %vm538_vm5, %v1214_v8 }
 0x62d   :  { %8084 = vmatpush3.msra.mxu0 %v529_v56  ;;  %8081 = vmatmul.mubr.msk.f32.vlgmr.msra.gmra.mrb[12].mxu1 %vm538_vm5, %v1215_v10 }
 0x62e   :  { %v8766_v11 = vpop.eup %8765  ;;  %v1199_v12 = vpop.xlane.xlu1 %1198  ;;  %8085 = vmatprep.mubr.msk.f32.mxu0 %vm8973_vm4, %v8972_v9  ;;  %8093 = vmatprep.subr.mxu0 %v8972_v9 }
 0x62f   :  { %8767 = vrcp.f32 %v1199_v12  ;;  %v1202_v13 = vpop.xlane.xlu0 %1201  ;;  %v1216_v14 = vmul.f32 %v8766_v11, %v8750_v41  ;;  %8090 = vmatprep.mubr.msk.f32.mxu1 %vm8973_vm4, %v8972_v9 }
 0x630   :  { %8769 = vrcp.f32 %v1202_v13 }
 0x631   :  { %8086 = vmatmul.mubr.msk.f32.vlgmr.msra.gmra.mrb[20].mxu0 %vm538_vm5, %v1216_v14 }
 0x632   :  { %v535_v15 = vpop.permute.xlu1 %534  ;;  %8095 = vmatprep.mubr.msk.f32.mxu0 %vm8973_vm4, %v8972_v9 }
 0x633   :  { %8094 = vmatpush3.msra.mxu0 %v535_v15  ;;  %v533_v16 = vpop.permute.xlu0 %532  ;;  %v248_v15 = vld [vmem:[#allocation5 + $0x28] sm:$0xff] }
 0x634   :  { %8089 = vmatpush3.msra.mxu1 %v533_v16 }
 0x635   :  { %8570 = vmatprep.subr.bf16.mxu1 %v8569_v29 }
 0x639   :  { %v8768_v17 = vpop.eup %8767 }
 0x63a   :  { %v8770_v18 = vpop.eup %8769  ;;  %v1217_v19 = vmul.f32 %v8768_v17, %v9238_v44  ;;  %v249_v17 = vld [vmem:[#allocation5 + $0x30] sm:$0xff] }
 0x63b   :  { %v1218_v20 = vmul.f32 %v8770_v18, %v9240_v45  ;;  %v250_v18 = vld [vmem:[#allocation5 + $0x38] sm:$0xff] }
 0x63c   :  { %8091 = vmatmul.mubr.msk.f32.vlgmr.msra.gmra.mrb[14].mxu1 %vm538_vm5, %v1217_v19  ;;  %v8589_v19 = vpack.c.bf16 %v250_v18, %v249_v17 }
 0x63d   :  { %8096 = vmatmul.mubr.msk.f32.vlgmr.msra.gmra.mrb[22].mxu0 %vm538_vm5, %v1218_v20  ;;  %8572 = vmatpush3.bf16.msra.mxu1 %v8569_v29  ;;  %v213_v20 = vld [vmem:[%s9987_s3] sm:$0xff]  ;;  %v251_v29 = vld [vmem:[#allocation5 + $0x40] sm:$0xff] }
 0x63e   :  { %8574 = vmatprep.subr.bf16.mxu1 %v8573_v32 }
 0x641   :  { %8576 = vmatpush3.bf16.msra.mxu1 %v8573_v32  ;;  %v8593_v32 = vpack.c.bf16 %v252_v30, %v251_v29 }
 0x6a7   :  { %v1361_v21 = vpop.f32.mrb[16].mxu0 }
 0x6a8   :  { %v8067_v22 = vpop.f32.mrb[17].mxu0 }
 0x6a9   :  { %v243_v22 = vld [vmem:[#allocation5] sm:$0xff] }
 0x6ae   :  { %v1288_v23 = vpop.f32.mrb[8].mxu1 }
 0x6af   :  { %v8062_v24 = vpop.f32.mrb[9].mxu1 }
 0x6fb   :  { %v1434_v33 = vpop.f32.mrb[10].mxu1 }
 0x6fc   :  { %v8072_v34 = vpop.f32.mrb[11].mxu1  ;;  %1805 = vrot.lane.b32.xlu0 %v1434_v33, %s8969_s14 }
 0x6ff   :  { %v1507_v35 = vpop.f32.mrb[18].mxu0 }
 0x700   :  { %v1580_v36 = vpop.f32.mrb[12].mxu1  ;;  %1807 = vrot.lane.b32.xlu1 %v1507_v35, %s8969_s14  ;;  %v8077_v37 = vpop.f32.mrb[19].mxu0 }
 0x701   :  { %v8082_v38 = vpop.f32.mrb[13].mxu1  ;;  %1813 = vrot.lane.b32.xlu0 %v1580_v36, %s8977_s4 }
 0x704   :  { %v1653_v39 = vpop.f32.mrb[20].mxu0 }
 0x705   :  { %1815 = vrot.lane.b32.xlu1 %v1653_v39, %s8977_s4  ;;  %v8087_v40 = vpop.f32.mrb[21].mxu0  ;;  %v1943_v39 = vsub.s32 2, %v9101_v50 }
 0x706   :  { %v1949_v40 = vsub.s32 3, %v9101_v50 }
 0x70f   :  { %v1726_v41 = vpop.f32.mrb[14].mxu1 }
 0x710   :  { %1821 = vrot.lane.b32.xlu0 %v1726_v41, %s8978_s7  ;;  %v8092_v42 = vpop.f32.mrb[15].mxu1  ;;  %v1799_v43 = vpop.f32.mrb[22].mxu0  ;;  %v1944_v41 = vrot.slane %v9109_v53, %v1943_v39 }
 0x711   :  { %1823 = vrot.lane.b32.xlu1 %v1799_v43, %s8978_s7  ;;  %v8097_v44 = vpop.f32.mrb[23].mxu0 }
 0x712   :  { %v1950_v44 = vrot.slane %v9109_v53, %v1949_v40 }
 0x76e   :  { %v1806_v45 = vpop.permute.xlu0 %1805 }
 0x76f   :  { %v1827_v49 = vsel %vm538_vm5, %v1288_v23, %v1806_v45  ;;  %v244_v23 = vld [vmem:[#allocation5 + $0x8] sm:$0xff] }
 0x770   :  { %v8577_v24 = vpack.c.bf16 %v244_v23, %v243_v22 }
 0x772   :  { %v1808_v46 = vpop.permute.xlu1 %1807  ;;  %8578 = vmatprep.subr.bf16.mxu0 %v8577_v24 }
 0x773   :  { %v1814_v47 = vpop.permute.xlu0 %1813  ;;  %v1828_v51 = vsel %vm538_vm5, %v1361_v21, %v1808_v46  ;;  %v214_v21 = vld [vmem:[%s9987_s3 + $0x8] sm:$0xff]  ;;  %8580 = vmatpush3.bf16.msra.mxu0 %v8577_v24 }
 0x774   :  { %v1829_v55 = vsel %vm89_vm0, %v1827_v49, %v1814_v47  ;;  %8582 = vmatprep.subr.bf16.mxu0 %v8581_v28  ;;  %v253_v49 = vld [vmem:[#allocation5 + $0x50] sm:$0xff] }
 0x777   :  { %v1816_v48 = vpop.permute.xlu1 %1815  ;;  %8584 = vmatpush3.bf16.msra.mxu0 %v8581_v28 }
 0x778   :  { %v1830_v57 = vsel %vm89_vm0, %v1828_v51, %v1816_v48  ;;  %8594 = vmatprep.subr.bf16.mxu0 %v8593_v32  ;;  %v254_v51 = vld [vmem:[#allocation5 + $0x58] sm:$0xff] }
 0x782   :  { %v1822_v56 = vpop.permute.xlu0 %1821 }
 0x783   :  { %v1832_v58 = vsel %vm1831_vm6, %v1829_v55, %v1822_v56  ;;  %v1824_v59 = vpop.permute.xlu1 %1823 }
 0x784   :  { %v1833_v5 = vsel %vm1831_vm6, %v1830_v57, %v1824_v59  ;;  %8106 = vmatprep.mubr.msk.f32.mxu1 %vm173_vm3, %v1832_v58  ;;  %v8597_v57 = vpack.c.bf16 %v254_v51, %v253_v49 }
 0x785   :  { %8107 = vmatmul.mubr.msk.f32.vlgmr.msra.gmra.mrb[16].mxu1 %vm173_vm3, %v1833_v5 }
 0x786   :  { %8128 = vmatprep.mubr.msk.f32.mxu1 %vm173_vm3, %v213_v20 }
 0x858   :  { %v8108_v6 = vpop.f32.mrb[16].mxu1 }
 0x859   :  { %v1912_v60 = vadd.f32 %v8108_v6, %v9123_v2  ;;  %v1906_v61 = vpop.f32.mrb[17].mxu1 }
 0x85a   :  { %v1907_v63 = vadd.f32 %v1906_v61, %v9117_v62  ;;  %v247_v62 = vld [vmem:[#allocation5 + $0x20] sm:$0xff] }
 0x85b   :  { %v1918_v0 = vsel %vm173_vm3, %v1912_v60, 0.0  ;;  %v8585_v16 = vpack.c.bf16 %v248_v15, %v247_v62 }
 0x85c   :  { %1919 = vadd.xlane.f32.xlu1 %v1918_v0  ;;  %v1915_v1 = vsel %vm173_vm3, %v1907_v63, 0.0 }
 0x85d   :  { %1916 = vadd.xlane.f32.xlu0 %v1915_v1  ;;  %8586 = vmatprep.subr.bf16.mxu1 %v8585_v16 }
 0x85e   :  { %8588 = vmatpush3.bf16.msra.mxu1 %v8585_v16 }
 0x85f   :  { %8590 = vmatprep.subr.bf16.mxu1 %v8589_v19 }
 0x862   :  { %8592 = vmatpush3.bf16.msra.mxu1 %v8589_v19 }
 0x863   :  { %8142 = vmatprep.subr.mxu1 %v8972_v9 }
 0x865   :  { %8129 = vmatmul.mubr.msk.f32.vlgmr.msra.gmra.mrb[18].mxu1 %vm173_vm3, %v214_v21 }
 0x866   :  { %8144 = vmatprep.mubr.msk.f32.mxu1 %vm8973_vm4, %v8972_v9 }
 0x8e9   :  { %v1920_v3 = vpop.xlane.xlu1 %1919 }
 0x8ea   :  { %v1922_v4 = vmul.f32 0.03125, %v1920_v3  ;;  %v1917_v7 = vpop.xlane.xlu0 %1916 }
 0x8eb   :  { %v1921_v8 = vmul.f32 0.03125, %v1917_v7 }
 0x8ec   :  { %v1924_v10 = vsub.f32 %v1912_v60, %v1922_v4 }
 0x8ed   :  { %v1923_v11 = vsub.f32 %v1907_v63, %v1921_v8 }
 0x8ee   :  { %v1926_v14 = vmul.f32 %v1924_v10, %v1924_v10 }
 0x8ef   :  { %v1925_v12 = vmul.f32 %v1923_v11, %v1923_v11 }
 0x8f0   :  { %v1930_v2 = vsel %vm173_vm3, %v1926_v14, 0.0  ;;  %v222_v14 = vld [vmem:[%s9989_s5 + $0x1] sm:$0x1] }
 0x8f1   :  { %v1927_v13 = vsel %vm173_vm3, %v1925_v12, 0.0  ;;  %v7566_v62 = vadd.f32 -1.0, %v222_v14 }
 0x8f2   :  { %1928 = vadd.xlane.f32.xlu0 %v1927_v13 }
 0x8f3   :  { %v226_v16 = vmul.f32 1e+09, %v7566_v62 }
 0x8f5   :  { %v9395_v18 = vrot.slane %v226_v16, %v9104_v52 }
 0x8f6   :  { %1931 = vadd.xlane.f32.xlu0 %v1930_v2  ;;  %v221_v2 = vld [vmem:[%s9989_s5] sm:$0x1] }
 0x8f7   :  { %v7565_v15 = vadd.f32 -1.0, %v221_v2 }
 0x8f9   :  { %v225_v17 = vmul.f32 1e+09, %v7565_v15 }
 0x8fb   :  { %v9398_v19 = vrot.slane %v225_v17, %v9104_v52 }
 0x938   :  { %v8130_v53 = vpop.f32.mrb[18].mxu1 }
 0x939   :  { %2208 = vrot.lane.b32.xlu0 %v8130_v53, %s8974_s20  ;;  %v2106_v58 = vpop.f32.mrb[19].mxu1 }
 0x93a   :  { %2206 = vrot.lane.b32.xlu1 %v2106_v58, %s8974_s20  ;;  %8143 = vmatpush3.xpose.msk.msra.mxu1 %vm538_vm5, %v2106_v58 }
 0x93b   :  { %8152 = vmatprep.subr.mxu1 %v8972_v9 }
 0x93d   :  { %2210 = vrot.lane.b32.xlu0 %v2106_v58, %s8975_s21 }
 0x93e   :  { %2212 = vrot.lane.b32.xlu1 %v8130_v53, %s8975_s21 }
 0x941   :  { %2214 = vrot.lane.b32.xlu0 %v2106_v58, %s8976_s23 }
 0x97f   :  { %v1929_v33 = vpop.xlane.xlu0 %1928 }
 0x980   :  { %v1933_v34 = vmul.f32 0.03125, %v1929_v33 }
 0x982   :  { %v1935_v35 = vadd.f32 1e-06, %v1933_v34 }
 0x983   :  { %v1932_v36 = vpop.xlane.xlu0 %1931 }
 0x984   :  { %8771 = vrsqrt.f32 %v1935_v35  ;;  %v1934_v37 = vmul.f32 0.03125, %v1932_v36 }
 0x986   :  { %v1936_v38 = vadd.f32 1e-06, %v1934_v37 }
 0x988   :  { %8773 = vrsqrt.f32 %v1936_v38 }
 0x98e   :  { %v8772_v42 = vpop.eup %8771 }
 0x98f   :  { %v1939_v43 = vmul.f32 %v8772_v42, %v1923_v11 }
 0x991   :  { %v1945_v45 = vmul.f32 %v1944_v41, %v1939_v43 }
 0x992   :  { %v8774_v46 = vpop.eup %8773 }
 0x993   :  { %v1940_v47 = vmul.f32 %v8774_v46, %v1924_v10  ;;  %v9315_v48 = vadd.f32 %v1950_v44, %v1945_v45 }
 0x995   :  { %v1946_v55 = vmul.f32 %v1944_v41, %v1940_v47  ;;  %8117 = vmatprep.mubr.msk.f32.mxu0 %vm173_vm3, %v9315_v48 }
 0x997   :  { %v9319_v56 = vadd.f32 %v1950_v44, %v1946_v55 }
 0x999   :  { %8118 = vmatmul.mubr.msk.f32.vlgmr.msra.gmra.mrb[24].mxu0 %vm173_vm3, %v9319_v56 }
 0x99a   :  { %8596 = vmatpush3.bf16.msra.mxu0 %v8593_v32  ;;  %8139 = vmatprep.mubr.msk.f32.mxu0 %vm173_vm3, %v213_v20 }
 0x99b   :  { %8598 = vmatprep.subr.bf16.mxu0 %v8597_v57 }
 0x99e   :  { %8600 = vmatpush3.bf16.msra.mxu0 %v8597_v57 }
 0x99f   :  { %8147 = vmatprep.subr.mxu0 %v8972_v9 }
 0x9a1   :  { %8140 = vmatmul.mubr.msk.f32.vlgmr.msra.gmra.mrb[26].mxu0 %vm173_vm3, %v214_v21 }
 0x9a2   :  { %8149 = vmatprep.mubr.msk.f32.mxu0 %vm8973_vm4, %v8972_v9 }
 0x9a7   :  { %8148 = vmatpush3.xpose.msk.msra.mxu0 %vm538_vm5, %v8130_v53 }
 0x9a8   :  { %8157 = vmatprep.subr.mxu0 %v8972_v9 }
 0x9ab   :  { %v2209_v6 = vpop.permute.xlu0 %2208 }
 0x9ac   :  { %v2207_v60 = vpop.permute.xlu1 %2206 }
 0x9af   :  { %v2211_v0 = vpop.permute.xlu0 %2210 }
 0x9b0   :  { %v2213_v1 = vpop.permute.xlu1 %2212 }
 0x9b3   :  { %v2215_v4 = vpop.permute.xlu0 %2214 }
 0xa6c   :  { %v8119_v59 = vpop.f32.mrb[24].mxu0 }
 0xa6d   :  { %2194 = vrot.lane.b32.xlu1 %v8119_v59, %s8974_s20  ;;  %v2025_v5 = vpop.f32.mrb[25].mxu0  ;;  %8150 = vmatmul.mubr.msk.f32.vlgmr.msra.gmra.mrb[28].mxu0 %vm538_vm5, %v8119_v59 }
 0xa6e   :  { %2196 = vrot.lane.b32.xlu0 %v2025_v5, %s8975_s21  ;;  %8145 = vmatmul.mubr.msk.f32.vlgmr.msra.gmra.mrb[20].mxu1 %vm538_vm5, %v2025_v5 }
 0xa6f   :  { %8153 = vmatpush3.xpose.msk.msra.mxu1 %vm538_vm5, %v2207_v60  ;;  %8158 = vmatpush3.xpose.msk.msra.mxu0 %vm538_vm5, %v2209_v6 }
 0xa70   :  { %8159 = vmatprep.mubr.msk.f32.mxu0 %vm8973_vm4, %v8972_v9  ;;  %8167 = vmatprep.subr.mxu0 %v8972_v9 }
 0xa71   :  { %2192 = vrot.lane.b32.xlu1 %v2025_v5, %s8974_s20  ;;  %8154 = vmatprep.mubr.msk.f32.mxu1 %vm8973_vm4, %v8972_v9 }
 0xa72   :  { %2200 = vrot.lane.b32.xlu0 %v2025_v5, %s8976_s23  ;;  %8162 = vmatprep.subr.mxu1 %v8972_v9 }
 0xa74   :  { %v9351_v61 = vpop.f32.mrb[26].mxu0 }
 0xa75   :  { %2198 = vrot.lane.b32.xlu1 %v8119_v59, %s8975_s21  ;;  %v9354_v63 = vpop.f32.mrb[27].mxu0 }
 0xa79   :  { %2216 = vrot.lane.b32.xlu1 %v8130_v53, %s8976_s23 }
 0xa7d   :  { %2202 = vrot.lane.b32.xlu1 %v8119_v59, %s8976_s23 }
 0xadf   :  { %v2195_v3 = vpop.permute.xlu1 %2194 }
 0xae0   :  { %8160 = vmatmul.mubr.msk.f32.vlgmr.msra.gmra.mrb[30].mxu0 %vm538_vm5, %v2195_v3  ;;  %v2197_v8 = vpop.permute.xlu0 %2196 }
 0xae1   :  { %8168 = vmatpush3.xpose.msk.msra.mxu0 %vm538_vm5, %v2213_v1  ;;  %8169 = vmatprep.mubr.msk.f32.mxu0 %vm8973_vm4, %v8972_v9 }
 0xae2   :  { %8177 = vmatprep.subr.mxu0 %v8972_v9 }
 0xae3   :  { %v2193_v7 = vpop.permute.xlu1 %2192 }
 0xae4   :  { %8155 = vmatmul.mubr.msk.f32.vlgmr.msra.gmra.mrb[22].mxu1 %vm538_vm5, %v2193_v7  ;;  %v2201_v11 = vpop.permute.xlu0 %2200 }
 0xae5   :  { %8163 = vmatpush3.xpose.msk.msra.mxu1 %vm538_vm5, %v2211_v0  ;;  %8164 = vmatprep.mubr.msk.f32.mxu1 %vm8973_vm4, %v8972_v9 }
 0xae6   :  { %8172 = vmatprep.subr.mxu1 %v8972_v9 }
 0xae7   :  { %v2199_v10 = vpop.permute.xlu1 %2198 }
 0xae8   :  { %8165 = vmatmul.mubr.msk.f32.vlgmr.msra.gmra.mrb[24].mxu1 %vm538_vm5, %v2197_v8  ;;  %8170 = vmatmul.mubr.msk.f32.vlgmr.msra.gmra.mrb[32].mxu0 %vm538_vm5, %v2199_v10 }
 0xae9   :  { %8173 = vmatpush3.xpose.msk.msra.mxu1 %vm538_vm5, %v2215_v4  ;;  %8174 = vmatprep.mubr.msk.f32.mxu1 %vm8973_vm4, %v8972_v9 }
 0xaea   :  { %8179 = vmatprep.mubr.msk.f32.mxu0 %vm8973_vm4, %v8972_v9  ;;  %8182 = vmatprep.subr.mxu1 %v8972_v9 }
 0xaeb   :  { %v2217_v12 = vpop.permute.xlu1 %2216 }
 0xaec   :  { %8175 = vmatmul.mubr.msk.f32.vlgmr.msra.gmra.mrb[26].mxu1 %vm538_vm5, %v2201_v11  ;;  %8178 = vmatpush3.xpose.msk.msra.mxu0 %vm538_vm5, %v2217_v12 }
 0xaed   :  { %8187 = vmatprep.subr.mxu0 %v8972_v9  ;;  %8183 = vmatpush3.msra.mxu1 %v9354_v63 }
 0xaee   :  { %8184 = vmatprep.mubr.msk.f32.mxu1 %vm8973_vm4, %v8972_v9  ;;  %8192 = vmatprep.subr.mxu1 %v8972_v9 }
 0xaef   :  { %v2203_v13 = vpop.permute.xlu1 %2202 }
 0xaf0   :  { %8180 = vmatmul.mubr.msk.f32.vlgmr.msra.gmra.mrb[34].mxu0 %vm538_vm5, %v2203_v13 }
 0xaf1   :  { %8188 = vmatpush3.msra.mxu0 %v9351_v61  ;;  %8189 = vmatprep.mubr.msk.f32.mxu0 %vm8973_vm4, %v8972_v9 }
 0xaf2   :  { %8197 = vmatprep.subr.mxu0 %v8972_v9 }
 0xb40   :  { %v2394_v20 = vpop.f32.mrb[28].mxu0 }
 0xb41   :  { %v2395_v21 = vadd.f32 %v2394_v20, %v9395_v18  ;;  %v2320_v22 = vpop.f32.mrb[20].mxu1  ;;  %v8151_v23 = vpop.f32.mrb[29].mxu0 }
 0xb42   :  { %v2321_v24 = vadd.f32 %v2320_v22, %v9398_v19  ;;  %v8146_v25 = vpop.f32.mrb[21].mxu1 }
 0xb43   :  { %v2845_v27 = vsel %vm538_vm5, %v2395_v21, -inf }
 0xb44   :  { %2846 = vmax.xlane.f32.xlu1 %v2845_v27  ;;  %v2842_v28 = vsel %vm538_vm5, %v2321_v24, -inf }
 0xb45   :  { %2843 = vmax.xlane.f32.xlu0 %v2842_v28 }
 0xbb3   :  { %v2542_v29 = vpop.f32.mrb[30].mxu0 }
 0xbb4   :  { %v8161_v30 = vpop.f32.mrb[31].mxu0  ;;  %v2543_v35 = vadd.f32 %v2542_v29, %v9395_v18 }
 0xbb6   :  { %v2851_v46 = vsel %vm538_vm5, %v2543_v35, -inf }
 0xbb7   :  { %v2468_v32 = vpop.f32.mrb[22].mxu1 }
 0xbb8   :  { %v2469_v33 = vadd.f32 %v2468_v32, %v9398_v19  ;;  %v8156_v34 = vpop.f32.mrb[23].mxu1 }
 0xbba   :  { %v2848_v36 = vsel %vm538_vm5, %v2469_v33, -inf }
 0xbbb   :  { %2849 = vmax.xlane.f32.xlu0 %v2848_v36  ;;  %v2616_v37 = vpop.f32.mrb[24].mxu1  ;;  %v2690_v38 = vpop.f32.mrb[32].mxu0 }
 0xbbc   :  { %v2617_v41 = vadd.f32 %v2616_v37, %v9398_v19  ;;  %v8166_v42 = vpop.f32.mrb[25].mxu1  ;;  %v8171_v43 = vpop.f32.mrb[33].mxu0  ;;  %v2691_v44 = vadd.f32 %v2690_v38, %v9395_v18 }
 0xbbe   :  { %v2854_v45 = vsel %vm538_vm5, %v2617_v41, -inf  ;;  %v2857_v57 = vsel %vm538_vm5, %v2691_v44, -inf }
 0xbbf   :  { %v2764_v47 = vpop.f32.mrb[26].mxu1  ;;  %2855 = vmax.xlane.f32.xlu1 %v2854_v45  ;;  %2852 = vmax.xlane.f32.xlu0 %v2851_v46 }
 0xbc0   :  { %v2765_v49 = vadd.f32 %v2764_v47, %v9398_v19  ;;  %v8176_v51 = vpop.f32.mrb[27].mxu1 }
 0xbc2   :  { %v2860_v55 = vsel %vm538_vm5, %v2765_v49, -inf }
 0xbc3   :  { %2861 = vmax.xlane.f32.xlu1 %v2860_v55  ;;  %2858 = vmax.xlane.f32.xlu0 %v2857_v57  ;;  %v2838_v53 = vpop.f32.mrb[34].mxu0 }
 0xbc4   :  { %v2839_v58 = vadd.f32 %v2838_v53, %v9395_v18  ;;  %v8181_v59 = vpop.f32.mrb[35].mxu0 }
 0xbc6   :  { %v2863_v5 = vsel %vm538_vm5, %v2839_v58, -inf }
 0xbc7   :  { %2864 = vmax.xlane.f32.xlu0 %v2863_v5 }
 0xbd1   :  { %v2847_v6 = vpop.xlane.xlu1 %2846 }
 0xbd2   :  { %v2867_v60 = vsub.f32 %v2395_v21, %v2847_v6  ;;  %v2844_v0 = vpop.xlane.xlu0 %2843 }
 0xbd3   :  { %v2866_v3 = vsub.f32 %v2321_v24, %v2844_v0 }
 0xbd4   :  { %2220 = vrot.lane.b32.xlu1 %v9354_v63, %s8974_s20  ;;  %v2876_v1 = vmul.f32 1.442695, %v2867_v60 }
 0xbd5   :  { %v2874_v4 = vmul.f32 1.442695, %v2866_v3 }
 0xbd6   :  { %8775 = vpow2.f32 %v2876_v1 }
 0xbd7   :  { %8777 = vpow2.f32 %v2874_v4 }
 0xbd8   :  { %2226 = vrot.lane.b32.xlu1 %v9354_v63, %s8975_s21 }
 0xbdc   :  { %2228 = vrot.lane.b32.xlu1 %v9351_v61, %s8975_s21 }
 0xbdd   :  { %2222 = vrot.lane.b32.xlu0 %v9351_v61, %s8974_s20 }
 0xbe0   :  { %v8776_v7 = vpop.eup %8775 }
 0xbe1   :  { %v2893_v8 = vsel %vm538_vm5, %v8776_v7, 0.0  ;;  %v8778_v10 = vpop.eup %8777 }
 0xbe2   :  { %v2890_v11 = vsel %vm538_vm5, %v8778_v10, 0.0 }
 0xbfc   :  { %2894 = vadd.xlane.f32.xlu0 %v2893_v8 }
 0xc00   :  { %2891 = vadd.xlane.f32.xlu1 %v2890_v11 }
 0xc48   :  { %v2850_v12 = vpop.xlane.xlu0 %2849 }
 0xc49   :  { %v2868_v13 = vsub.f32 %v2469_v33, %v2850_v12 }
 0xc4b   :  { %v2878_v14 = vmul.f32 1.442695, %v2868_v13 }
 0xc4c   :  { %v2856_v2 = vpop.xlane.xlu1 %2855  ;;  %v2853_v62 = vpop.xlane.xlu0 %2852 }
 0xc4d   :  { %8779 = vpow2.f32 %v2878_v14  ;;  %v2870_v15 = vsub.f32 %v2617_v41, %v2856_v2  ;;  %v2869_v16 = vsub.f32 %v2543_v35, %v2853_v62 }
 0xc4f   :  { %v2882_v17 = vmul.f32 1.442695, %v2870_v15  ;;  %v2880_v20 = vmul.f32 1.442695, %v2869_v16 }
 0xc50   :  { %v2862_v21 = vpop.xlane.xlu1 %2861  ;;  %v2859_v22 = vpop.xlane.xlu0 %2858 }
 0xc51   :  { %8781 = vpow2.f32 %v2882_v17  ;;  %v2872_v23 = vsub.f32 %v2765_v49, %v2862_v21  ;;  %v2871_v24 = vsub.f32 %v2691_v44, %v2859_v22 }
 0xc52   :  { %8783 = vpow2.f32 %v2880_v20 }
 0xc53   :  { %v2886_v25 = vmul.f32 1.442695, %v2872_v23  ;;  %v2884_v27 = vmul.f32 1.442695, %v2871_v24  ;;  %v255_v24 = vld [vmem:[#allocation5 + $0x60] sm:$0xff] }
 0xc54   :  { %v2865_v28 = vpop.xlane.xlu0 %2864  ;;  %v2221_v46 = vpop.permute.xlu1 %2220 }
 0xc55   :  { %8785 = vpow2.f32 %v2886_v25  ;;  %v2873_v29 = vsub.f32 %v2839_v58, %v2865_v28  ;;  %v256_v25 = vld [vmem:[#allocation5 + $0x68] sm:$0xff]  ;;  %v257_v28 = vld [vmem:[#allocation5 + $0x70] sm:$0xff] }
 0xc56   :  { %8787 = vpow2.f32 %v2884_v27  ;;  %v8601_v27 = vpack.c.bf16 %v256_v25, %v255_v24  ;;  %v3670_v24 = vld [vmem:[%s9994_s10 + $0x10] sm:$0xff] }
 0xc57   :  { %v8780_v30 = vpop.eup %8779  ;;  %v2888_v32 = vmul.f32 1.442695, %v2873_v29  ;;  %v258_v29 = vld [vmem:[#allocation5 + $0x78] sm:$0xff] }
 0xc58   :  { %v2896_v33 = vsel %vm538_vm5, %v8780_v30, 0.0  ;;  %v2227_v47 = vpop.permute.xlu1 %2226  ;;  %v2223_v49 = vpop.permute.xlu0 %2222 }
 0xc59   :  { %8789 = vpow2.f32 %v2888_v32  ;;  %2897 = vadd.xlane.f32.xlu1 %v2896_v33 }
 0xc5b   :  { %v8782_v34 = vpop.eup %8781 }
 0xc5c   :  { %v8784_v35 = vpop.eup %8783  ;;  %v2902_v36 = vsel %vm538_vm5, %v8782_v34, 0.0  ;;  %v2229_v51 = vpop.permute.xlu1 %2228 }
 0xc5d   :  { %2903 = vadd.xlane.f32.xlu1 %v2902_v36  ;;  %v2899_v37 = vsel %vm538_vm5, %v8784_v35, 0.0 }
 0xc5e   :  { %2900 = vadd.xlane.f32.xlu0 %v2899_v37 }
 0xc5f   :  { %v8786_v38 = vpop.eup %8785 }
 0xc60   :  { %v9429_v41 = vpop.eup %8787  ;;  %v2908_v42 = vsel %vm538_vm5, %v8786_v38, 0.0 }
 0xc61   :  { %2909 = vadd.xlane.f32.xlu1 %v2908_v42  ;;  %v2905_v43 = vsel %vm538_vm5, %v9429_v41, 0.0 }
 0xc62   :  { %2906 = vadd.xlane.f32.xlu0 %v2905_v43 }
 0xc63   :  { %v9434_v44 = vpop.eup %8789 }
 0xc64   :  { %v2911_v45 = vsel %vm538_vm5, %v9434_v44, 0.0 }
 0xc66   :  { %2912 = vadd.xlane.f32.xlu0 %v2911_v45 }
 0xc72   :  { %2234 = vrot.lane.b32.xlu1 %v9351_v61, %s8976_s23 }
 0xc7c   :  { %2232 = vrot.lane.b32.xlu0 %v9354_v63, %s8976_s23 }
 0xc89   :  { %v2895_v55 = vpop.xlane.xlu0 %2894 }
 0xc8a   :  { %8791 = vrcp.f32 %v2895_v55 }
 0xc8d   :  { %v2892_v57 = vpop.xlane.xlu1 %2891 }
 0xc8e   :  { %8793 = vrcp.f32 %v2892_v57 }
 0xc94   :  { %v8792_v53 = vpop.eup %8791 }
 0xc95   :  { %v2923_v58 = vmul.f32 %v8792_v53, %v8776_v7 }
 0xc97   :  { %8190 = vmatmul.mubr.msk.f32.vlgmr.msra.gmra.mrb[36].mxu0 %vm538_vm5, %v2923_v58 }
 0xc98   :  { %v8794_v59 = vpop.eup %8793  ;;  %8198 = vmatpush3.msra.mxu0 %v2223_v49  ;;  %8199 = vmatprep.mubr.msk.f32.mxu0 %vm8973_vm4, %v8972_v9 }
 0xc99   :  { %v2922_v61 = vmul.f32 %v8794_v59, %v8778_v10  ;;  %8207 = vmatprep.subr.mxu0 %v8972_v9 }
 0xc9b   :  { %8185 = vmatmul.mubr.msk.f32.vlgmr.msra.gmra.mrb[28].mxu1 %vm538_vm5, %v2922_v61 }
 0xc9c   :  { %8193 = vmatpush3.msra.mxu1 %v2221_v46  ;;  %8194 = vmatprep.mubr.msk.f32.mxu1 %vm8973_vm4, %v8972_v9 }
 0xc9d   :  { %8202 = vmatprep.subr.mxu1 %v8972_v9 }
 0xce6   :  { %v2898_v63 = vpop.xlane.xlu1 %2897 }
 0xce7   :  { %8795 = vrcp.f32 %v2898_v63 }
 0xcea   :  { %v2904_v5 = vpop.xlane.xlu1 %2903 }
 0xceb   :  { %8797 = vrcp.f32 %v2904_v5  ;;  %v2901_v6 = vpop.xlane.xlu0 %2900 }
 0xcec   :  { %8799 = vrcp.f32 %v2901_v6 }
 0xcee   :  { %v2910_v60 = vpop.xlane.xlu1 %2909 }
 0xcef   :  { %8801 = vrcp.f32 %v2910_v60  ;;  %v2907_v0 = vpop.xlane.xlu0 %2906 }
 0xcf0   :  { %8803 = vrcp.f32 %v2907_v0 }
 0xcf1   :  { %v8796_v1 = vpop.eup %8795 }
 0xcf2   :  { %v2924_v3 = vmul.f32 %v8796_v1, %v8780_v30  ;;  %v2235_v15 = vpop.permute.xlu1 %2234  ;;  %v8605_v30 = vpack.c.bf16 %v258_v29, %v257_v28  ;;  %v3672_v29 = vld [vmem:[%s9994_s10 + $0x20] sm:$0xff] }
 0xcf3   :  { %v2913_v4 = vpop.xlane.xlu0 %2912 }
 0xcf4   :  { %8805 = vrcp.f32 %v2913_v4  ;;  %8195 = vmatmul.mubr.msk.f32.vlgmr.msra.gmra.mrb[30].mxu1 %vm538_vm5, %v2924_v3 }
 0xcf5   :  { %v8798_v7 = vpop.eup %8797  ;;  %8203 = vmatpush3.msra.mxu1 %v2227_v47  ;;  %8204 = vmatprep.mubr.msk.f32.mxu1 %vm8973_vm4, %v8972_v9 }
 0xcf6   :  { %v8800_v8 = vpop.eup %8799  ;;  %8212 = vmatprep.subr.mxu1 %v8972_v9  ;;  %v2926_v10 = vmul.f32 %v8798_v7, %v8782_v34 }
 0xcf7   :  { %v2233_v11 = vpop.permute.xlu0 %2232  ;;  %v2925_v12 = vmul.f32 %v8800_v8, %v8784_v35 }
 0xcf8   :  { %8205 = vmatmul.mubr.msk.f32.vlgmr.msra.gmra.mrb[32].mxu1 %vm538_vm5, %v2926_v10 }
 0xcf9   :  { %v8802_v13 = vpop.eup %8801  ;;  %8200 = vmatmul.mubr.msk.f32.vlgmr.msra.gmra.mrb[38].mxu0 %vm538_vm5, %v2925_v12  ;;  %8213 = vmatpush3.msra.mxu1 %v2233_v11 }
 0xcfa   :  { %v8804_v14 = vpop.eup %8803  ;;  %8208 = vmatpush3.msra.mxu0 %v2229_v51  ;;  %8209 = vmatprep.mubr.msk.f32.mxu0 %vm8973_vm4, %v8972_v9  ;;  %v2928_v2 = vmul.f32 %v8802_v13, %v8786_v38 }
 0xcfb   :  { %8214 = vmatprep.mubr.msk.f32.mxu1 %vm8973_vm4, %v8972_v9  ;;  %8217 = vmatprep.subr.mxu0 %v8972_v9  ;;  %v2927_v62 = vmul.f32 %v8804_v14, %v9429_v41 }
 0xcfc   :  { %8215 = vmatmul.mubr.msk.f32.vlgmr.msra.gmra.mrb[34].mxu1 %vm538_vm5, %v2928_v2  ;;  %8602 = vmatprep.subr.bf16.mxu1 %v8601_v27 }
 0xcfd   :  { %8210 = vmatmul.mubr.msk.f32.vlgmr.msra.gmra.mrb[40].mxu0 %vm538_vm5, %v2927_v62  ;;  %8604 = vmatpush3.bf16.msra.mxu1 %v8601_v27  ;;  %v3671_v27 = vld [vmem:[%s9994_s10 + $0x18] sm:$0xff] }
 0xcfe   :  { %v8806_v16 = vpop.eup %8805  ;;  %8218 = vmatpush3.msra.mxu0 %v2235_v15  ;;  %8219 = vmatprep.mubr.msk.f32.mxu0 %vm8973_vm4, %v8972_v9  ;;  %v3664_v15 = vld [vmem:[%s9993_s9 + $0x8] sm:$0xff]  ;;  %v8621_v28 = vpack.c.bf16 %v3671_v27, %v3670_v24  ;;  %v3893_v27 = vld [vmem:[#allocation2 + $0x88] sm:$0xff] }
 0xcff   :  { %v2929_v17 = vmul.f32 %v8806_v16, %v9434_v44  ;;  %8606 = vmatprep.subr.bf16.mxu1 %v8605_v30 }
 0xd01   :  { %8220 = vmatmul.mubr.msk.f32.vlgmr.msra.gmra.mrb[42].mxu0 %vm538_vm5, %v2929_v17  ;;  %8608 = vmatpush3.bf16.msra.mxu1 %v8605_v30  ;;  %v3665_v17 = vld [vmem:[%s9993_s9 + $0x10] sm:$0xff]  ;;  %v3673_v30 = vld [vmem:[%s9994_s10 + $0x28] sm:$0xff] }
 0xd6a   :  { %v3072_v20 = vpop.f32.mrb[36].mxu0 }
 0xd6b   :  { %v8191_v21 = vpop.f32.mrb[37].mxu0 }
 0xd6e   :  { %v2999_v22 = vpop.f32.mrb[28].mxu1 }
 0xd6f   :  { %v8186_v23 = vpop.f32.mrb[29].mxu1 }
 0xd70   :  { %v3669_v23 = vld [vmem:[%s9994_s10 + $0x8] sm:$0xff] }
 0xdc7   :  { %v3145_v32 = vpop.f32.mrb[30].mxu1 }
 0xdc8   :  { %v8196_v33 = vpop.f32.mrb[31].mxu1  ;;  %3516 = vrot.lane.b32.xlu0 %v3145_v32, %s8969_s14  ;;  %v8625_v32 = vpack.c.bf16 %v3673_v30, %v3672_v29  ;;  %v3900_v29 = vld [vmem:[#allocation2 + $0xc0] sm:$0xff]  ;;  %v3901_v30 = vld [vmem:[#allocation2 + $0xc8] sm:$0xff] }
 0xdcb   :  { %v3291_v34 = vpop.f32.mrb[32].mxu1 }
 0xdcc   :  { %v3218_v35 = vpop.f32.mrb[38].mxu0  ;;  %v8206_v36 = vpop.f32.mrb[33].mxu1  ;;  %3524 = vrot.lane.b32.xlu0 %v3291_v34, %s8977_s4 }
 0xdcd   :  { %3518 = vrot.lane.b32.xlu1 %v3218_v35, %s8969_s14  ;;  %v8201_v37 = vpop.f32.mrb[39].mxu0 }
 0xdcf   :  { %v3437_v38 = vpop.f32.mrb[34].mxu1 }
 0xdd0   :  { %v3364_v41 = vpop.f32.mrb[40].mxu0  ;;  %3532 = vrot.lane.b32.xlu0 %v3437_v38, %s8978_s7  ;;  %v8216_v42 = vpop.f32.mrb[35].mxu1 }
 0xdd1   :  { %3526 = vrot.lane.b32.xlu1 %v3364_v41, %s8977_s4  ;;  %v8211_v43 = vpop.f32.mrb[41].mxu0  ;;  %v3653_v41 = vsub.s32 4, %v9101_v50  ;;  %v3659_v42 = vsub.s32 5, %v9101_v50 }
 0xdd2   :  { %v9523_v43 = vld [vmem:[%s9990_s6] sm:$0xff] }
 0xdd4   :  { %v3510_v44 = vpop.f32.mrb[42].mxu0 }
 0xdd5   :  { %3534 = vrot.lane.b32.xlu1 %v3510_v44, %s8978_s7  ;;  %v8221_v45 = vpop.f32.mrb[43].mxu0  ;;  %v3654_v44 = vrot.slane %v9523_v43, %v3653_v41 }
 0xe3a   :  { %v3517_v46 = vpop.permute.xlu0 %3516 }
 0xe3b   :  { %v3538_v51 = vsel %vm538_vm5, %v2999_v22, %v3517_v46  ;;  %v3668_v22 = vld [vmem:[%s9994_s10] sm:$0xff] }
 0xe3c   :  { %v8617_v25 = vpack.c.bf16 %v3669_v23, %v3668_v22 }
 0xe3e   :  { %v3525_v47 = vpop.permute.xlu0 %3524  ;;  %8618 = vmatprep.subr.bf16.mxu1 %v8617_v25 }
 0xe3f   :  { %v3519_v49 = vpop.permute.xlu1 %3518  ;;  %v3540_v55 = vsel %vm89_vm0, %v3538_v51, %v3525_v47  ;;  %v3660_v47 = vrot.slane %v9523_v43, %v3659_v42 }
 0xe40   :  { %v3539_v59 = vsel %vm538_vm5, %v3072_v20, %v3519_v49  ;;  %v3666_v20 = vld [vmem:[%s9993_s9 + $0x18] sm:$0xff] }
 0xe41   :  { %v8613_v21 = vpack.c.bf16 %v3666_v20, %v3665_v17 }
 0xe42   :  { %v3533_v57 = vpop.permute.xlu0 %3532 }
 0xe43   :  { %v3542_v53 = vsel %vm1831_vm6, %v3540_v55, %v3533_v57  ;;  %v3527_v58 = vpop.permute.xlu1 %3526 }
 0xe44   :  { %8230 = vmatprep.mubr.msk.f32.mxu1 %vm173_vm3, %v3542_v53  ;;  %v3541_v61 = vsel %vm89_vm0, %v3539_v59, %v3527_v58  ;;  %v3674_v59 = vld [vmem:[%s9994_s10 + $0x30] sm:$0xff] }
 0xe47   :  { %v3535_v63 = vpop.permute.xlu1 %3534 }
 0xe48   :  { %v3543_v5 = vsel %vm1831_vm6, %v3541_v61, %v3535_v63  ;;  %v3675_v61 = vld [vmem:[%s9994_s10 + $0x38] sm:$0xff] }
 0xe49   :  { %8231 = vmatmul.mubr.msk.f32.vlgmr.msra.gmra.mrb[36].mxu1 %vm173_vm3, %v3543_v5  ;;  %v8629_v63 = vpack.c.bf16 %v3675_v61, %v3674_v59  ;;  %v7631_v5 = vld [vmem:[%s9995_s11] ss:$0 sm:$0xff]  ;;  %v3887_v59 = vsub.s32 7, %v9101_v50 }
 0xe4a   :  { %8620 = vmatpush3.bf16.msra.mxu1 %v8617_v25  ;;  %v3892_v25 = vld [vmem:[#allocation2 + $0x80] sm:$0xff] }
 0xe4b   :  { %8622 = vmatprep.subr.bf16.mxu1 %v8621_v28 }
 0xe4e   :  { %8624 = vmatpush3.bf16.msra.mxu1 %v8621_v28  ;;  %v8633_v28 = vpack.c.bf16 %v3893_v27, %v3892_v25 }
 0xe4f   :  { %8626 = vmatprep.subr.bf16.mxu1 %v8625_v32 }
 0xe52   :  { %8628 = vmatpush3.bf16.msra.mxu1 %v8625_v32  ;;  %v8649_v32 = vpack.c.bf16 %v3901_v30, %v3900_v29 }
 0xe53   :  { %8630 = vmatprep.subr.bf16.mxu1 %v8629_v63 }
 0xe56   :  { %8632 = vmatpush3.bf16.msra.mxu1 %v8629_v63 }
 0xe57   :  { %8650 = vmatprep.subr.bf16.mxu1 %v8649_v32 }
 0xf1c   :  { %v8232_v6 = vpop.f32.mrb[36].mxu1 }
 0xf1d   :  { %v3622_v60 = vadd.f32 %v8232_v6, %v9319_v56  ;;  %v3616_v0 = vpop.f32.mrb[37].mxu1 }
 0xf1e   :  { %v3617_v1 = vadd.f32 %v3616_v0, %v9315_v48  ;;  %v3663_v48 = vld [vmem:[%s9993_s9] sm:$0xff] }
 0xf1f   :  { %v3628_v3 = vsel %vm173_vm3, %v3622_v60, 0.0  ;;  %v8609_v16 = vpack.c.bf16 %v3664_v15, %v3663_v48 }
 0xf20   :  { %3629 = vadd.xlane.f32.xlu1 %v3628_v3  ;;  %v3625_v4 = vsel %vm173_vm3, %v3617_v1, 0.0 }
 0xf21   :  { %3626 = vadd.xlane.f32.xlu0 %v3625_v4  ;;  %8610 = vmatprep.subr.bf16.mxu0 %v8609_v16 }
 0xf22   :  { %8612 = vmatpush3.bf16.msra.mxu0 %v8609_v16 }
 0xf23   :  { %8614 = vmatprep.subr.bf16.mxu0 %v8613_v21 }
 0xf26   :  { %8616 = vmatpush3.bf16.msra.mxu0 %v8613_v21 }
 0xf27   :  { %8634 = vmatprep.subr.bf16.mxu0 %v8633_v28 }
 0xfad   :  { %v3630_v7 = vpop.xlane.xlu1 %3629 }
 0xfae   :  { %v3632_v8 = vmul.f32 0.03125, %v3630_v7  ;;  %v3627_v10 = vpop.xlane.xlu0 %3626  ;;  %v9547_v7 = vld [vmem:[%s9990_s6 + $0x8] sm:$0xff] }
 0xfaf   :  { %v3631_v11 = vmul.f32 0.03125, %v3627_v10 }
 0xfb0   :  { %v3634_v12 = vsub.f32 %v3622_v60, %v3632_v8  ;;  %v3768_v8 = vrot.slane %v9547_v7, %v9104_v52 }
 0xfb1   :  { %v3633_v13 = vsub.f32 %v3617_v1, %v3631_v11 }
 0xfb2   :  { %v3636_v62 = vmul.f32 %v3634_v12, %v3634_v12 }
 0xfb3   :  { %v3635_v14 = vmul.f32 %v3633_v13, %v3633_v13 }
 0xfb4   :  { %v3640_v56 = vsel %vm173_vm3, %v3636_v62, 0.0 }
 0xfb5   :  { %v3637_v2 = vsel %vm173_vm3, %v3635_v14, 0.0 }
 0xfb6   :  { %3638 = vadd.xlane.f32.xlu0 %v3637_v2 }
 0xfba   :  { %3641 = vadd.xlane.f32.xlu0 %v3640_v56 }
0x1043   :  { %v3639_v33 = vpop.xlane.xlu0 %3638 }
0x1044   :  { %v3643_v34 = vmul.f32 0.03125, %v3639_v33  ;;  %v3894_v33 = vld [vmem:[#allocation2 + $0x90] sm:$0xff] }
0x1046   :  { %v3645_v35 = vadd.f32 1e-06, %v3643_v34  ;;  %v3895_v34 = vld [vmem:[#allocation2 + $0x98] sm:$0xff] }
0x1047   :  { %v3642_v36 = vpop.xlane.xlu0 %3641 }
0x1048   :  { %8807 = vrsqrt.f32 %v3645_v35  ;;  %v3644_v37 = vmul.f32 0.03125, %v3642_v36  ;;  %v3902_v35 = vld [vmem:[#allocation2 + $0xd0] sm:$0xff]  ;;  %v8637_v36 = vpack.c.bf16 %v3895_v34, %v3894_v33 }
0x104a   :  { %v3646_v38 = vadd.f32 1e-06, %v3644_v37  ;;  %v3903_v37 = vld [vmem:[#allocation2 + $0xd8] sm:$0xff] }
0x104c   :  { %8809 = vrsqrt.f32 %v3646_v38  ;;  %v8653_v38 = vpack.c.bf16 %v3903_v37, %v3902_v35 }
0x1052   :  { %v8808_v45 = vpop.eup %8807 }
0x1053   :  { %v3649_v46 = vmul.f32 %v8808_v45, %v3633_v13  ;;  %v3897_v45 = vld [vmem:[#allocation2 + $0xa8] sm:$0xff] }
0x1055   :  { %v3655_v49 = vmul.f32 %v3654_v44, %v3649_v46 }
0x1056   :  { %v8810_v51 = vpop.eup %8809 }
0x1057   :  { %v3650_v55 = vmul.f32 %v8810_v51, %v3634_v12  ;;  %v3661_v57 = vadd.f32 %v3660_v47, %v3655_v49 }
0x1059   :  { %v3656_v53 = vmul.f32 %v3654_v44, %v3650_v55  ;;  %8241 = vmatprep.mubr.msk.f32.mxu0 %vm173_vm3, %v3661_v57  ;;  %v3896_v44 = vld [vmem:[#allocation2 + $0xa0] sm:$0xff] }
0x105a   :  { %v8641_v46 = vpack.c.bf16 %v3897_v45, %v3896_v44 }
0x105b   :  { %v3662_v58 = vadd.f32 %v3660_v47, %v3656_v53 }
0x105d   :  { %8242 = vmatmul.mubr.msk.f32.vlgmr.msra.gmra.mrb[44].mxu0 %vm173_vm3, %v3662_v58 }
0x105e   :  { %8636 = vmatpush3.bf16.msra.mxu0 %v8633_v28 }
0x105f   :  { %8638 = vmatprep.subr.bf16.mxu0 %v8637_v36 }
0x1062   :  { %8640 = vmatpush3.bf16.msra.mxu0 %v8637_v36 }
0x1063   :  { %8642 = vmatprep.subr.bf16.mxu0 %v8641_v46 }
0x1130   :  { %v8243_v6 = vpop.f32.mrb[44].mxu0 }
0x1131   :  { %v3760_v60 = vadd.f32 %v8243_v6, %v7631_v5  ;;  %v3754_v0 = vpop.f32.mrb[45].mxu0 }
0x1132   :  { %v3755_v1 = vadd.f32 %v7631_v5, %v3754_v0  ;;  %v3888_v0 = vrot.slane %v9523_v43, %v3887_v59 }
0x1133   :  { %v3764_v4 = vmax.f32 %v3760_v60, 0.0 }
0x1134   :  { %v3763_v3 = vmax.f32 %v3755_v1, 0.0 }
0x1136   :  { %8260 = vmatprep.mubr.msk.f32.mxu1 %vm3769_vm7, %v3763_v3 }
0x1137   :  { %8261 = vmatmul.mubr.msk.f32.vlgmr.msra.gmra.mrb[38].mxu1 %vm3769_vm7, %v3764_v4  ;;  %v3898_v4 = vld [vmem:[#allocation2 + $0xb0] sm:$0xff] }
0x1138   :  { %8652 = vmatpush3.bf16.msra.mxu1 %v8649_v32 }
0x1139   :  { %8654 = vmatprep.subr.bf16.mxu1 %v8653_v38 }
0x113c   :  { %8656 = vmatpush3.bf16.msra.mxu1 %v8653_v38 }
0x113d   :  { %8306 = vmatprep.subr.mxu1 %v8972_v9 }
0x120a   :  { %v8262_v10 = vpop.f32.mrb[38].mxu1 }
0x120b   :  { %v3848_v11 = vadd.f32 %v8262_v10, %v3768_v8  ;;  %v3842_v12 = vpop.f32.mrb[39].mxu1 }
0x120c   :  { %v3843_v13 = vadd.f32 %v3842_v12, %v3768_v8  ;;  %v3899_v8 = vld [vmem:[#allocation2 + $0xb8] sm:$0xff] }
0x120d   :  { %v3852_v14 = vadd.f32 %v3848_v11, %v3662_v58  ;;  %v3881_v58 = vsub.s32 6, %v9101_v50  ;;  %v8645_v12 = vpack.c.bf16 %v3899_v8, %v3898_v4 }
0x120e   :  { %v3851_v2 = vadd.f32 %v3843_v13, %v3661_v57 }
0x120f   :  { %v3856_v62 = vsel %vm173_vm3, %v3852_v14, 0.0  ;;  %v3882_v61 = vrot.slane %v9523_v43, %v3881_v58 }
0x1210   :  { %3857 = vadd.xlane.f32.xlu0 %v3856_v62  ;;  %v3853_v56 = vsel %vm173_vm3, %v3851_v2, 0.0 }
0x1211   :  { %3854 = vadd.xlane.f32.xlu1 %v3853_v56 }
0x129d   :  { %v3858_v48 = vpop.xlane.xlu0 %3857 }
0x129e   :  { %v3860_v15 = vmul.f32 0.03125, %v3858_v48  ;;  %v3855_v16 = vpop.xlane.xlu1 %3854 }
0x129f   :  { %v3859_v17 = vmul.f32 0.03125, %v3855_v16 }
0x12a0   :  { %v3862_v20 = vsub.f32 %v3852_v14, %v3860_v15 }
0x12a1   :  { %v3861_v21 = vsub.f32 %v3851_v2, %v3859_v17 }
0x12a2   :  { %v3864_v22 = vmul.f32 %v3862_v20, %v3862_v20 }
0x12a3   :  { %v3863_v52 = vmul.f32 %v3861_v21, %v3861_v21 }
0x12a4   :  { %v3868_v23 = vsel %vm173_vm3, %v3864_v22, 0.0 }
0x12a5   :  { %3869 = vadd.xlane.f32.xlu0 %v3868_v23  ;;  %v3865_v24 = vsel %vm173_vm3, %v3863_v52, 0.0 }
0x12a6   :  { %3866 = vadd.xlane.f32.xlu1 %v3865_v24 }
0x1332   :  { %v3870_v47 = vpop.xlane.xlu0 %3869 }
0x1333   :  { %v3872_v49 = vmul.f32 0.03125, %v3870_v47  ;;  %v3867_v51 = vpop.xlane.xlu1 %3866 }
0x1334   :  { %v3871_v55 = vmul.f32 0.03125, %v3867_v51 }
0x1335   :  { %v3874_v57 = vadd.f32 1e-06, %v3872_v49 }
0x1336   :  { %v3873_v53 = vadd.f32 1e-06, %v3871_v55 }
0x1337   :  { %8811 = vrsqrt.f32 %v3874_v57 }
0x1338   :  { %8813 = vrsqrt.f32 %v3873_v53 }
0x1341   :  { %v8812_v63 = vpop.eup %8811 }
0x1342   :  { %v8814_v5 = vpop.eup %8813  ;;  %v3878_v6 = vmul.f32 %v8812_v63, %v3862_v20 }
0x1343   :  { %v3877_v60 = vmul.f32 %v8814_v5, %v3861_v21 }
0x1344   :  { %v3884_v1 = vmul.f32 %v3882_v61, %v3878_v6 }
0x1345   :  { %v3883_v3 = vmul.f32 %v3882_v61, %v3877_v60 }
0x1346   :  { %v9566_v11 = vadd.f32 %v3888_v0, %v3884_v1 }
0x1347   :  { %v9564_v10 = vadd.f32 %v3888_v0, %v3883_v3 }
0x1349   :  { %8271 = vmatprep.mubr.msk.f32.mxu0 %vm173_vm3, %v9564_v10  ;;  %8293 = vmatprep.mubr.msk.f32.mxu1 %vm173_vm3, %v9564_v10 }
0x134a   :  { %8272 = vmatmul.mubr.msk.f32.vlgmr.msra.gmra.mrb[46].mxu0 %vm173_vm3, %v9566_v11  ;;  %8294 = vmatmul.mubr.msk.f32.vlgmr.msra.gmra.mrb[40].mxu1 %vm173_vm3, %v9566_v11 }
0x134b   :  { %8644 = vmatpush3.bf16.msra.mxu0 %v8641_v46  ;;  %8282 = vmatprep.mubr.msk.f32.mxu0 %vm173_vm3, %v9564_v10 }
0x134c   :  { %8646 = vmatprep.subr.bf16.mxu0 %v8645_v12  ;;  %8308 = vmatprep.mubr.msk.f32.mxu1 %vm8973_vm4, %v8972_v9 }
0x134f   :  { %8648 = vmatpush3.bf16.msra.mxu0 %v8645_v12 }
0x1350   :  { %8296 = vmatprep.subr.mxu0 %v8972_v9 }
0x1352   :  { %8283 = vmatmul.mubr.msk.f32.vlgmr.msra.gmra.mrb[48].mxu0 %vm173_vm3, %v9566_v11 }
0x1353   :  { %8298 = vmatprep.mubr.msk.f32.mxu0 %vm8973_vm4, %v8972_v9 }
0x141d   :  { %v8273_v43 = vpop.f32.mrb[46].mxu0  ;;  %v9585_v13 = vpop.f32.mrb[40].mxu1 }
0x141e   :  { %v9587_v14 = vpop.f32.mrb[41].mxu1  ;;  %4160 = vrot.lane.b32.xlu1 %v8273_v43, %s8974_s20  ;;  %v3997_v2 = vpop.f32.mrb[47].mxu0 }
0x141f   :  { %4162 = vrot.lane.b32.xlu0 %v3997_v2, %s8975_s21 }
0x1422   :  { %4158 = vrot.lane.b32.xlu1 %v3997_v2, %s8974_s20 }
0x1425   :  { %v8284_v62 = vpop.f32.mrb[48].mxu0 }
0x1426   :  { %4174 = vrot.lane.b32.xlu0 %v8284_v62, %s8974_s20  ;;  %v4072_v56 = vpop.f32.mrb[49].mxu0  ;;  %4178 = vrot.lane.b32.xlu1 %v8284_v62, %s8975_s21 }
0x1427   :  { %8297 = vmatpush3.xpose.msk.msra.mxu0 %vm538_vm5, %v4072_v56 }
0x1428   :  { %8301 = vmatprep.subr.mxu0 %v8972_v9 }
0x142a   :  { %4176 = vrot.lane.b32.xlu0 %v4072_v56, %s8975_s21  ;;  %8299 = vmatmul.mubr.msk.f32.vlgmr.msra.gmra.mrb[50].mxu0 %vm538_vm5, %v3997_v2 }
0x142b   :  { %4172 = vrot.lane.b32.xlu1 %v4072_v56, %s8974_s20  ;;  %8302 = vmatpush3.xpose.msk.msra.mxu0 %vm538_vm5, %v8284_v62 }
0x142c   :  { %8303 = vmatprep.mubr.msk.f32.mxu0 %vm8973_vm4, %v8972_v9  ;;  %8311 = vmatprep.subr.mxu0 %v8972_v9 }
0x142e   :  { %4180 = vrot.lane.b32.xlu0 %v4072_v56, %s8976_s23  ;;  %8304 = vmatmul.mubr.msk.f32.vlgmr.msra.gmra.mrb[52].mxu0 %vm538_vm5, %v8273_v43 }
0x142f   :  { %4164 = vrot.lane.b32.xlu1 %v8273_v43, %s8975_s21  ;;  %8313 = vmatprep.mubr.msk.f32.mxu0 %vm8973_vm4, %v8972_v9 }
0x1432   :  { %4166 = vrot.lane.b32.xlu0 %v3997_v2, %s8976_s23 }
0x1433   :  { %4182 = vrot.lane.b32.xlu1 %v8284_v62, %s8976_s23 }
0x1437   :  { %4168 = vrot.lane.b32.xlu1 %v8273_v43, %s8976_s23 }
0x1490   :  { %v4161_v48 = vpop.permute.xlu1 %4160 }
0x1491   :  { %v4163_v15 = vpop.permute.xlu0 %4162 }
0x1494   :  { %v4159_v16 = vpop.permute.xlu1 %4158 }
0x1498   :  { %v4175_v17 = vpop.permute.xlu0 %4174  ;;  %v4179_v20 = vpop.permute.xlu1 %4178 }
0x1499   :  { %8312 = vmatpush3.xpose.msk.msra.mxu0 %vm538_vm5, %v4175_v17 }
0x149a   :  { %8321 = vmatprep.subr.mxu0 %v8972_v9 }
0x149c   :  { %v4177_v21 = vpop.permute.xlu0 %4176  ;;  %8314 = vmatmul.mubr.msk.f32.vlgmr.msra.gmra.mrb[54].mxu0 %vm538_vm5, %v4161_v48 }
0x149d   :  { %v4173_v22 = vpop.permute.xlu1 %4172  ;;  %8322 = vmatpush3.xpose.msk.msra.mxu0 %vm538_vm5, %v4179_v20  ;;  %8323 = vmatprep.mubr.msk.f32.mxu0 %vm8973_vm4, %v8972_v9 }
0x149e   :  { %8307 = vmatpush3.xpose.msk.msra.mxu1 %vm538_vm5, %v4173_v22  ;;  %8331 = vmatprep.subr.mxu0 %v8972_v9 }
0x149f   :  { %8316 = vmatprep.subr.mxu1 %v8972_v9 }
0x14a0   :  { %v4181_v23 = vpop.permute.xlu0 %4180 }
0x14a1   :  { %8309 = vmatmul.mubr.msk.f32.vlgmr.msra.gmra.mrb[42].mxu1 %vm538_vm5, %v4159_v16  ;;  %v4165_v52 = vpop.permute.xlu1 %4164 }
0x14a2   :  { %8317 = vmatpush3.xpose.msk.msra.mxu1 %vm538_vm5, %v4177_v21  ;;  %8324 = vmatmul.mubr.msk.f32.vlgmr.msra.gmra.mrb[56].mxu0 %vm538_vm5, %v4165_v52 }
0x14a3   :  { %8318 = vmatprep.mubr.msk.f32.mxu1 %vm8973_vm4, %v8972_v9  ;;  %8326 = vmatprep.subr.mxu1 %v8972_v9 }
0x14a4   :  { %8333 = vmatprep.mubr.msk.f32.mxu0 %vm8973_vm4, %v8972_v9  ;;  %v4167_v25 = vpop.permute.xlu0 %4166 }
0x14a5   :  { %8319 = vmatmul.mubr.msk.f32.vlgmr.msra.gmra.mrb[44].mxu1 %vm538_vm5, %v4163_v15  ;;  %v4183_v24 = vpop.permute.xlu1 %4182 }
0x14a6   :  { %8327 = vmatpush3.xpose.msk.msra.mxu1 %vm538_vm5, %v4181_v23  ;;  %8332 = vmatpush3.xpose.msk.msra.mxu0 %vm538_vm5, %v4183_v24 }
0x14a7   :  { %8328 = vmatprep.mubr.msk.f32.mxu1 %vm8973_vm4, %v8972_v9  ;;  %8336 = vmatprep.subr.mxu1 %v8972_v9 }
0x14a8   :  { %8341 = vmatprep.subr.mxu0 %v8972_v9 }
0x14a9   :  { %8329 = vmatmul.mubr.msk.f32.vlgmr.msra.gmra.mrb[46].mxu1 %vm538_vm5, %v4167_v25  ;;  %v4169_v27 = vpop.permute.xlu1 %4168 }
0x14aa   :  { %8334 = vmatmul.mubr.msk.f32.vlgmr.msra.gmra.mrb[58].mxu0 %vm538_vm5, %v4169_v27  ;;  %8337 = vmatpush3.msra.mxu1 %v9587_v14 }
0x14ab   :  { %8342 = vmatpush3.msra.mxu0 %v9585_v13  ;;  %8343 = vmatprep.mubr.msk.f32.mxu0 %vm8973_vm4, %v8972_v9 }
0x14ac   :  { %8351 = vmatprep.subr.mxu0 %v8972_v9  ;;  %8338 = vmatprep.mubr.msk.f32.mxu1 %vm8973_vm4, %v8972_v9 }
0x14ad   :  { %8346 = vmatprep.subr.mxu1 %v8972_v9 }
0x14fd   :  { %v4274_v28 = vpop.f32.mrb[50].mxu0 }
0x14fe   :  { %v4275_v29 = vadd.f32 %v4274_v28, %v9204_v26  ;;  %v8300_v30 = vpop.f32.mrb[51].mxu0 }
0x1500   :  { %v4796_v32 = vsel %vm538_vm5, %v4275_v29, -inf }
0x1501   :  { %4797 = vmax.xlane.f32.xlu0 %v4796_v32  ;;  %v4348_v33 = vpop.f32.mrb[52].mxu0 }
0x1502   :  { %v4349_v34 = vadd.f32 %v4348_v33, %v9207_v31  ;;  %v8305_v35 = vpop.f32.mrb[53].mxu0 }
0x1504   :  { %v4799_v36 = vsel %vm538_vm5, %v4349_v34, -inf }
0x1505   :  { %4800 = vmax.xlane.f32.xlu1 %v4799_v36 }
0x156f   :  { %v4496_v37 = vpop.f32.mrb[54].mxu0 }
0x1570   :  { %v8315_v38 = vpop.f32.mrb[55].mxu0  ;;  %v4497_v51 = vadd.f32 %v4496_v37, %v9207_v31 }
0x1572   :  { %v4805_v6 = vsel %vm538_vm5, %v4497_v51, -inf }
0x1574   :  { %v4422_v44 = vpop.f32.mrb[42].mxu1 }
0x1575   :  { %v4423_v45 = vadd.f32 %v4422_v44, %v9204_v26  ;;  %v8310_v46 = vpop.f32.mrb[43].mxu1  ;;  %v4644_v47 = vpop.f32.mrb[56].mxu0 }
0x1576   :  { %v8325_v49 = vpop.f32.mrb[57].mxu0  ;;  %v4645_v63 = vadd.f32 %v4644_v47, %v9207_v31 }
0x1577   :  { %v4802_v55 = vsel %vm538_vm5, %v4423_v45, -inf }
0x1578   :  { %v4570_v57 = vpop.f32.mrb[44].mxu1  ;;  %4803 = vmax.xlane.f32.xlu0 %v4802_v55  ;;  %v4811_v43 = vsel %vm538_vm5, %v4645_v63, -inf }
0x1579   :  { %v4571_v53 = vadd.f32 %v4570_v57, %v9204_v26  ;;  %v8320_v61 = vpop.f32.mrb[45].mxu1 }
0x157b   :  { %v4808_v5 = vsel %vm538_vm5, %v4571_v53, -inf }
0x157c   :  { %v4718_v60 = vpop.f32.mrb[46].mxu1  ;;  %4809 = vmax.xlane.f32.xlu1 %v4808_v5  ;;  %4806 = vmax.xlane.f32.xlu0 %v4805_v6 }
0x157d   :  { %v4719_v0 = vadd.f32 %v4718_v60, %v9204_v26  ;;  %v8330_v1 = vpop.f32.mrb[47].mxu1  ;;  %v4792_v3 = vpop.f32.mrb[58].mxu0 }
0x157e   :  { %v8335_v4 = vpop.f32.mrb[59].mxu0  ;;  %v4793_v8 = vadd.f32 %v4792_v3, %v9207_v31 }
0x157f   :  { %v4814_v12 = vsel %vm538_vm5, %v4719_v0, -inf }
0x1580   :  { %4815 = vmax.xlane.f32.xlu1 %v4814_v12  ;;  %4812 = vmax.xlane.f32.xlu0 %v4811_v43  ;;  %v4817_v2 = vsel %vm538_vm5, %v4793_v8, -inf }
0x1584   :  { %4818 = vmax.xlane.f32.xlu0 %v4817_v2 }
0x158e   :  { %v4798_v62 = vpop.xlane.xlu0 %4797 }
0x158f   :  { %v4820_v56 = vsub.f32 %v4275_v29, %v4798_v62 }
0x1591   :  { %4186 = vrot.lane.b32.xlu1 %v9587_v14, %s8974_s20  ;;  %v4828_v15 = vmul.f32 1.442695, %v4820_v56 }
0x1592   :  { %v4801_v26 = vpop.xlane.xlu1 %4800 }
0x1593   :  { %v4821_v31 = vsub.f32 %v4349_v34, %v4801_v26 }
0x1595   :  { %4192 = vrot.lane.b32.xlu1 %v9587_v14, %s8975_s21  ;;  %v4830_v48 = vmul.f32 1.442695, %v4821_v31 }
0x1597   :  { %8815 = vpow2.f32 %v4830_v48 }
0x1598   :  { %8817 = vpow2.f32 %v4828_v15 }
0x1599   :  { %4194 = vrot.lane.b32.xlu1 %v9585_v13, %s8975_s21 }
0x159a   :  { %4188 = vrot.lane.b32.xlu0 %v9585_v13, %s8974_s20 }
0x15a1   :  { %v8816_v16 = vpop.eup %8815 }
0x15a2   :  { %v4847_v17 = vsel %vm538_vm5, %v8816_v16, 0.0  ;;  %v8818_v20 = vpop.eup %8817 }
0x15a3   :  { %v4844_v21 = vsel %vm538_vm5, %v8818_v20, 0.0 }
0x15b9   :  { %4848 = vadd.xlane.f32.xlu0 %v4847_v17 }
0x15bd   :  { %4845 = vadd.xlane.f32.xlu1 %v4844_v21 }
0x1605   :  { %v4804_v22 = vpop.xlane.xlu0 %4803 }
0x1606   :  { %v4822_v52 = vsub.f32 %v4423_v45, %v4804_v22 }
0x1608   :  { %v4832_v23 = vmul.f32 1.442695, %v4822_v52 }
0x1609   :  { %v4810_v24 = vpop.xlane.xlu1 %4809  ;;  %v4807_v25 = vpop.xlane.xlu0 %4806 }
0x160a   :  { %8819 = vpow2.f32 %v4832_v23  ;;  %v4824_v27 = vsub.f32 %v4571_v53, %v4810_v24  ;;  %v4823_v28 = vsub.f32 %v4497_v51, %v4807_v25 }
0x160c   :  { %v4836_v29 = vmul.f32 1.442695, %v4824_v27  ;;  %v4834_v30 = vmul.f32 1.442695, %v4823_v28 }
0x160d   :  { %v4816_v32 = vpop.xlane.xlu1 %4815  ;;  %v4813_v33 = vpop.xlane.xlu0 %4812 }
0x160e   :  { %8821 = vpow2.f32 %v4836_v29  ;;  %v4826_v34 = vsub.f32 %v4719_v0, %v4816_v32  ;;  %v4825_v35 = vsub.f32 %v4645_v63, %v4813_v33 }
0x160f   :  { %8823 = vpow2.f32 %v4834_v30 }
0x1610   :  { %v4840_v36 = vmul.f32 1.442695, %v4826_v34  ;;  %v4838_v37 = vmul.f32 1.442695, %v4825_v35 }
0x1611   :  { %v4819_v38 = vpop.xlane.xlu0 %4818  ;;  %v4187_v0 = vpop.permute.xlu1 %4186 }
0x1612   :  { %8825 = vpow2.f32 %v4840_v36  ;;  %v4827_v44 = vsub.f32 %v4793_v8, %v4819_v38  ;;  %v3905_v38 = vld [vmem:[#allocation2 + $0xe8] sm:$0xff] }
0x1613   :  { %8827 = vpow2.f32 %v4838_v37  ;;  %v3904_v37 = vld [vmem:[#allocation2 + $0xe0] sm:$0xff] }
0x1614   :  { %v8820_v45 = vpop.eup %8819  ;;  %v4842_v46 = vmul.f32 1.442695, %v4827_v44  ;;  %v8657_v44 = vpack.c.bf16 %v3905_v38, %v3904_v37  ;;  %v8893_v38 = vld [vmem:[%s9987_s3 + $0x8] sm:$0xff] }
0x1615   :  { %v4850_v47 = vsel %vm538_vm5, %v8820_v45, 0.0  ;;  %v4193_v1 = vpop.permute.xlu1 %4192  ;;  %v4189_v3 = vpop.permute.xlu0 %4188 }
0x1616   :  { %8829 = vpow2.f32 %v4842_v46  ;;  %4851 = vadd.xlane.f32.xlu1 %v4850_v47  ;;  %v3907_v46 = vld [vmem:[#allocation2 + $0xf8] sm:$0xff] }
0x1618   :  { %v8822_v49 = vpop.eup %8821 }
0x1619   :  { %v8824_v51 = vpop.eup %8823  ;;  %v4856_v55 = vsel %vm538_vm5, %v8822_v49, 0.0  ;;  %v4195_v4 = vpop.permute.xlu1 %4194 }
0x161a   :  { %4857 = vadd.xlane.f32.xlu1 %v4856_v55  ;;  %v4853_v57 = vsel %vm538_vm5, %v8824_v51, 0.0 }
0x161b   :  { %4854 = vadd.xlane.f32.xlu0 %v4853_v57 }
0x161c   :  { %v8826_v53 = vpop.eup %8825 }
0x161d   :  { %v8828_v61 = vpop.eup %8827  ;;  %v4862_v63 = vsel %vm538_vm5, %v8826_v53, 0.0 }
0x161e   :  { %4863 = vadd.xlane.f32.xlu1 %v4862_v63  ;;  %v4859_v5 = vsel %vm538_vm5, %v8828_v61, 0.0 }
0x161f   :  { %4860 = vadd.xlane.f32.xlu0 %v4859_v5 }
0x1620   :  { %v9676_v6 = vpop.eup %8829 }
0x1621   :  { %v4865_v60 = vsel %vm538_vm5, %v9676_v6, 0.0 }
0x1623   :  { %4866 = vadd.xlane.f32.xlu0 %v4865_v60 }
0x162f   :  { %4200 = vrot.lane.b32.xlu1 %v9585_v13, %s8976_s23 }
0x1639   :  { %4198 = vrot.lane.b32.xlu0 %v9587_v14, %s8976_s23 }
0x1646   :  { %v4849_v8 = vpop.xlane.xlu0 %4848 }
0x1647   :  { %8831 = vrcp.f32 %v4849_v8 }
0x164a   :  { %v4846_v12 = vpop.xlane.xlu1 %4845 }
0x164b   :  { %8833 = vrcp.f32 %v4846_v12 }
0x1651   :  { %v8832_v43 = vpop.eup %8831 }
0x1652   :  { %v4877_v2 = vmul.f32 %v8832_v43, %v8816_v16 }
0x1654   :  { %8344 = vmatmul.mubr.msk.f32.vlgmr.msra.gmra.mrb[60].mxu0 %vm538_vm5, %v4877_v2 }
0x1655   :  { %v8834_v26 = vpop.eup %8833  ;;  %8352 = vmatpush3.msra.mxu0 %v4189_v3  ;;  %8353 = vmatprep.mubr.msk.f32.mxu0 %vm8973_vm4, %v8972_v9 }
0x1656   :  { %v4876_v13 = vmul.f32 %v8834_v26, %v8818_v20  ;;  %8361 = vmatprep.subr.mxu0 %v8972_v9 }
0x1658   :  { %8339 = vmatmul.mubr.msk.f32.vlgmr.msra.gmra.mrb[48].mxu1 %vm538_vm5, %v4876_v13 }
0x1659   :  { %8347 = vmatpush3.msra.mxu1 %v4187_v0  ;;  %8348 = vmatprep.mubr.msk.f32.mxu1 %vm8973_vm4, %v8972_v9 }
0x165a   :  { %8356 = vmatprep.subr.mxu1 %v8972_v9 }
0x16a3   :  { %v4852_v14 = vpop.xlane.xlu1 %4851 }
0x16a4   :  { %8835 = vrcp.f32 %v4852_v14 }
0x16a7   :  { %v4858_v31 = vpop.xlane.xlu1 %4857 }
0x16a8   :  { %8837 = vrcp.f32 %v4858_v31  ;;  %v4855_v62 = vpop.xlane.xlu0 %4854 }
0x16a9   :  { %8839 = vrcp.f32 %v4855_v62 }
0x16ab   :  { %v4864_v56 = vpop.xlane.xlu1 %4863 }
0x16ac   :  { %8841 = vrcp.f32 %v4864_v56  ;;  %v4861_v48 = vpop.xlane.xlu0 %4860 }
0x16ad   :  { %8843 = vrcp.f32 %v4861_v48  ;;  %v9726_v48 = vld [vmem:[%s9987_s3] sm:$0xff] }
0x16ae   :  { %v8836_v15 = vpop.eup %8835 }
0x16af   :  { %v4878_v16 = vmul.f32 %v8836_v15, %v8820_v45  ;;  %v4201_v29 = vpop.permute.xlu1 %4200  ;;  %v3906_v45 = vld [vmem:[#allocation2 + $0xf0] sm:$0xff] }
0x16b0   :  { %v4867_v17 = vpop.xlane.xlu0 %4866  ;;  %v8661_v47 = vpack.c.bf16 %v3907_v46, %v3906_v45  ;;  %v3910_v45 = vld [vmem:[#allocation5 + $0x88] sm:$0xff] }
0x16b1   :  { %8845 = vrcp.f32 %v4867_v17  ;;  %8349 = vmatmul.mubr.msk.f32.vlgmr.msra.gmra.mrb[50].mxu1 %vm538_vm5, %v4878_v16 }
0x16b2   :  { %v8838_v20 = vpop.eup %8837  ;;  %8357 = vmatpush3.msra.mxu1 %v4193_v1  ;;  %8358 = vmatprep.mubr.msk.f32.mxu1 %vm8973_vm4, %v8972_v9 }
0x16b3   :  { %v8840_v21 = vpop.eup %8839  ;;  %v4880_v22 = vmul.f32 %v8838_v20, %v8822_v49  ;;  %8366 = vmatprep.subr.mxu1 %v8972_v9 }
0x16b4   :  { %v4879_v52 = vmul.f32 %v8840_v21, %v8824_v51  ;;  %v4199_v23 = vpop.permute.xlu0 %4198 }
0x16b5   :  { %8359 = vmatmul.mubr.msk.f32.vlgmr.msra.gmra.mrb[52].mxu1 %vm538_vm5, %v4880_v22 }
0x16b6   :  { %v8842_v24 = vpop.eup %8841  ;;  %8354 = vmatmul.mubr.msk.f32.vlgmr.msra.gmra.mrb[62].mxu0 %vm538_vm5, %v4879_v52  ;;  %8367 = vmatpush3.msra.mxu1 %v4199_v23 }
0x16b7   :  { %v8844_v25 = vpop.eup %8843  ;;  %v4882_v27 = vmul.f32 %v8842_v24, %v8826_v53  ;;  %8362 = vmatpush3.msra.mxu0 %v4195_v4  ;;  %8363 = vmatprep.mubr.msk.f32.mxu0 %vm8973_vm4, %v8972_v9 }
0x16b8   :  { %v4881_v28 = vmul.f32 %v8844_v25, %v8828_v61  ;;  %8368 = vmatprep.mubr.msk.f32.mxu1 %vm8973_vm4, %v8972_v9  ;;  %8371 = vmatprep.subr.mxu0 %v8972_v9 }
0x16b9   :  { %8369 = vmatmul.mubr.msk.f32.vlgmr.msra.gmra.mrb[54].mxu1 %vm538_vm5, %v4882_v27  ;;  %8658 = vmatprep.subr.bf16.mxu1 %v8657_v44 }
0x16ba   :  { %8364 = vmatmul.mubr.msk.f32.vlgmr.msra.gmra.mrb[64].mxu0 %vm538_vm5, %v4881_v28  ;;  %8660 = vmatpush3.bf16.msra.mxu1 %v8657_v44  ;;  %v3909_v44 = vld [vmem:[#allocation5 + $0x80] sm:$0xff] }
0x16bb   :  { %v8846_v30 = vpop.eup %8845  ;;  %8372 = vmatpush3.msra.mxu0 %v4201_v29  ;;  %8373 = vmatprep.mubr.msk.f32.mxu0 %vm8973_vm4, %v8972_v9  ;;  %v8665_v46 = vpack.c.bf16 %v3910_v45, %v3909_v44 }
0x16bc   :  { %v4883_v32 = vmul.f32 %v8846_v30, %v9676_v6  ;;  %8662 = vmatprep.subr.bf16.mxu1 %v8661_v47 }
0x16bd   :  { %8666 = vmatprep.subr.bf16.mxu0 %v8665_v46 }
0x16be   :  { %8374 = vmatmul.mubr.msk.f32.vlgmr.msra.gmra.mrb[66].mxu0 %vm538_vm5, %v4883_v32  ;;  %8664 = vmatpush3.bf16.msra.mxu1 %v8661_v47  ;;  %v3911_v47 = vld [vmem:[#allocation5 + $0x90] sm:$0xff] }
0x16bf   :  { %8668 = vmatpush3.bf16.msra.mxu0 %v8665_v46 }
0x1727   :  { %v5026_v33 = vpop.f32.mrb[60].mxu0 }
0x1728   :  { %v8345_v34 = vpop.f32.mrb[61].mxu0 }
0x172b   :  { %v4953_v35 = vpop.f32.mrb[48].mxu1 }
0x172c   :  { %v8340_v36 = vpop.f32.mrb[49].mxu1 }
0x172d   :  { %v3916_v36 = vld [vmem:[#allocation5 + $0xb8] sm:$0xff] }
0x1784   :  { %v5099_v49 = vpop.f32.mrb[50].mxu1 }
0x1785   :  { %v8350_v51 = vpop.f32.mrb[51].mxu1  ;;  %5470 = vrot.lane.b32.xlu0 %v5099_v49, %s8969_s14  ;;  %v3912_v49 = vld [vmem:[#allocation5 + $0x98] sm:$0xff] }
0x1786   :  { %v8669_v51 = vpack.c.bf16 %v3912_v49, %v3911_v47 }
0x1788   :  { %v5245_v55 = vpop.f32.mrb[52].mxu1  ;;  %8670 = vmatprep.subr.bf16.mxu0 %v8669_v51 }
0x1789   :  { %v5172_v57 = vpop.f32.mrb[62].mxu0  ;;  %v8360_v53 = vpop.f32.mrb[53].mxu1  ;;  %5478 = vrot.lane.b32.xlu0 %v5245_v55, %s8977_s4  ;;  %8672 = vmatpush3.bf16.msra.mxu0 %v8669_v51  ;;  %v3917_v55 = vld [vmem:[#allocation5 + $0xc0] sm:$0xff] }
0x178a   :  { %5472 = vrot.lane.b32.xlu1 %v5172_v57, %s8969_s14  ;;  %v8355_v61 = vpop.f32.mrb[63].mxu0  ;;  %v3918_v57 = vld [vmem:[#allocation5 + $0xc8] sm:$0xff] }
0x178b   :  { %v8681_v53 = vpack.c.bf16 %v3918_v57, %v3917_v55 }
0x178c   :  { %v5391_v63 = vpop.f32.mrb[54].mxu1 }
0x178d   :  { %v5318_v5 = vpop.f32.mrb[64].mxu0  ;;  %5486 = vrot.lane.b32.xlu0 %v5391_v63, %s8978_s7  ;;  %v8370_v6 = vpop.f32.mrb[55].mxu1  ;;  %8682 = vmatprep.subr.bf16.mxu0 %v8681_v53 }
0x178e   :  { %5480 = vrot.lane.b32.xlu1 %v5318_v5, %s8977_s4  ;;  %v8365_v60 = vpop.f32.mrb[65].mxu0 }
0x1791   :  { %v5464_v0 = vpop.f32.mrb[66].mxu0 }
0x1792   :  { %5488 = vrot.lane.b32.xlu1 %v5464_v0, %s8978_s7  ;;  %v8375_v1 = vpop.f32.mrb[67].mxu0 }
0x1793   :  { %v5608_v1 = vrot.slane %v9547_v7, %v209_v54 }
0x17f7   :  { %v5471_v3 = vpop.permute.xlu0 %5470 }
0x17f8   :  { %v5492_v12 = vsel %vm538_vm5, %v4953_v35, %v5471_v3  ;;  %v3915_v35 = vld [vmem:[#allocation5 + $0xb0] sm:$0xff] }
0x17f9   :  { %v8677_v37 = vpack.c.bf16 %v3916_v36, %v3915_v35 }
0x17fb   :  { %v5479_v4 = vpop.permute.xlu0 %5478 }
0x17fc   :  { %v5473_v8 = vpop.permute.xlu1 %5472  ;;  %v5494_v43 = vsel %vm89_vm0, %v5492_v12, %v5479_v4 }
0x17fd   :  { %v5493_v14 = vsel %vm538_vm5, %v5026_v33, %v5473_v8  ;;  %v3914_v33 = vld [vmem:[#allocation5 + $0xa8] sm:$0xff]  ;;  %v5614_v8 = vrot.slane %v9547_v7, %v1943_v39 }
0x17ff   :  { %v5487_v2 = vpop.permute.xlu0 %5486 }
0x1800   :  { %v5496_v26 = vsel %vm1831_vm6, %v5494_v43, %v5487_v2  ;;  %v5481_v13 = vpop.permute.xlu1 %5480 }
0x1801   :  { %8384 = vmatprep.mubr.msk.f32.mxu1 %vm173_vm3, %v5496_v26  ;;  %v5495_v31 = vsel %vm89_vm0, %v5493_v14, %v5481_v13  ;;  %v3919_v13 = vld [vmem:[#allocation5 + $0xd0] sm:$0xff]  ;;  %v3920_v14 = vld [vmem:[#allocation5 + $0xd8] sm:$0xff] }
0x1802   :  { %v8685_v54 = vpack.c.bf16 %v3920_v14, %v3919_v13 }
0x1804   :  { %v5489_v62 = vpop.permute.xlu1 %5488 }
0x1805   :  { %v5497_v56 = vsel %vm1831_vm6, %v5495_v31, %v5489_v62 }
0x1806   :  { %8385 = vmatmul.mubr.msk.f32.vlgmr.msra.gmra.mrb[56].mxu1 %vm173_vm3, %v5497_v56 }
0x1807   :  { %8406 = vmatprep.mubr.msk.f32.mxu1 %vm173_vm3, %v9726_v48 }
0x18d9   :  { %v8386_v15 = vpop.f32.mrb[56].mxu1 }
0x18da   :  { %v5576_v16 = vadd.f32 %v8386_v15, %v9566_v11  ;;  %v5570_v17 = vpop.f32.mrb[57].mxu1 }
0x18db   :  { %v5571_v20 = vadd.f32 %v5570_v17, %v9564_v10  ;;  %v3913_v10 = vld [vmem:[#allocation5 + $0xa0] sm:$0xff] }
0x18dc   :  { %v5582_v21 = vsel %vm173_vm3, %v5576_v16, 0.0  ;;  %v8673_v34 = vpack.c.bf16 %v3914_v33, %v3913_v10 }
0x18dd   :  { %5583 = vadd.xlane.f32.xlu1 %v5582_v21  ;;  %v5579_v22 = vsel %vm173_vm3, %v5571_v20, 0.0 }
0x18de   :  { %5580 = vadd.xlane.f32.xlu0 %v5579_v22  ;;  %8674 = vmatprep.subr.bf16.mxu1 %v8673_v34 }
0x18df   :  { %8676 = vmatpush3.bf16.msra.mxu1 %v8673_v34 }
0x18e0   :  { %8678 = vmatprep.subr.bf16.mxu1 %v8677_v37 }
0x18e3   :  { %8680 = vmatpush3.bf16.msra.mxu1 %v8677_v37 }
0x18e4   :  { %8420 = vmatprep.subr.mxu1 %v8972_v9 }
0x18e6   :  { %8407 = vmatmul.mubr.msk.f32.vlgmr.msra.gmra.mrb[58].mxu1 %vm173_vm3, %v8893_v38 }
0x18e7   :  { %8422 = vmatprep.mubr.msk.f32.mxu1 %vm8973_vm4, %v8972_v9 }
0x196a   :  { %v5584_v52 = vpop.xlane.xlu1 %5583 }
0x196b   :  { %v5586_v23 = vmul.f32 0.03125, %v5584_v52  ;;  %v5581_v24 = vpop.xlane.xlu0 %5580 }
0x196c   :  { %v5585_v25 = vmul.f32 0.03125, %v5581_v24 }
0x196d   :  { %v5588_v27 = vsub.f32 %v5576_v16, %v5586_v23 }
0x196e   :  { %v5587_v28 = vsub.f32 %v5571_v20, %v5585_v25 }
0x196f   :  { %v5590_v32 = vmul.f32 %v5588_v27, %v5588_v27 }
0x1970   :  { %v5589_v29 = vmul.f32 %v5587_v28, %v5587_v28 }
0x1971   :  { %v5594_v11 = vsel %vm173_vm3, %v5590_v32, 0.0 }
0x1972   :  { %v5591_v30 = vsel %vm173_vm3, %v5589_v29, 0.0 }
0x1973   :  { %5592 = vadd.xlane.f32.xlu0 %v5591_v30 }
0x1977   :  { %5595 = vadd.xlane.f32.xlu0 %v5594_v11 }
0x19b9   :  { %v8408_v39 = vpop.f32.mrb[58].mxu1 }
0x19ba   :  { %5866 = vrot.lane.b32.xlu0 %v8408_v39, %s8974_s20  ;;  %v5764_v7 = vpop.f32.mrb[59].mxu1 }
0x19bb   :  { %5864 = vrot.lane.b32.xlu1 %v5764_v7, %s8974_s20  ;;  %8421 = vmatpush3.xpose.msk.msra.mxu1 %vm538_vm5, %v5764_v7 }
0x19bc   :  { %8430 = vmatprep.subr.mxu1 %v8972_v9 }
0x19be   :  { %5868 = vrot.lane.b32.xlu0 %v5764_v7, %s8975_s21 }
0x19bf   :  { %5870 = vrot.lane.b32.xlu1 %v8408_v39, %s8975_s21 }
0x19c2   :  { %5872 = vrot.lane.b32.xlu0 %v5764_v7, %s8976_s23 }
0x1a00   :  { %v5593_v61 = vpop.xlane.xlu0 %5592 }
0x1a01   :  { %v5597_v63 = vmul.f32 0.03125, %v5593_v61 }
0x1a03   :  { %v5599_v5 = vadd.f32 1e-06, %v5597_v63 }
0x1a04   :  { %v5596_v6 = vpop.xlane.xlu0 %5595 }
0x1a05   :  { %8847 = vrsqrt.f32 %v5599_v5  ;;  %v5598_v60 = vmul.f32 0.03125, %v5596_v6 }
0x1a07   :  { %v5600_v0 = vadd.f32 1e-06, %v5598_v60 }
0x1a09   :  { %8849 = vrsqrt.f32 %v5600_v0 }
0x1a0f   :  { %v8848_v3 = vpop.eup %8847 }
0x1a10   :  { %v5603_v4 = vmul.f32 %v8848_v3, %v5587_v28 }
0x1a12   :  { %v5609_v12 = vmul.f32 %v5608_v1, %v5603_v4 }
0x1a13   :  { %v8850_v43 = vpop.eup %8849 }
0x1a14   :  { %v5604_v2 = vmul.f32 %v8850_v43, %v5588_v27  ;;  %v9749_v26 = vadd.f32 %v5614_v8, %v5609_v12 }
0x1a16   :  { %v5610_v31 = vmul.f32 %v5608_v1, %v5604_v2  ;;  %8395 = vmatprep.mubr.msk.f32.mxu0 %vm173_vm3, %v9749_v26 }
0x1a18   :  { %v9753_v62 = vadd.f32 %v5614_v8, %v5610_v31 }
0x1a1a   :  { %8396 = vmatmul.mubr.msk.f32.vlgmr.msra.gmra.mrb[68].mxu0 %vm173_vm3, %v9753_v62 }
0x1a1b   :  { %8684 = vmatpush3.bf16.msra.mxu0 %v8681_v53  ;;  %8417 = vmatprep.mubr.msk.f32.mxu0 %vm173_vm3, %v9726_v48 }
0x1a1c   :  { %8686 = vmatprep.subr.bf16.mxu0 %v8685_v54 }
0x1a1f   :  { %8688 = vmatpush3.bf16.msra.mxu0 %v8685_v54 }
0x1a20   :  { %8425 = vmatprep.subr.mxu0 %v8972_v9 }
0x1a22   :  { %8418 = vmatmul.mubr.msk.f32.vlgmr.msra.gmra.mrb[70].mxu0 %vm173_vm3, %v8893_v38 }
0x1a23   :  { %8427 = vmatprep.mubr.msk.f32.mxu0 %vm8973_vm4, %v8972_v9 }
0x1a28   :  { %8426 = vmatpush3.xpose.msk.msra.mxu0 %vm538_vm5, %v8408_v39 }
0x1a29   :  { %8435 = vmatprep.subr.mxu0 %v8972_v9 }
0x1a2c   :  { %v5867_v15 = vpop.permute.xlu0 %5866 }
0x1a2d   :  { %v5865_v16 = vpop.permute.xlu1 %5864 }
0x1a30   :  { %v5869_v21 = vpop.permute.xlu0 %5868 }
0x1a31   :  { %v5871_v22 = vpop.permute.xlu1 %5870 }
0x1a34   :  { %v5873_v23 = vpop.permute.xlu0 %5872 }
0x1aed   :  { %v8397_v56 = vpop.f32.mrb[68].mxu0 }
0x1aee   :  { %5852 = vrot.lane.b32.xlu1 %v8397_v56, %s8974_s20  ;;  %v5689_v48 = vpop.f32.mrb[69].mxu0  ;;  %8428 = vmatmul.mubr.msk.f32.vlgmr.msra.gmra.mrb[72].mxu0 %vm538_vm5, %v8397_v56 }
0x1aef   :  { %5854 = vrot.lane.b32.xlu0 %v5689_v48, %s8975_s21  ;;  %8423 = vmatmul.mubr.msk.f32.vlgmr.msra.gmra.mrb[60].mxu1 %vm538_vm5, %v5689_v48 }
0x1af0   :  { %8431 = vmatpush3.xpose.msk.msra.mxu1 %vm538_vm5, %v5865_v16  ;;  %8436 = vmatpush3.xpose.msk.msra.mxu0 %vm538_vm5, %v5867_v15 }
0x1af1   :  { %8437 = vmatprep.mubr.msk.f32.mxu0 %vm8973_vm4, %v8972_v9  ;;  %8445 = vmatprep.subr.mxu0 %v8972_v9 }
0x1af2   :  { %5850 = vrot.lane.b32.xlu1 %v5689_v48, %s8974_s20  ;;  %8432 = vmatprep.mubr.msk.f32.mxu1 %vm8973_vm4, %v8972_v9 }
0x1af3   :  { %5858 = vrot.lane.b32.xlu0 %v5689_v48, %s8976_s23  ;;  %8440 = vmatprep.subr.mxu1 %v8972_v9 }
0x1af5   :  { %v9786_v17 = vpop.f32.mrb[70].mxu0 }
0x1af6   :  { %5856 = vrot.lane.b32.xlu1 %v8397_v56, %s8975_s21  ;;  %v9789_v20 = vpop.f32.mrb[71].mxu0 }
0x1afa   :  { %5874 = vrot.lane.b32.xlu1 %v8408_v39, %s8976_s23 }
0x1afe   :  { %5860 = vrot.lane.b32.xlu1 %v8397_v56, %s8976_s23 }
0x1b60   :  { %v5853_v52 = vpop.permute.xlu1 %5852 }
0x1b61   :  { %8438 = vmatmul.mubr.msk.f32.vlgmr.msra.gmra.mrb[74].mxu0 %vm538_vm5, %v5853_v52  ;;  %v5855_v25 = vpop.permute.xlu0 %5854 }
0x1b62   :  { %8446 = vmatpush3.xpose.msk.msra.mxu0 %vm538_vm5, %v5871_v22  ;;  %8447 = vmatprep.mubr.msk.f32.mxu0 %vm8973_vm4, %v8972_v9 }
0x1b63   :  { %8455 = vmatprep.subr.mxu0 %v8972_v9 }
0x1b64   :  { %v5851_v24 = vpop.permute.xlu1 %5850 }
0x1b65   :  { %8433 = vmatmul.mubr.msk.f32.vlgmr.msra.gmra.mrb[62].mxu1 %vm538_vm5, %v5851_v24  ;;  %v5859_v28 = vpop.permute.xlu0 %5858 }
0x1b66   :  { %8441 = vmatpush3.xpose.msk.msra.mxu1 %vm538_vm5, %v5869_v21  ;;  %8442 = vmatprep.mubr.msk.f32.mxu1 %vm8973_vm4, %v8972_v9 }
0x1b67   :  { %8450 = vmatprep.subr.mxu1 %v8972_v9 }
0x1b68   :  { %v5857_v27 = vpop.permute.xlu1 %5856 }
0x1b69   :  { %8443 = vmatmul.mubr.msk.f32.vlgmr.msra.gmra.mrb[64].mxu1 %vm538_vm5, %v5855_v25  ;;  %8448 = vmatmul.mubr.msk.f32.vlgmr.msra.gmra.mrb[76].mxu0 %vm538_vm5, %v5857_v27 }
0x1b6a   :  { %8451 = vmatpush3.xpose.msk.msra.mxu1 %vm538_vm5, %v5873_v23  ;;  %8452 = vmatprep.mubr.msk.f32.mxu1 %vm8973_vm4, %v8972_v9 }
0x1b6b   :  { %8457 = vmatprep.mubr.msk.f32.mxu0 %vm8973_vm4, %v8972_v9  ;;  %8460 = vmatprep.subr.mxu1 %v8972_v9 }
0x1b6c   :  { %v5875_v29 = vpop.permute.xlu1 %5874 }
0x1b6d   :  { %8453 = vmatmul.mubr.msk.f32.vlgmr.msra.gmra.mrb[66].mxu1 %vm538_vm5, %v5859_v28  ;;  %8456 = vmatpush3.xpose.msk.msra.mxu0 %vm538_vm5, %v5875_v29 }
0x1b6e   :  { %8465 = vmatprep.subr.mxu0 %v8972_v9  ;;  %8461 = vmatpush3.msra.mxu1 %v9789_v20 }
0x1b6f   :  { %8462 = vmatprep.mubr.msk.f32.mxu1 %vm8973_vm4, %v8972_v9  ;;  %8470 = vmatprep.subr.mxu1 %v8972_v9 }
0x1b70   :  { %v5861_v30 = vpop.permute.xlu1 %5860 }
0x1b71   :  { %8458 = vmatmul.mubr.msk.f32.vlgmr.msra.gmra.mrb[78].mxu0 %vm538_vm5, %v5861_v30 }
0x1b72   :  { %8466 = vmatpush3.msra.mxu0 %v9786_v17  ;;  %8467 = vmatprep.mubr.msk.f32.mxu0 %vm8973_vm4, %v8972_v9 }
0x1b73   :  { %8475 = vmatprep.subr.mxu0 %v8972_v9 }
0x1bc1   :  { %v6040_v32 = vpop.f32.mrb[72].mxu0 }
0x1bc2   :  { %v6041_v11 = vadd.f32 %v6040_v32, %v9395_v18  ;;  %v5966_v10 = vpop.f32.mrb[60].mxu1  ;;  %v8429_v33 = vpop.f32.mrb[73].mxu0 }
0x1bc3   :  { %v5967_v34 = vadd.f32 %v5966_v10, %v9398_v19  ;;  %v8424_v35 = vpop.f32.mrb[61].mxu1 }
0x1bc4   :  { %v6491_v36 = vsel %vm538_vm5, %v6041_v11, -inf }
0x1bc5   :  { %6492 = vmax.xlane.f32.xlu1 %v6491_v36  ;;  %v6488_v37 = vsel %vm538_vm5, %v5967_v34, -inf }
0x1bc6   :  { %6489 = vmax.xlane.f32.xlu0 %v6488_v37 }
0x1c34   :  { %v6188_v38 = vpop.f32.mrb[74].mxu0 }
0x1c35   :  { %v8439_v44 = vpop.f32.mrb[75].mxu0  ;;  %v6189_v49 = vadd.f32 %v6188_v38, %v9395_v18 }
0x1c37   :  { %v6497_v60 = vsel %vm538_vm5, %v6189_v49, -inf }
0x1c38   :  { %v6114_v45 = vpop.f32.mrb[62].mxu1 }
0x1c39   :  { %v6115_v46 = vadd.f32 %v6114_v45, %v9398_v19  ;;  %v8434_v47 = vpop.f32.mrb[63].mxu1 }
0x1c3b   :  { %v6494_v51 = vsel %vm538_vm5, %v6115_v46, -inf }
0x1c3c   :  { %6495 = vmax.xlane.f32.xlu0 %v6494_v51  ;;  %v6262_v55 = vpop.f32.mrb[64].mxu1  ;;  %v6336_v57 = vpop.f32.mrb[76].mxu0 }
0x1c3d   :  { %v6263_v53 = vadd.f32 %v6262_v55, %v9398_v19  ;;  %v8444_v61 = vpop.f32.mrb[65].mxu1  ;;  %v8449_v63 = vpop.f32.mrb[77].mxu0  ;;  %v6337_v5 = vadd.f32 %v6336_v57, %v9395_v18 }
0x1c3f   :  { %v6500_v6 = vsel %vm538_vm5, %v6263_v53, -inf  ;;  %v6503_v8 = vsel %vm538_vm5, %v6337_v5, -inf }
0x1c40   :  { %v6410_v0 = vpop.f32.mrb[66].mxu1  ;;  %6501 = vmax.xlane.f32.xlu1 %v6500_v6  ;;  %6498 = vmax.xlane.f32.xlu0 %v6497_v60 }
0x1c41   :  { %v6411_v1 = vadd.f32 %v6410_v0, %v9398_v19  ;;  %v8454_v3 = vpop.f32.mrb[67].mxu1 }
0x1c43   :  { %v6506_v4 = vsel %vm538_vm5, %v6411_v1, -inf }
0x1c44   :  { %6507 = vmax.xlane.f32.xlu1 %v6506_v4  ;;  %6504 = vmax.xlane.f32.xlu0 %v6503_v8  ;;  %v6484_v12 = vpop.f32.mrb[78].mxu0 }
0x1c45   :  { %v6485_v43 = vadd.f32 %v6484_v12, %v9395_v18  ;;  %v8459_v2 = vpop.f32.mrb[79].mxu0 }
0x1c47   :  { %v6509_v13 = vsel %vm538_vm5, %v6485_v43, -inf }
0x1c48   :  { %6510 = vmax.xlane.f32.xlu0 %v6509_v13 }
0x1c52   :  { %v6493_v19 = vpop.xlane.xlu1 %6492 }
0x1c53   :  { %v6513_v14 = vsub.f32 %v6041_v11, %v6493_v19  ;;  %v6490_v31 = vpop.xlane.xlu0 %6489 }
0x1c54   :  { %v6512_v54 = vsub.f32 %v5967_v34, %v6490_v31 }
0x1c55   :  { %5878 = vrot.lane.b32.xlu1 %v9789_v20, %s8974_s20  ;;  %v6522_v18 = vmul.f32 1.442695, %v6513_v14 }
0x1c56   :  { %v6520_v39 = vmul.f32 1.442695, %v6512_v54 }
0x1c57   :  { %8851 = vpow2.f32 %v6522_v18 }
0x1c58   :  { %8853 = vpow2.f32 %v6520_v39 }
0x1c59   :  { %5884 = vrot.lane.b32.xlu1 %v9789_v20, %s8975_s21 }
0x1c5d   :  { %5886 = vrot.lane.b32.xlu1 %v9786_v17, %s8975_s21 }
0x1c5e   :  { %5880 = vrot.lane.b32.xlu0 %v9786_v17, %s8974_s20 }
0x1c61   :  { %v8852_v7 = vpop.eup %8851 }
0x1c62   :  { %v6539_v56 = vsel %vm538_vm5, %v8852_v7, 0.0  ;;  %v8854_v48 = vpop.eup %8853 }
0x1c63   :  { %v6536_v15 = vsel %vm538_vm5, %v8854_v48, 0.0 }
0x1c7d   :  { %6540 = vadd.xlane.f32.xlu0 %v6539_v56 }
0x1c81   :  { %6537 = vadd.xlane.f32.xlu1 %v6536_v15 }
0x1cc9   :  { %v6496_v16 = vpop.xlane.xlu0 %6495 }
0x1cca   :  { %v6514_v21 = vsub.f32 %v6115_v46, %v6496_v16 }
0x1ccc   :  { %v6524_v22 = vmul.f32 1.442695, %v6514_v21 }
0x1ccd   :  { %v6502_v52 = vpop.xlane.xlu1 %6501  ;;  %v6499_v23 = vpop.xlane.xlu0 %6498 }
0x1cce   :  { %8855 = vpow2.f32 %v6524_v22  ;;  %v6516_v24 = vsub.f32 %v6263_v53, %v6502_v52  ;;  %v6515_v25 = vsub.f32 %v6189_v49, %v6499_v23 }
0x1cd0   :  { %v6528_v27 = vmul.f32 1.442695, %v6516_v24  ;;  %v6526_v28 = vmul.f32 1.442695, %v6515_v25 }
0x1cd1   :  { %v6508_v29 = vpop.xlane.xlu1 %6507  ;;  %v6505_v30 = vpop.xlane.xlu0 %6504 }
0x1cd2   :  { %8857 = vpow2.f32 %v6528_v27  ;;  %v6518_v32 = vsub.f32 %v6411_v1, %v6508_v29  ;;  %v6517_v11 = vsub.f32 %v6337_v5, %v6505_v30  ;;  %v3921_v29 = vld [vmem:[#allocation5 + $0xe0] sm:$0xff]  ;;  %v3922_v30 = vld [vmem:[#allocation5 + $0xe8] sm:$0xff] }
0x1cd3   :  { %8859 = vpow2.f32 %v6526_v28 }
0x1cd4   :  { %v6532_v10 = vmul.f32 1.442695, %v6518_v32  ;;  %v6530_v33 = vmul.f32 1.442695, %v6517_v11  ;;  %v8689_v32 = vpack.c.bf16 %v3922_v30, %v3921_v29  ;;  %v3923_v11 = vld [vmem:[#allocation5 + $0xf0] sm:$0xff]  ;;  %v7710_v30 = vld [vmem:[%s9994_s10 + $0x68] sm:$0xff] }
0x1cd5   :  { %v6511_v34 = vpop.xlane.xlu0 %6510  ;;  %v5879_v63 = vpop.permute.xlu1 %5878  ;;  %v7709_v29 = vld [vmem:[%s9994_s10 + $0x60] sm:$0xff] }
0x1cd6   :  { %8861 = vpow2.f32 %v6532_v10  ;;  %v6519_v35 = vsub.f32 %v6485_v43, %v6511_v34  ;;  %v3924_v10 = vld [vmem:[#allocation5 + $0xf8] sm:$0xff] }
0x1cd7   :  { %8863 = vpow2.f32 %v6530_v33  ;;  %v8693_v33 = vpack.c.bf16 %v3924_v10, %v3923_v11 }
0x1cd8   :  { %v8856_v36 = vpop.eup %8855  ;;  %v6534_v37 = vmul.f32 1.442695, %v6519_v35 }
0x1cd9   :  { %v6542_v38 = vsel %vm538_vm5, %v8856_v36, 0.0  ;;  %v5885_v5 = vpop.permute.xlu1 %5884  ;;  %v5881_v6 = vpop.permute.xlu0 %5880 }
0x1cda   :  { %8865 = vpow2.f32 %v6534_v37  ;;  %6543 = vadd.xlane.f32.xlu1 %v6542_v38 }
0x1cdc   :  { %v8858_v44 = vpop.eup %8857 }
0x1cdd   :  { %v8860_v45 = vpop.eup %8859  ;;  %v6548_v46 = vsel %vm538_vm5, %v8858_v44, 0.0  ;;  %v5887_v60 = vpop.permute.xlu1 %5886 }
0x1cde   :  { %6549 = vadd.xlane.f32.xlu1 %v6548_v46  ;;  %v6545_v47 = vsel %vm538_vm5, %v8860_v45, 0.0 }
0x1cdf   :  { %6546 = vadd.xlane.f32.xlu0 %v6545_v47 }
0x1ce0   :  { %v8862_v49 = vpop.eup %8861 }
0x1ce1   :  { %v8864_v51 = vpop.eup %8863  ;;  %v6554_v55 = vsel %vm538_vm5, %v8862_v49, 0.0 }
0x1ce2   :  { %6555 = vadd.xlane.f32.xlu1 %v6554_v55  ;;  %v6551_v57 = vsel %vm538_vm5, %v8864_v51, 0.0 }
0x1ce3   :  { %6552 = vadd.xlane.f32.xlu0 %v6551_v57 }
0x1ce4   :  { %v9854_v53 = vpop.eup %8865 }
0x1ce5   :  { %v6557_v61 = vsel %vm538_vm5, %v9854_v53, 0.0 }
0x1ce7   :  { %6558 = vadd.xlane.f32.xlu0 %v6557_v61 }
0x1cf3   :  { %5892 = vrot.lane.b32.xlu1 %v9786_v17, %s8976_s23 }
0x1cfd   :  { %5890 = vrot.lane.b32.xlu0 %v9789_v20, %s8976_s23 }
0x1d0a   :  { %v6541_v0 = vpop.xlane.xlu0 %6540 }
0x1d0b   :  { %8867 = vrcp.f32 %v6541_v0 }
0x1d0e   :  { %v6538_v1 = vpop.xlane.xlu1 %6537 }
0x1d0f   :  { %8869 = vrcp.f32 %v6538_v1 }
0x1d15   :  { %v8868_v3 = vpop.eup %8867 }
0x1d16   :  { %v6569_v4 = vmul.f32 %v8868_v3, %v8852_v7 }
0x1d18   :  { %8468 = vmatmul.mubr.msk.f32.vlgmr.msra.gmra.mrb[80].mxu0 %vm538_vm5, %v6569_v4 }
0x1d19   :  { %v8870_v8 = vpop.eup %8869  ;;  %8476 = vmatpush3.msra.mxu0 %v5881_v6  ;;  %8477 = vmatprep.mubr.msk.f32.mxu0 %vm8973_vm4, %v8972_v9 }
0x1d1a   :  { %v6568_v17 = vmul.f32 %v8870_v8, %v8854_v48  ;;  %8485 = vmatprep.subr.mxu0 %v8972_v9 }
0x1d1c   :  { %8463 = vmatmul.mubr.msk.f32.vlgmr.msra.gmra.mrb[68].mxu1 %vm538_vm5, %v6568_v17 }
0x1d1d   :  { %8471 = vmatpush3.msra.mxu1 %v5879_v63  ;;  %8472 = vmatprep.mubr.msk.f32.mxu1 %vm8973_vm4, %v8972_v9 }
0x1d1e   :  { %8480 = vmatprep.subr.mxu1 %v8972_v9 }
0x1d67   :  { %v6544_v20 = vpop.xlane.xlu1 %6543 }
0x1d68   :  { %8871 = vrcp.f32 %v6544_v20 }
0x1d6b   :  { %v6550_v12 = vpop.xlane.xlu1 %6549 }
0x1d6c   :  { %8873 = vrcp.f32 %v6550_v12  ;;  %v6547_v43 = vpop.xlane.xlu0 %6546 }
0x1d6d   :  { %8875 = vrcp.f32 %v6547_v43 }
0x1d6f   :  { %v6556_v2 = vpop.xlane.xlu1 %6555 }
0x1d70   :  { %8877 = vrcp.f32 %v6556_v2  ;;  %v6553_v13 = vpop.xlane.xlu0 %6552 }
0x1d71   :  { %8879 = vrcp.f32 %v6553_v13 }
0x1d72   :  { %v8872_v19 = vpop.eup %8871 }
0x1d73   :  { %v6570_v14 = vmul.f32 %v8872_v19, %v8856_v36  ;;  %v5893_v22 = vpop.permute.xlu1 %5892 }
0x1d74   :  { %v6559_v31 = vpop.xlane.xlu0 %6558 }
0x1d75   :  { %8881 = vrcp.f32 %v6559_v31  ;;  %8473 = vmatmul.mubr.msk.f32.vlgmr.msra.gmra.mrb[70].mxu1 %vm538_vm5, %v6570_v14 }
0x1d76   :  { %v8874_v18 = vpop.eup %8873  ;;  %8481 = vmatpush3.msra.mxu1 %v5885_v5  ;;  %8482 = vmatprep.mubr.msk.f32.mxu1 %vm8973_vm4, %v8972_v9 }
0x1d77   :  { %v8876_v54 = vpop.eup %8875  ;;  %v6572_v39 = vmul.f32 %v8874_v18, %v8858_v44  ;;  %8490 = vmatprep.subr.mxu1 %v8972_v9 }
0x1d78   :  { %v6571_v7 = vmul.f32 %v8876_v54, %v8860_v45  ;;  %v5891_v56 = vpop.permute.xlu0 %5890 }
0x1d79   :  { %8483 = vmatmul.mubr.msk.f32.vlgmr.msra.gmra.mrb[72].mxu1 %vm538_vm5, %v6572_v39 }
0x1d7a   :  { %v8878_v48 = vpop.eup %8877  ;;  %8478 = vmatmul.mubr.msk.f32.vlgmr.msra.gmra.mrb[82].mxu0 %vm538_vm5, %v6571_v7  ;;  %8491 = vmatpush3.msra.mxu1 %v5891_v56 }
0x1d7b   :  { %v8880_v15 = vpop.eup %8879  ;;  %v6574_v16 = vmul.f32 %v8878_v48, %v8862_v49  ;;  %8486 = vmatpush3.msra.mxu0 %v5887_v60  ;;  %8487 = vmatprep.mubr.msk.f32.mxu0 %vm8973_vm4, %v8972_v9  ;;  %v7701_v48 = vld [vmem:[%s9993_s9 + $0x28] sm:$0xff] }
0x1d7c   :  { %v6573_v21 = vmul.f32 %v8880_v15, %v8864_v51  ;;  %8492 = vmatprep.mubr.msk.f32.mxu1 %vm8973_vm4, %v8972_v9  ;;  %8495 = vmatprep.subr.mxu0 %v8972_v9 }
0x1d7d   :  { %8493 = vmatmul.mubr.msk.f32.vlgmr.msra.gmra.mrb[74].mxu1 %vm538_vm5, %v6574_v16  ;;  %8690 = vmatprep.subr.bf16.mxu1 %v8689_v32  ;;  %v7702_v16 = vld [vmem:[%s9993_s9 + $0x30] sm:$0xff] }
0x1d7e   :  { %8488 = vmatmul.mubr.msk.f32.vlgmr.msra.gmra.mrb[84].mxu0 %vm538_vm5, %v6573_v21  ;;  %8692 = vmatpush3.bf16.msra.mxu1 %v8689_v32  ;;  %v7703_v21 = vld [vmem:[%s9993_s9 + $0x38] sm:$0xff]  ;;  %v8713_v32 = vpack.c.bf16 %v7710_v30, %v7709_v29 }
0x1d7f   :  { %v8882_v52 = vpop.eup %8881  ;;  %8496 = vmatpush3.msra.mxu0 %v5893_v22  ;;  %8497 = vmatprep.mubr.msk.f32.mxu0 %vm8973_vm4, %v8972_v9  ;;  %v8701_v22 = vpack.c.bf16 %v7703_v21, %v7702_v16 }
0x1d80   :  { %v6575_v23 = vmul.f32 %v8882_v52, %v9854_v53  ;;  %8694 = vmatprep.subr.bf16.mxu1 %v8693_v33  ;;  %v7705_v52 = vld [vmem:[%s9994_s10 + $0x40] sm:$0xff] }
0x1d82   :  { %8498 = vmatmul.mubr.msk.f32.vlgmr.msra.gmra.mrb[86].mxu0 %vm538_vm5, %v6575_v23  ;;  %8696 = vmatpush3.bf16.msra.mxu1 %v8693_v33  ;;  %v7706_v23 = vld [vmem:[%s9994_s10 + $0x48] sm:$0xff] }
0x1deb   :  { %v6718_v24 = vpop.f32.mrb[80].mxu0 }
0x1dec   :  { %v8469_v25 = vpop.f32.mrb[81].mxu0 }
0x1ded   :  { %v8705_v25 = vpack.c.bf16 %v7706_v23, %v7705_v52 }
0x1def   :  { %v6645_v27 = vpop.f32.mrb[68].mxu1  ;;  %8706 = vmatprep.subr.bf16.mxu1 %v8705_v25 }
0x1df0   :  { %v8464_v28 = vpop.f32.mrb[69].mxu1 }
0x1e48   :  { %v6791_v34 = vpop.f32.mrb[70].mxu1 }
0x1e49   :  { %v8474_v9 = vpop.f32.mrb[71].mxu1  ;;  %7162 = vrot.lane.b32.xlu0 %v6791_v34, %s8969_s14 }
0x1e4c   :  { %v6937_v35 = vpop.f32.mrb[72].mxu1 }
0x1e4d   :  { %v6864_v36 = vpop.f32.mrb[82].mxu0  ;;  %v8484_v37 = vpop.f32.mrb[73].mxu1  ;;  %7170 = vrot.lane.b32.xlu0 %v6937_v35, %s8977_s4 }
0x1e4e   :  { %7164 = vrot.lane.b32.xlu1 %v6864_v36, %s8969_s14  ;;  %v8479_v38 = vpop.f32.mrb[83].mxu0  ;;  %v8894_v36 = vld [vmem:[%s9990_s6 + $0x8] sm:$0xff] }
0x1e4f   :  { %v7300_v37 = vrot.slane %v8894_v36, %v1949_v40  ;;  %v7712_v40 = vld [vmem:[%s9994_s10 + $0x78] sm:$0xff]  ;;  %v7530_v52 = vrot.slane %v8894_v36, %v3659_v42 }
0x1e50   :  { %v7083_v44 = vpop.f32.mrb[74].mxu1 }
0x1e51   :  { %v7010_v45 = vpop.f32.mrb[84].mxu0  ;;  %7178 = vrot.lane.b32.xlu0 %v7083_v44, %s8978_s7  ;;  %v8494_v46 = vpop.f32.mrb[75].mxu1 }
0x1e52   :  { %7172 = vrot.lane.b32.xlu1 %v7010_v45, %s8977_s4  ;;  %v8489_v47 = vpop.f32.mrb[85].mxu0  ;;  %v7306_v45 = vrot.slane %v8894_v36, %v3653_v41  ;;  %v7713_v41 = vld [vmem:[%s9995_s11 + $0x1] ss:$0 sm:$0xff] }
0x1e55   :  { %v7156_v49 = vpop.f32.mrb[86].mxu0 }
0x1e56   :  { %7180 = vrot.lane.b32.xlu1 %v7156_v49, %s8978_s7  ;;  %v8499_v51 = vpop.f32.mrb[87].mxu0 }
0x1ebb   :  { %v7163_v55 = vpop.permute.xlu0 %7162 }
0x1ebc   :  { %v7184_v61 = vsel %vm538_vm5, %v6645_v27, %v7163_v55  ;;  %v7708_v27 = vld [vmem:[%s9994_s10 + $0x58] sm:$0xff] }
0x1ebf   :  { %v7171_v57 = vpop.permute.xlu0 %7170 }
0x1ec0   :  { %v7165_v53 = vpop.permute.xlu1 %7164  ;;  %v7186_v63 = vsel %vm89_vm0, %v7184_v61, %v7171_v57 }
0x1ec1   :  { %v7185_v0 = vsel %vm538_vm5, %v6718_v24, %v7165_v53  ;;  %v7707_v24 = vld [vmem:[%s9994_s10 + $0x50] sm:$0xff] }
0x1ec2   :  { %v8709_v28 = vpack.c.bf16 %v7708_v27, %v7707_v24  ;;  %v7711_v53 = vld [vmem:[%s9994_s10 + $0x70] sm:$0xff]  ;;  %v7536_v27 = vrot.slane %v8894_v36, %v3881_v58  ;;  %s8979_s10 = smov [#allocation7]  }
0x1ec3   :  { %v7179_v5 = vpop.permute.xlu0 %7178  ;;  %v8717_v61 = vpack.c.bf16 %v7712_v40, %v7711_v53  ;;  %s7546_s11 = sshll.u32 %s8979_s10, 4  ;;  %s7547_s11 = int_to_ptr.vmem [resolvable:$true] %s7546_s11 }
0x1ec4   :  { %v7188_v6 = vsel %vm1831_vm6, %v7186_v63, %v7179_v5  ;;  %v7173_v60 = vpop.permute.xlu1 %7172  ;;  %s8939_s21 = scalar_lea.vmem %s7547_s11, 256  ;;  %p8944_p3 = scmp.lt.s32.totalorder %s7547_s11, %s7547_s11 }
0x1ec5   :  { %8508 = vmatprep.mubr.msk.f32.mxu1 %vm173_vm3, %v7188_v6  ;;  %v7187_v1 = vsel %vm89_vm0, %v7185_v0, %v7173_v60  ;;  %p8940_p2 = scmp.ne.s32.totalorder %s7547_s11, %s8939_s21  ;;  %p8945_p4 = scmp.lt.s32.totalorder %s8939_s21, %s8939_s21 }
0x1ec7   :  { %p8946_p5 = por %p8945_p4, %p8944_p3 }
0x1ec8   :  { %v7181_v3 = vpop.permute.xlu1 %7180 }
0x1ec9   :  { %v7189_v4 = vsel %vm1831_vm6, %v7187_v1, %v7181_v3  ;;  %v7417_v3 = vrot.slane %v8894_v36, %v3887_v59  ;;  %p8947_p6 = pnand %p8946_p5, %p8940_p2 }
0x1eca   :  { %8509 = vmatmul.mubr.msk.f32.vlgmr.msra.gmra.mrb[76].mxu1 %vm173_vm3, %v7189_v4 }
0x1ecb   :  { %8708 = vmatpush3.bf16.msra.mxu1 %v8705_v25 }
0x1ecc   :  { %8710 = vmatprep.subr.bf16.mxu1 %v8709_v28 }
0x1ecf   :  { %8712 = vmatpush3.bf16.msra.mxu1 %v8709_v28 }
0x1ed0   :  { %8714 = vmatprep.subr.bf16.mxu1 %v8713_v32 }
0x1ed3   :  { %8716 = vmatpush3.bf16.msra.mxu1 %v8713_v32 }
0x1ed4   :  { %8718 = vmatprep.subr.bf16.mxu1 %v8717_v61 }
0x1ed7   :  { %8720 = vmatpush3.bf16.msra.mxu1 %v8717_v61 }
0x1f9d   :  { %v8510_v8 = vpop.f32.mrb[76].mxu1 }
0x1f9e   :  { %v7268_v17 = vadd.f32 %v8510_v8, %v9753_v62  ;;  %v7262_v20 = vpop.f32.mrb[77].mxu1 }
0x1f9f   :  { %v7263_v12 = vadd.f32 %v7262_v20, %v9749_v26  ;;  %v7700_v26 = vld [vmem:[%s9993_s9 + $0x20] sm:$0xff] }
0x1fa0   :  { %v7274_v43 = vsel %vm173_vm3, %v7268_v17, 0.0  ;;  %v8697_v15 = vpack.c.bf16 %v7701_v48, %v7700_v26 }
0x1fa1   :  { %7275 = vadd.xlane.f32.xlu1 %v7274_v43  ;;  %v7271_v2 = vsel %vm173_vm3, %v7263_v12, 0.0 }
0x1fa2   :  { %7272 = vadd.xlane.f32.xlu0 %v7271_v2  ;;  %8698 = vmatprep.subr.bf16.mxu0 %v8697_v15 }
0x1fa3   :  { %8700 = vmatpush3.bf16.msra.mxu0 %v8697_v15 }
0x1fa4   :  { %8702 = vmatprep.subr.bf16.mxu0 %v8701_v22 }
0x1fa7   :  { %8704 = vmatpush3.bf16.msra.mxu0 %v8701_v22 }
0x202e   :  { %v7276_v13 = vpop.xlane.xlu1 %7275 }
0x202f   :  { %v7278_v19 = vmul.f32 0.03125, %v7276_v13  ;;  %v7273_v14 = vpop.xlane.xlu0 %7272 }
0x2030   :  { %v7277_v31 = vmul.f32 0.03125, %v7273_v14 }
0x2031   :  { %v7280_v18 = vsub.f32 %v7268_v17, %v7278_v19 }
0x2032   :  { %v7279_v54 = vsub.f32 %v7263_v12, %v7277_v31 }
0x2033   :  { %v7282_v56 = vmul.f32 %v7280_v18, %v7280_v18 }
0x2034   :  { %v7281_v39 = vmul.f32 %v7279_v54, %v7279_v54 }
0x2035   :  { %v7286_v62 = vsel %vm173_vm3, %v7282_v56, 0.0 }
0x2036   :  { %v7283_v7 = vsel %vm173_vm3, %v7281_v39, 0.0 }
0x2037   :  { %7284 = vadd.xlane.f32.xlu0 %v7283_v7 }
0x203b   :  { %7287 = vadd.xlane.f32.xlu0 %v7286_v62 }
0x20c4   :  { %v7285_v11 = vpop.xlane.xlu0 %7284 }
0x20c5   :  { %v7289_v10 = vmul.f32 0.03125, %v7285_v11 }
0x20c7   :  { %v7291_v33 = vadd.f32 1e-06, %v7289_v10 }
0x20c8   :  { %v7288_v34 = vpop.xlane.xlu0 %7287 }
0x20c9   :  { %8883 = vrsqrt.f32 %v7291_v33  ;;  %v7290_v9 = vmul.f32 0.03125, %v7288_v34 }
0x20cb   :  { %v7292_v35 = vadd.f32 1e-06, %v7290_v9 }
0x20cd   :  { %8885 = vrsqrt.f32 %v7292_v35 }
0x20d3   :  { %v8884_v38 = vpop.eup %8883 }
0x20d4   :  { %v7295_v44 = vmul.f32 %v8884_v38, %v7279_v54 }
0x20d6   :  { %v7301_v46 = vmul.f32 %v7300_v37, %v7295_v44 }
0x20d7   :  { %v8886_v47 = vpop.eup %8885 }
0x20d8   :  { %v7296_v49 = vmul.f32 %v8886_v47, %v7280_v18  ;;  %v7307_v51 = vadd.f32 %v7306_v45, %v7301_v46 }
0x20da   :  { %v7302_v55 = vmul.f32 %v7300_v37, %v7296_v49  ;;  %8519 = vmatprep.mubr.msk.f32.mxu0 %vm173_vm3, %v7307_v51 }
0x20dc   :  { %v7308_v57 = vadd.f32 %v7306_v45, %v7302_v55 }
0x20de   :  { %8520 = vmatmul.mubr.msk.f32.vlgmr.msra.gmra.mrb[88].mxu0 %vm173_vm3, %v7308_v57 }
0x21b1   :  { %v8521_v63 = vpop.f32.mrb[88].mxu0 }
0x21b2   :  { %v7409_v5 = vadd.f32 %v8521_v63, %v7713_v41  ;;  %v7403_v6 = vpop.f32.mrb[89].mxu0 }
0x21b3   :  { %v7404_v60 = vadd.f32 %v7713_v41, %v7403_v6 }
0x21b4   :  { %v7413_v1 = vmax.f32 %v7409_v5, 0.0 }
0x21b5   :  { %v7412_v0 = vmax.f32 %v7404_v60, 0.0 }
0x21b7   :  { %8538 = vmatprep.mubr.msk.f32.mxu1 %vm3769_vm7, %v7412_v0 }
0x21b8   :  { %8539 = vmatmul.mubr.msk.f32.vlgmr.msra.gmra.mrb[78].mxu1 %vm3769_vm7, %v7413_v1 }
0x228b   :  { %v8540_v4 = vpop.f32.mrb[78].mxu1 }
0x228c   :  { %v7496_v8 = vadd.f32 %v8540_v4, %v7417_v3  ;;  %v7490_v17 = vpop.f32.mrb[79].mxu1 }
0x228d   :  { %v7491_v20 = vadd.f32 %v7490_v17, %v7417_v3 }
0x228e   :  { %v7500_v12 = vadd.f32 %v7496_v8, %v7308_v57 }
0x228f   :  { %v7499_v43 = vadd.f32 %v7491_v20, %v7307_v51 }
0x2290   :  { %v7504_v2 = vsel %vm173_vm3, %v7500_v12, 0.0 }
0x2291   :  { %7505 = vadd.xlane.f32.xlu0 %v7504_v2  ;;  %v7501_v13 = vsel %vm173_vm3, %v7499_v43, 0.0 }
0x2292   :  { %7502 = vadd.xlane.f32.xlu1 %v7501_v13 }
0x231e   :  { %v7506_v19 = vpop.xlane.xlu0 %7505 }
0x231f   :  { %v7508_v14 = vmul.f32 0.03125, %v7506_v19  ;;  %v7503_v31 = vpop.xlane.xlu1 %7502 }
0x2320   :  { %v7507_v18 = vmul.f32 0.03125, %v7503_v31 }
0x2321   :  { %v7510_v54 = vsub.f32 %v7500_v12, %v7508_v14 }
0x2322   :  { %v7509_v39 = vsub.f32 %v7499_v43, %v7507_v18 }
0x2323   :  { %v7512_v7 = vmul.f32 %v7510_v54, %v7510_v54 }
0x2324   :  { %v7511_v59 = vmul.f32 %v7509_v39, %v7509_v39 }
0x2325   :  { %v7516_v56 = vsel %vm173_vm3, %v7512_v7, 0.0 }
0x2326   :  { %7517 = vadd.xlane.f32.xlu0 %v7516_v56  ;;  %v7513_v62 = vsel %vm173_vm3, %v7511_v59, 0.0 }
0x2327   :  { %7514 = vadd.xlane.f32.xlu1 %v7513_v62 }
0x23b3   :  { %v7518_v26 = vpop.xlane.xlu0 %7517 }
0x23b4   :  { %v7520_v48 = vmul.f32 0.03125, %v7518_v26  ;;  %v7515_v15 = vpop.xlane.xlu1 %7514 }
0x23b5   :  { %v7519_v16 = vmul.f32 0.03125, %v7515_v15 }
0x23b6   :  { %v7522_v21 = vadd.f32 1e-06, %v7520_v48 }
0x23b7   :  { %v7521_v22 = vadd.f32 1e-06, %v7519_v16 }
0x23b8   :  { %8887 = vrsqrt.f32 %v7522_v21 }
0x23b9   :  { %8889 = vrsqrt.f32 %v7521_v22 }
0x23c2   :  { %v8888_v23 = vpop.eup %8887 }
0x23c3   :  { %v8890_v24 = vpop.eup %8889  ;;  %v7526_v25 = vmul.f32 %v8888_v23, %v7510_v54 }
0x23c4   :  { %v7525_v28 = vmul.f32 %v8890_v24, %v7509_v39 }
0x23c5   :  { %v7532_v29 = vmul.f32 %v7530_v52, %v7526_v25 }
0x23c6   :  { %v7531_v30 = vmul.f32 %v7530_v52, %v7525_v28 }
0x23c7   :  { %v7538_v32 = vadd.f32 %v7536_v27, %v7532_v29 }
0x23c8   :  { %v7537_v11 = vadd.f32 %v7536_v27, %v7531_v30 }
0x23c9   :  { %7540 = vst.msk [vmem:[#allocation7 + $0x8] sm:$0xff] %vm173_vm3, %v7538_v32 }
0x23ca   :  { %7539 = vst.msk [vmem:[#allocation7] sm:$0xff] %vm173_vm3, %v7537_v11 }
0x23cb   :  { %8950 = shalt.err (!%p8947_p6)
}
0x23cc   :  { %s8951_s7 = scalar_lea.hbm %s9996_s12, 256 }
0x23cd   :  { %p8952_p7 = scmp.ne.s32.totalorder %s9996_s12, %s8951_s7  ;;  %p8955_p8 = scmp.lt.u32.totalorder %s8951_s7, %s9996_s12 }
0x23cf   :  { %p8957_p9 = pnand %p8955_p8, %p8952_p7 }
0x23d1   :  { %8960 = shalt.err (!%p8957_p9)
}
0x23d2   :  { %7552 = dma.vmem_to_hbm [thread:$0]  %s7547_s11, 256, %s9996_s12, [#allocation4], %s8968_s13, %s8968_s13, %s8969_s14  }
0x23d3   :  { %8965 = dma.done.wait [#allocation4], 256  }
0x23d4   :  { %8966 = vsyncadd [#allocation4], 4294967040 }
0x23d5   :  { %7556 = vsyncpa [#allocation3], 1 }
0x23d6   :  { %7557 = vsyncpa [#allocation6], 1 }
0x23d7   :  { %7558 = vsyncpa [#allocation4], 1 }

</bundles_post_ra>
